<compile_context>
chip_gen: v7x
topology: tpu7x:2x2x1
jax: 0.10.0
libtpu: 0.0.40
codegen_flags: <defaults>
</compile_context>

<pallas_src>
import jax
import jax.numpy as jnp
from jax.experimental import pallas as pl
from jax.experimental.pallas import tpu as pltpu

IN_DIMS = 576        # c * w * h (e.g. 1 x 24 x 24)
H1 = 1000
H2 = 100
OUT_DIMS = 10

# Lane-aligned padded sizes.
IN_PAD = 640         # 5 * 128
H1P = 1024
H2P = 128
OUTP = 128

NEG_BIG = -1.0e30    # bias for padded logit lanes -> exp underflows to exactly 0


def _round_up(v, m):
    return ((v + m - 1) // m) * m


def _sigmoid(x):
    # sigmoid(x) = 0.5 * (1 + tanh(0.5 * x)): a single EUP transcendental.
    return 0.5 * (1.0 + jnp.tanh(0.5 * x))


def mlp_kernel(x_ref, w1_ref, b1_ref, w2_ref, b2_ref, w3_ref, b3_ref, o_ref):
    # x_ref: (TM, 640) bf16 tile streaming over the batch; weights bf16,
    # biases f32, all VMEM-resident.
    x = x_ref[...]                                                       # bf16

    h1 = jnp.dot(x, w1_ref[...], preferred_element_type=jnp.float32)    # (TM, 1024) f32
    h1 = _sigmoid(h1 + b1_ref[...]).astype(jnp.bfloat16)

    h2 = jnp.dot(h1, w2_ref[...], preferred_element_type=jnp.float32)   # (TM, 128) f32
    h2 = _sigmoid(h2 + b2_ref[...]).astype(jnp.bfloat16)

    logits = jnp.dot(h2, w3_ref[...], preferred_element_type=jnp.float32)  # (TM, 128)
    logits = logits + b3_ref[...]        # padded lanes get -1e30

    # Softmax over the lane-dense padded last dim.  No max-subtraction needed:
    # |h2| <= 1 and w3 is small, so exp() cannot overflow in f32; padded lanes
    # (-1e30) underflow to exactly 0.  Exact reciprocal -> rows sum to 1.
    e = jnp.exp(logits)
    denom = jnp.sum(e, axis=-1, keepdims=True)
    o_ref[...] = e * (1.0 / denom)


def prepare_params(params):
    """Pad to lane multiples and cast weights to bf16 (do this once)."""
    w1, b1, w2, b2, w3, b3 = params

    w1p = jnp.zeros((IN_PAD, H1P), jnp.bfloat16).at[:IN_DIMS, :H1].set(
        w1.astype(jnp.bfloat16))
    b1p = jnp.zeros((1, H1P), jnp.float32).at[:, :H1].set(b1.reshape(1, H1))

    w2p = jnp.zeros((H1P, H2P), jnp.bfloat16).at[:H1, :H2].set(w2.astype(jnp.bfloat16))
    b2p = jnp.zeros((1, H2P), jnp.float32).at[:, :H2].set(b2.reshape(1, H2))

    w3p = jnp.zeros((H2P, OUTP), jnp.bfloat16).at[:H2, :OUT_DIMS].set(
        w3.astype(jnp.bfloat16))
    b3p = jnp.full((1, OUTP), NEG_BIG, jnp.float32).at[:, :OUT_DIMS].set(
        b3.reshape(1, OUT_DIMS))

    return (w1p, b1p, w2p, b2p, w3p, b3p)


def _pick_tm(n):
    if n <= 512:
        # Single grid step; pad rows up to a multiple of 128 (never tiny M=8 tiles).
        return max(128, _round_up(n, 128))
    # Large batches: 512-row tiles -> >=2 grid steps so the "parallel" batch
    # axis splits across v7x's two TensorCores.  (Sweep 512 vs 1024 if tuning.)
    return 512


def dnn_mnist_classify_forward(x_nchw, prepared_params, tm=None):
    n, c, w, h = x_nchw.shape
    assert c * w * h == IN_DIMS, "flattened feature dim must be 576"

    w1p, b1p, w2p, b2p, w3p, b3p = prepared_params
    # Guard against un-prepared params (padding scheme relies on zeroed pads).
    assert w1p.shape == (IN_PAD, H1P) and w1p.dtype == jnp.bfloat16, \
        "params must come from prepare_params()"
    assert w3p.shape == (H2P, OUTP) and b3p.shape == (1, OUTP)

    if tm is None:
        tm = _pick_tm(n)
    tm = _round_up(max(int(tm), 16), 16)          # bf16-friendly sublane multiple

    n_pad = _round_up(n, tm)

    # Stream x as bf16, feature dim padded 576 -> 640 with zero columns.
    x = x_nchw.reshape(n, IN_DIMS).astype(jnp.bfloat16)
    x = jnp.pad(x, ((0, n_pad - n), (0, IN_PAD - IN_DIMS)))

    weight_bytes = (IN_PAD * H1P + H1P * H2P + H2P * OUTP) * 2 \
                   + (H1P + H2P + OUTP) * 4
    cost = pl.CostEstimate(
        flops=2 * n_pad * (IN_PAD * H1P + H1P * H2P + H2P * OUTP),
        transcendentals=n_pad * (H1P + H2P + OUTP),   # tanh per hidden unit + exp per logit lane
        bytes_accessed=n_pad * IN_PAD * 2 + n_pad * OUTP * 4 + weight_bytes,
    )

    out = pl.pallas_call(
        mlp_kernel,
        out_shape=jax.ShapeDtypeStruct((n_pad, OUTP), jnp.float32),
        grid=(n_pad // tm,),
        in_specs=[
            pl.BlockSpec((tm, IN_PAD), lambda i: (i, 0)),      # x tile streams
            pl.BlockSpec((IN_PAD, H1P), lambda i: (0, 0)),     # weights resident
            pl.BlockSpec((1, H1P), lambda i: (0, 0)),
            pl.BlockSpec((H1P, H2P), lambda i: (0, 0)),
            pl.BlockSpec((1, H2P), lambda i: (0, 0)),
            pl.BlockSpec((H2P, OUTP), lambda i: (0, 0)),
            pl.BlockSpec((1, OUTP), lambda i: (0, 0)),
        ],
        out_specs=pl.BlockSpec((tm, OUTP), lambda i: (i, 0)),  # lane-dense output
        compiler_params=pltpu.CompilerParams(
            dimension_semantics=("parallel",),                 # megacore on v7x
            vmem_limit_bytes=32 * 1024 * 1024,                 # ~3x working set
        ),
        cost_estimate=cost,
    )(x, w1p, b1p, w2p, b2p, w3p, b3p)

    return out[:n, :OUT_DIMS]


def init_params(key):
    """Deterministic init matching nn.Linear's default U(-1/sqrt(fan_in), +)."""
    ks = jax.random.split(key, 6)

    def linear(kw, kb, fan_in, fan_out):
        bound = 1.0 / jnp.sqrt(float(fan_in))
        w = jax.random.uniform(kw, (fan_in, fan_out), jnp.float32, -bound, bound)
        b = jax.random.uniform(kb, (fan_out,), jnp.float32, -bound, bound)
        return w, b

    w1, b1 = linear(ks[0], ks[1], IN_DIMS, H1)
    w2, b2 = linear(ks[2], ks[3], H1, H2)
    w3, b3 = linear(ks[4], ks[5], H2, OUT_DIMS)
    return (w1, b1, w2, b2, w3, b3)


def reference_forward(x_nchw, params):
    """Pure-JAX reference using the same bf16 weight/activation quantization."""
    n = x_nchw.shape[0]
    x = x_nchw.reshape(n, -1).astype(jnp.float32)
    w1, b1, w2, b2, w3, b3 = params

    def mm(a, wgt):
        return jnp.dot(a.astype(jnp.bfloat16), wgt.astype(jnp.bfloat16),
                       preferred_element_type=jnp.float32)

    h1 = jax.nn.sigmoid(mm(x, w1) + b1)
    h2 = jax.nn.sigmoid(mm(h1, w2) + b2)
    logits = mm(h2, w3) + b3
    return jax.nn.softmax(logits, axis=-1)


if __name__ == "__main__":
    key = jax.random.PRNGKey(0)
    k_params, k_x1, k_x2 = jax.random.split(key, 3)

    params = init_params(k_params)
    prepared = prepare_params(params)

    # (a) batch not a multiple of the tile, explicit tm=128 -> 2 grid steps,
    #     exercises both batch padding and the multi-step pipeline.
    x1 = jax.random.normal(k_x1, (200, 1, 24, 24), jnp.float32)
    out1 = jax.block_until_ready(dnn_mnist_classify_forward(x1, prepared, tm=128))
    ref1 = reference_forward(x1, params)
    assert out1.shape == (200, OUT_DIMS)
    assert jnp.allclose(out1, ref1, atol=5e-3, rtol=1e-2), (
        float(jnp.max(jnp.abs(out1 - ref1))))
    assert jnp.allclose(jnp.sum(out1, axis=-1), 1.0, atol=1e-3)

    # (b) tiny batch with the default tile (rounds up to 128 rows, single step).
    x2 = jax.random.normal(k_x2, (32, 1, 24, 24), jnp.float32)
    out2 = jax.block_until_ready(dnn_mnist_classify_forward(x2, prepared))
    ref2 = reference_forward(x2, params)
    assert out2.shape == (32, OUT_DIMS)
    assert jnp.allclose(out2, ref2, atol=5e-3, rtol=1e-2), (
        float(jnp.max(jnp.abs(out2 - ref2))))
    assert jnp.allclose(jnp.sum(out2, axis=-1), 1.0, atol=1e-3)

    print("KERNEL_OK")
</pallas_src>

<mosaic_0001>
module attributes {stable_mosaic.version = 11 : i64} {
  func.func @mlp_kernel(%arg0: i32, %arg1: memref<128x640xbf16, #tpu.memory_space<vmem>>, %arg2: memref<640x1024xbf16, #tpu.memory_space<vmem>>, %arg3: memref<1x1024xf32, #tpu.memory_space<vmem>>, %arg4: memref<1024x128xbf16, #tpu.memory_space<vmem>>, %arg5: memref<1x128xf32, #tpu.memory_space<vmem>>, %arg6: memref<128x128xbf16, #tpu.memory_space<vmem>>, %arg7: memref<1x128xf32, #tpu.memory_space<vmem>>, %arg8: memref<128x128xf32, #tpu.memory_space<vmem>>) attributes {dimension_semantics = [#tpu.dimension_semantics<parallel>], iteration_bounds = array<i64: 2>, scalar_prefetch = 0 : i64, scratch_operands = 0 : i64, tpu.core_type = #tpu.core_type<tc>, window_params = [{transform_indices = @transform_0, window_bounds = array<i64: 128, 640>}, {pipeline_mode = #tpu.pipeline_mode<synchronous>, transform_indices = @transform_1, window_bounds = array<i64: 640, 1024>}, {pipeline_mode = #tpu.pipeline_mode<synchronous>, transform_indices = @transform_2, window_bounds = array<i64: 1, 1024>}, {pipeline_mode = #tpu.pipeline_mode<synchronous>, transform_indices = @transform_3, window_bounds = array<i64: 1024, 128>}, {pipeline_mode = #tpu.pipeline_mode<synchronous>, transform_indices = @transform_4, window_bounds = array<i64: 1, 128>}, {pipeline_mode = #tpu.pipeline_mode<synchronous>, transform_indices = @transform_5, window_bounds = array<i64: 128, 128>}, {pipeline_mode = #tpu.pipeline_mode<synchronous>, transform_indices = @transform_6, window_bounds = array<i64: 1, 128>}, {transform_indices = @transform_7, window_bounds = array<i64: 128, 128>}]} {
    %c0 = arith.constant 0 : index
    %c0_0 = arith.constant 0 : index
    %0 = vector.load %arg1[%c0, %c0_0] : memref<128x640xbf16, #tpu.memory_space<vmem>>, vector<128x640xbf16>
    %c0_1 = arith.constant 0 : index
    %c0_2 = arith.constant 0 : index
    %1 = vector.load %arg2[%c0_1, %c0_2] : memref<640x1024xbf16, #tpu.memory_space<vmem>>, vector<640x1024xbf16>
    %cst = arith.constant dense<0.000000e+00> : vector<128x1024xf32>
    %2 = tpu.matmul %0, %1, %cst {dimension_numbers = #tpu.dot_dimension_numbers<[1], [0], [0], [1], [0, 0, 1, 1], [], []>} : vector<128x640xbf16>, vector<640x1024xbf16>, vector<128x1024xf32> -> vector<128x1024xf32>
    %c0_3 = arith.constant 0 : index
    %c0_4 = arith.constant 0 : index
    %3 = vector.load %arg3[%c0_3, %c0_4] : memref<1x1024xf32, #tpu.memory_space<vmem>>, vector<1x1024xf32>
    %4 = vector.broadcast %3 : vector<1x1024xf32> to vector<128x1024xf32>
    %5 = arith.addf %2, %4 : vector<128x1024xf32>
    %cst_5 = arith.constant 5.000000e-01 : f32
    %6 = vector.broadcast %cst_5 : f32 to vector<128x1024xf32>
    %7 = arith.mulf %6, %5 : vector<128x1024xf32>
    %8 = math.tanh %7 : vector<128x1024xf32>
    %cst_6 = arith.constant 1.000000e+00 : f32
    %9 = vector.broadcast %cst_6 : f32 to vector<128x1024xf32>
    %10 = arith.addf %9, %8 : vector<128x1024xf32>
    %cst_7 = arith.constant 5.000000e-01 : f32
    %11 = vector.broadcast %cst_7 : f32 to vector<128x1024xf32>
    %12 = arith.mulf %11, %10 : vector<128x1024xf32>
    %13 = arith.truncf %12 : vector<128x1024xf32> to vector<128x1024xbf16>
    %c0_8 = arith.constant 0 : index
    %c0_9 = arith.constant 0 : index
    %14 = vector.load %arg4[%c0_8, %c0_9] : memref<1024x128xbf16, #tpu.memory_space<vmem>>, vector<1024x128xbf16>
    %cst_10 = arith.constant dense<0.000000e+00> : vector<128x128xf32>
    %15 = tpu.matmul %13, %14, %cst_10 {dimension_numbers = #tpu.dot_dimension_numbers<[1], [0], [0], [1], [0, 0, 1, 1], [], []>} : vector<128x1024xbf16>, vector<1024x128xbf16>, vector<128x128xf32> -> vector<128x128xf32>
    %c0_11 = arith.constant 0 : index
    %c0_12 = arith.constant 0 : index
    %16 = vector.load %arg5[%c0_11, %c0_12] : memref<1x128xf32, #tpu.memory_space<vmem>>, vector<1x128xf32>
    %17 = vector.broadcast %16 : vector<1x128xf32> to vector<128x128xf32>
    %18 = arith.addf %15, %17 : vector<128x128xf32>
    %cst_13 = arith.constant 5.000000e-01 : f32
    %19 = vector.broadcast %cst_13 : f32 to vector<128x128xf32>
    %20 = arith.mulf %19, %18 : vector<128x128xf32>
    %21 = math.tanh %20 : vector<128x128xf32>
    %cst_14 = arith.constant 1.000000e+00 : f32
    %22 = vector.broadcast %cst_14 : f32 to vector<128x128xf32>
    %23 = arith.addf %22, %21 : vector<128x128xf32>
    %cst_15 = arith.constant 5.000000e-01 : f32
    %24 = vector.broadcast %cst_15 : f32 to vector<128x128xf32>
    %25 = arith.mulf %24, %23 : vector<128x128xf32>
    %26 = arith.truncf %25 : vector<128x128xf32> to vector<128x128xbf16>
    %c0_16 = arith.constant 0 : index
    %c0_17 = arith.constant 0 : index
    %27 = vector.load %arg6[%c0_16, %c0_17] : memref<128x128xbf16, #tpu.memory_space<vmem>>, vector<128x128xbf16>
    %cst_18 = arith.constant dense<0.000000e+00> : vector<128x128xf32>
    %28 = tpu.matmul %26, %27, %cst_18 {dimension_numbers = #tpu.dot_dimension_numbers<[1], [0], [0], [1], [0, 0, 1, 1], [], []>} : vector<128x128xbf16>, vector<128x128xbf16>, vector<128x128xf32> -> vector<128x128xf32>
    %c0_19 = arith.constant 0 : index
    %c0_20 = arith.constant 0 : index
    %29 = vector.load %arg7[%c0_19, %c0_20] : memref<1x128xf32, #tpu.memory_space<vmem>>, vector<1x128xf32>
    %30 = vector.broadcast %29 : vector<1x128xf32> to vector<128x128xf32>
    %31 = arith.addf %28, %30 : vector<128x128xf32>
    %32 = math.exp %31 : vector<128x128xf32>
    %cst_21 = arith.constant dense<0.000000e+00> : vector<128xf32>
    %33 = vector.multi_reduction <add>, %32, %cst_21 [1] : vector<128x128xf32> to vector<128xf32>
    %34 = vector.shape_cast %33 : vector<128xf32> to vector<128x1xf32>
    %cst_22 = arith.constant 1.000000e+00 : f32
    %35 = vector.broadcast %cst_22 : f32 to vector<128x1xf32>
    %36 = arith.divf %35, %34 : vector<128x1xf32>
    %37 = vector.broadcast %36 : vector<128x1xf32> to vector<128x128xf32>
    %38 = arith.mulf %32, %37 : vector<128x128xf32>
    %c0_23 = arith.constant 0 : index
    %c0_24 = arith.constant 0 : index
    %39 = vector.load %arg8[%c0_23, %c0_24] : memref<128x128xf32, #tpu.memory_space<vmem>>, vector<128x128xf32>
    tpu.vector_store %arg8[%c0_23, %c0_24], %38 {strides = array<i32>} : memref<128x128xf32, #tpu.memory_space<vmem>>, vector<128x128xf32>,
    return
  }
  func.func @transform_0(%arg0: i32) -> (i32, i32) {
    %c0_i32 = arith.constant 0 : i32
    %c0_i32_0 = arith.constant 0 : i32
    return %arg0, %c0_i32 : i32, i32
  }
  func.func @transform_1(%arg0: i32) -> (i32, i32) {
    %c0_i32 = arith.constant 0 : i32
    %c0_i32_0 = arith.constant 0 : i32
    %c0_i32_1 = arith.constant 0 : i32
    return %c0_i32, %c0_i32_0 : i32, i32
  }
  func.func @transform_2(%arg0: i32) -> (i32, i32) {
    %c0_i32 = arith.constant 0 : i32
    %c0_i32_0 = arith.constant 0 : i32
    %c0_i32_1 = arith.constant 0 : i32
    return %c0_i32, %c0_i32_0 : i32, i32
  }
  func.func @transform_3(%arg0: i32) -> (i32, i32) {
    %c0_i32 = arith.constant 0 : i32
    %c0_i32_0 = arith.constant 0 : i32
    %c0_i32_1 = arith.constant 0 : i32
    return %c0_i32, %c0_i32_0 : i32, i32
  }
  func.func @transform_4(%arg0: i32) -> (i32, i32) {
    %c0_i32 = arith.constant 0 : i32
    %c0_i32_0 = arith.constant 0 : i32
    %c0_i32_1 = arith.constant 0 : i32
    return %c0_i32, %c0_i32_0 : i32, i32
  }
  func.func @transform_5(%arg0: i32) -> (i32, i32) {
    %c0_i32 = arith.constant 0 : i32
    %c0_i32_0 = arith.constant 0 : i32
    %c0_i32_1 = arith.constant 0 : i32
    return %c0_i32, %c0_i32_0 : i32, i32
  }
  func.func @transform_6(%arg0: i32) -> (i32, i32) {
    %c0_i32 = arith.constant 0 : i32
    %c0_i32_0 = arith.constant 0 : i32
    %c0_i32_1 = arith.constant 0 : i32
    return %c0_i32, %c0_i32_0 : i32, i32
  }
  func.func @transform_7(%arg0: i32) -> (i32, i32) {
    %c0_i32 = arith.constant 0 : i32
    %c0_i32_0 = arith.constant 0 : i32
    return %arg0, %c0_i32 : i32, i32
  }
}

</mosaic_0001>

<bundles_post_ra>
// kernel: tpu_custom_call.1
= control target key start
LH: loop header
LB: loop body
LE: loop exit
PB: predicated region body
PF: predicated region fallthrough
CT: control target
= control target key end

     0   :  { %s9353_s0 = inlined_call_operand.hbm [shape: bf16[256,640], index: 0, kind: input, shape index: {}]   ;;  %s9354_s1 = inlined_call_operand.hbm [shape: bf16[640,1024], index: 1, kind: input, shape index: {}]   ;;  %s9355_s2 = inlined_call_operand.hbm [shape: f32[1,1024], index: 2, kind: input, shape index: {}]   ;;  %s9356_s3 = inlined_call_operand.hbm [shape: bf16[1024,128], index: 3, kind: input, shape index: {}]   ;;  %s9357_s4 = inlined_call_operand.hbm [shape: f32[1,128], index: 4, kind: input, shape index: {}]   ;;  %s9358_s5 = inlined_call_operand.hbm [shape: bf16[128,128], index: 5, kind: input, shape index: {}]   ;;  %s9359_s6 = inlined_call_operand.hbm [shape: f32[1,128], index: 6, kind: input, shape index: {}]   ;;  %s9360_s7 = inlined_call_operand.hbm [shape: f32[256,128], index: 7, kind: output, shape index: {}]  }
   0x1   :  { %9366 = sst [smem:[#allocation24_spill]] %s9354_s1 }
   0x2   :  { %12 = vsyncpa [#allocation3], 0 }
   0x3   :  { %14 = vsyncpa [#allocation3 + $0x1], 0 }
   0x4   :  { %15 = vsyncpa [#allocation6], 0 }
   0x5   :  { %16 = vsyncpa [#allocation9], 0 }
   0x6   :  { %17 = vsyncpa [#allocation12], 0 }
   0x7   :  { %18 = vsyncpa [#allocation4], 0 }
   0x8   :  { %20 = vsyncpa [#allocation4 + $0x1], 0  ;;  %s8090_s24 = smov 0   ;;  %s8092_s25 = smov 0  }
   0x9   :  { %s8094_s26 = smov 0   ;;  %s8096_s27 = smov 0  }
   0xa LB: > { %s8033_s28 = smov [#allocation5]   ;;  %s8111_s30 = sadd.s32 4294967295, %s8031_s27   ;;  %s8031_s27 = sphi %s8096_s27, %s9397_s27   ;;  %s8027_s26 = sphi %s8094_s26, %s9396_s26   ;;  %s8023_s25 = sphi %s8092_s25, %s9395_s25   ;;  %s8019_s24 = sphi %s8090_s24, %s9394_s24  }
   0xb   : > { %s221_s29 = sshll.u32 %s8033_s28, 4  ;;  %p5952_p0 = scmp.ge.s32.totalorder %s8031_s27, 1  ;;  %s8116_s29 = int_to_ptr.vmem [resolvable:$true] %s221_s29 }
   0xc   : > { %p9361_p1 = scmp.eq.s32.totalorder %s8111_s30, 0  ;;  %p209_p2 = scmp.lt.s32.totalorder %s8031_s27, 3 }
   0xd   : > { %s8034_s9 = smov [#allocation8]   ;;  %s8035_s12 = smov [#allocation11]  }
   0xe   : > { %p8118_p3 = pnand %p5952_p0, %p209_p2  ;;  %s245_s10 = sshll.u32 %s8034_s9, 4  ;;  %s8131_s10 = int_to_ptr.vmem [resolvable:$true] %s245_s10 }
   0xf   : > { %s8133_s13 = sshll.u32 %s8035_s12, 4  ;;  %s9369_s1 = sld [smem:[#allocation24_spill]]  ;;  %s270_s13 = int_to_ptr.vmem [resolvable:$true] %s8133_s13 }
  0x10   : > { %s9367_s8 = scalar_select %p8118_p3, 1, 0 }
  0x11   : > { %p7146_p5 = pneg %p8118_p3 }
  0x13   : > { %p8127_p6 = pnand %p7146_p5, %p9361_p1 }
  0x15   : > { %s7755_s16 = scalar_lea.hbm %s9369_s1, 40960  ;;  %p8143_p8 = pneg %p8127_p6 }
  0x16   : > { %p7756_p7 = scmp.ne.s32.totalorder %s9369_s1, %s7755_s16  ;;  %p7762_p11 = scmp.lt.u32.totalorder %s7755_s16, %s9369_s1 }
  0x18   : > { %p7758_p9 = pnand %p8143_p8, %p7756_p7 }
  0x1a   : > { %p7759_p10 = pneg %p7758_p9 }
  0x1c   : > { %p7764_p12 = pnand %p7762_p11, %p7759_p10 }
  0x1e   : > { %7767 = shalt.err (!%p7764_p12)
}
  0x1f   : > { %s7768_s22 = scalar_lea.vmem %s8116_s29, 40960  ;;  %p7776_p5 = scmp.lt.s32.totalorder %s8116_s29, %s8116_s29 }
  0x20   : > { %p7769_p13 = scmp.ne.s32.totalorder %s8116_s29, %s7768_s22  ;;  %p7777_p4 = scmp.lt.s32.totalorder %s7768_s22, %s7768_s22 }
  0x22   : > { %p7771_p0 = pnand %p7769_p13, %p8143_p8  ;;  %p7778_p7 = por %p7777_p4, %p7776_p5 }
  0x24   : > { %p7772_p2 = pneg %p7771_p0 }
  0x26   : > { %p7779_p9 = pnand %p7778_p7, %p7772_p2 }
  0x28   : > { %7782 = shalt.err (!%p7779_p9)
}
  0x29   : > { %s8036_s23 = smov 512   ;;  %s8037_s28 = smov 32  }
  0x2a   : > { %7149 = dma.hbm_to_vmem [thread:$0]  (!%p8127_p6), %s9369_s1, 40960, %s8116_s29, [#allocation6], %s8036_s23, %s8036_s23, %s8037_s28  }
  0x2b   : > { %s7783_s16 = scalar_lea.hbm %s9356_s3, 8192 }
  0x2c   : > { %p7784_p4 = scmp.ne.s32.totalorder %s9356_s3, %s7783_s16  ;;  %p7790_p12 = scmp.lt.u32.totalorder %s7783_s16, %s9356_s3 }
  0x2e   : > { %p7786_p10 = pnand %p7784_p4, %p8143_p8 }
  0x30   : > { %p7787_p11 = pneg %p7786_p10 }
  0x32   : > { %p7792_p13 = pnand %p7790_p12, %p7787_p11 }
  0x34   : > { %7795 = shalt.err (!%p7792_p13)
}
  0x35   : > { %s7796_s29 = scalar_lea.vmem %s8131_s10, 8192  ;;  %p7804_p7 = scmp.lt.s32.totalorder %s8131_s10, %s8131_s10 }
  0x36   : > { %p7797_p0 = scmp.ne.s32.totalorder %s8131_s10, %s7796_s29  ;;  %p7805_p9 = scmp.lt.s32.totalorder %s7796_s29, %s7796_s29 }
  0x38   : > { %p7799_p2 = pnand %p7797_p0, %p8143_p8  ;;  %p7806_p4 = por %p7805_p9, %p7804_p7 }
  0x3a   : > { %p7800_p5 = pneg %p7799_p2 }
  0x3c   : > { %p7807_p10 = pnand %p7806_p4, %p7800_p5 }
  0x3e   : > { %7810 = shalt.err (!%p7807_p10)
}
  0x3f   : > { %s8038_s22 = smov 64   ;;  %s8039_s23 = smov 4  }
  0x40   : > { %7155 = dma.hbm_to_vmem [thread:$0]  (!%p8127_p6), %s9356_s3, 8192, %s8131_s10, [#allocation9], %s8038_s22, %s8038_s22, %s8039_s23  }
  0x41   : > { %s7811_s15 = scalar_lea.hbm %s9358_s5, 1024 }
  0x42   : > { %p7812_p11 = scmp.ne.s32.totalorder %s9358_s5, %s7811_s15  ;;  %p7818_p0 = scmp.lt.u32.totalorder %s7811_s15, %s9358_s5 }
  0x44   : > { %p7814_p12 = pnand %p7812_p11, %p8143_p8 }
  0x46   : > { %p7815_p13 = pneg %p7814_p12 }
  0x48   : > { %p7820_p2 = pnand %p7818_p0, %p7815_p13 }
  0x4a   : > { %7823 = shalt.err (!%p7820_p2)
}
  0x4b   : > { %s7824_s21 = scalar_lea.vmem %s270_s13, 1024  ;;  %p7832_p4 = scmp.lt.s32.totalorder %s270_s13, %s270_s13 }
  0x4c   : > { %p7825_p5 = scmp.ne.s32.totalorder %s270_s13, %s7824_s21  ;;  %p7833_p10 = scmp.lt.s32.totalorder %s7824_s21, %s7824_s21 }
  0x4e   : > { %p7827_p7 = pnand %p7825_p5, %p8143_p8  ;;  %p7834_p1 = por %p7833_p10, %p7832_p4 }
  0x50   : > { %p7828_p9 = pneg %p7827_p7 }
  0x52   : > { %p7835_p3 = pnand %p7834_p1, %p7828_p9 }
  0x54   : > { %7838 = shalt.err (!%p7835_p3)
}
  0x55   : > { %7161 = dma.hbm_to_vmem [thread:$0]  (!%p8127_p6), %s9358_s5, 1024, %s270_s13, [#allocation12], %s8038_s22, %s8038_s22, %s8039_s23  }
  0x56   : > { %s8040_s28 = smov [#allocation7]   ;;  %s8041_s12 = smov [#allocation10]  }
  0x57   : > { %s235_s9 = sshll.u32 %s8040_s28, 4  ;;  %s259_s14 = sshll.u32 %s8041_s12, 4  ;;  %s236_s9 = int_to_ptr.vmem [resolvable:$true] %s235_s9  ;;  %s260_s14 = int_to_ptr.vmem [resolvable:$true] %s259_s14 }
  0x58   : > { %s7839_s17 = scalar_lea.hbm %s9355_s2, 128 }
  0x59   : > { %p7840_p1 = scmp.ne.s32.totalorder %s9355_s2, %s7839_s17  ;;  %p7846_p12 = scmp.lt.u32.totalorder %s7839_s17, %s9355_s2 }
  0x5b   : > { %p7842_p3 = pnand %p7840_p1, %p8143_p8 }
  0x5d   : > { %p7843_p11 = pneg %p7842_p3 }
  0x5f   : > { %p7848_p13 = pnand %p7846_p12, %p7843_p11 }
  0x61   : > { %7851 = shalt.err (!%p7848_p13)
}
  0x62   : > { %s7852_s13 = scalar_lea.vmem %s236_s9, 128  ;;  %p7860_p7 = scmp.lt.s32.totalorder %s236_s9, %s236_s9 }
  0x63   : > { %p7853_p0 = scmp.ne.s32.totalorder %s236_s9, %s7852_s13  ;;  %p7861_p9 = scmp.lt.s32.totalorder %s7852_s13, %s7852_s13 }
  0x65   : > { %p7855_p2 = pnand %p7853_p0, %p8143_p8  ;;  %p7862_p4 = por %p7861_p9, %p7860_p7 }
  0x67   : > { %p7856_p5 = pneg %p7855_p2 }
  0x69   : > { %p7863_p10 = pnand %p7862_p4, %p7856_p5 }
  0x6b   : > { %7866 = shalt.err (!%p7863_p10)
}
  0x6c   : > { %7152 = dma.hbm_to_vmem [thread:$0]  (!%p8127_p6), %s9355_s2, 128, %s236_s9, [#allocation6]  }
  0x6d   : > { %s7867_s12 = scalar_lea.hbm %s9357_s4, 16 }
  0x6e   : > { %p7868_p1 = scmp.ne.s32.totalorder %s9357_s4, %s7867_s12  ;;  %p7874_p12 = scmp.lt.u32.totalorder %s7867_s12, %s9357_s4 }
  0x70   : > { %p7870_p3 = pnand %p7868_p1, %p8143_p8 }
  0x72   : > { %p7871_p11 = pneg %p7870_p3 }
  0x74   : > { %p7876_p13 = pnand %p7874_p12, %p7871_p11 }
  0x76   : > { %7879 = shalt.err (!%p7876_p13)
}
  0x77   : > { %s7880_s20 = scalar_lea.vmem %s260_s14, 16  ;;  %s7887_s9 = scalar_lea.vmem %s260_s14, 32 }
  0x78   : > { %p7881_p0 = scmp.ne.s32.totalorder %s260_s14, %s7880_s20  ;;  %p7888_p7 = scmp.lt.s32.totalorder %s260_s14, %s260_s14 }
  0x79   : > { %p7889_p9 = scmp.lt.s32.totalorder %s7887_s9, %s7880_s20 }
  0x7a   : > { %p7883_p2 = pnand %p7881_p0, %p8143_p8 }
  0x7b   : > { %p7890_p4 = por %p7889_p9, %p7888_p7 }
  0x7c   : > { %p7884_p5 = pneg %p7883_p2 }
  0x7e   : > { %p7891_p10 = pnand %p7890_p4, %p7884_p5 }
  0x80   : > { %7894 = shalt.err (!%p7891_p10)
}
  0x81   : > { %7158 = dma.hbm_to_vmem [thread:$0]  (!%p8127_p6), %s9357_s4, 16, %s260_s14, [#allocation9]  }
  0x82   : > { %s8042_s13 = smov [#allocation13]   ;;  %s7895_s28 = scalar_lea.hbm %s9359_s6, 16 }
  0x83   : > { %s283_s22 = sshll.u32 %s8042_s13, 4  ;;  %p7896_p1 = scmp.ne.s32.totalorder %s9359_s6, %s7895_s28  ;;  %s284_s22 = int_to_ptr.vmem [resolvable:$true] %s283_s22 }
  0x84   : > { %p7902_p12 = scmp.lt.u32.totalorder %s7895_s28, %s9359_s6 }
  0x85   : > { %p7898_p3 = pnand %p7896_p1, %p8143_p8 }
  0x87   : > { %p7899_p11 = pneg %p7898_p3 }
  0x89   : > { %p7904_p13 = pnand %p7902_p12, %p7899_p11 }
  0x8b   : > { %7907 = shalt.err (!%p7904_p13)
}
  0x8c   : > { %s7908_s14 = scalar_lea.vmem %s284_s22, 16  ;;  %s7915_s18 = scalar_lea.vmem %s284_s22, 32 }
  0x8d   : > { %p7909_p0 = scmp.ne.s32.totalorder %s284_s22, %s7908_s14  ;;  %p7916_p7 = scmp.lt.s32.totalorder %s284_s22, %s284_s22 }
  0x8e   : > { %p7917_p9 = scmp.lt.s32.totalorder %s7915_s18, %s7908_s14 }
  0x8f   : > { %p7911_p2 = pnand %p7909_p0, %p8143_p8 }
  0x90   : > { %p7918_p4 = por %p7917_p9, %p7916_p7 }
  0x91   : > { %p7912_p5 = pneg %p7911_p2 }
  0x93   : > { %p7919_p10 = pnand %p7918_p4, %p7912_p5 }
  0x95   : > { %7922 = shalt.err (!%p7919_p10)
}
  0x96   : > { %7164 = dma.hbm_to_vmem [thread:$0]  (!%p8127_p6), %s9359_s6, 16, %s284_s22, [#allocation12]  }
  0x97   : > { %s5951_s19 = sadd.s32 4294967294, %s8031_s27   ;;  %s8262_s11 = sadd.s32 1, %s8031_s27  }
  0x98   : > { %s30_s21 = ssub.s32 %s8031_s27, %s8262_s11  ;;  %s33_s10 = sadd.s32 1, %s8027_s26 }
  0x99   : > { %p31_p8 = scmp.eq.s32.totalorder %s30_s21, 0  ;;  %p40_p1 = scmp.ne.s32.totalorder %s8027_s26, %s8023_s25 }
  0x9a   : > { %p41_p3 = scmp.eq.s32.totalorder %s8031_s27, 0  ;;  %p46_p11 = scmp.ne.s32.totalorder %s8023_s25, %s8019_s24 }
  0x9b   : > { %s8273_s13 = scalar_select %p31_p8, %s8027_s26, %s33_s10  }
  0x9c   : > { %p42_p12 = por %p41_p3, %p40_p1  ;;  %p9371_p13 = scmp.eq.s32.totalorder %s8111_s30, 0 }
  0x9d   : > { %p196_p6 = scmp.eq.s32.totalorder %s8111_s30, 1  ;;  %p202_p2 = scmp.eq.s32.totalorder %s5951_s19, 1 }
  0x9e   : > { %p8277_p0 = por %p9371_p13, %p46_p11  ;;  %p7179_p5 = scmp.lt.s32.totalorder %s8031_s27, 2 }
  0x9f   : > { %s294_s22 = sand.u32 1, %s8027_s26   ;;  %p8284_p7 = por %p196_p6, %p40_p1 }
  0xa0   : > { %p8288_p9 = por %p202_p2, %p46_p11  ;;  %s7115_s12 = smul.u32 320, %s294_s22 }
  0xa1   : > { %s9373_s29 = scalar_select %p8284_p7, 1, 0 }
  0xa2   : > { %s9374_s28 = scalar_select %p8288_p9, 1, 0 }
  0xa3   : > { %s7116_s15 = smul.u32 5120, %s8031_s27  ;;  %p8293_p4 = pnand %p7179_p5, %p42_p12 }
  0xa4   : > { %s298_s20 = scalar_lea.vmem [#allocation2], %s7115_s12  ;;  %s8304_s19 = scalar_lea.sflag [#allocation3], %s294_s22 }
  0xa5   : > { %s8300_s18 = scalar_lea.hbm %s9353_s0, %s7116_s15  ;;  %s306_s9 = sshll.u32 %s298_s20, 4  ;;  %s8302_s9 = int_to_ptr.vmem [resolvable:$true] %s306_s9 }
  0xa6   : > { %s7923_s21 = scalar_lea.hbm %s8300_s18, 5120  ;;  %p7925_p8 = pneg %p8293_p4 }
  0xa7   : > { %p7924_p10 = scmp.ne.s32.totalorder %s8300_s18, %s7923_s21  ;;  %s7928_s17 = scalar_lea.hbm %s9353_s0, 10240 }
  0xa8   : > { %p7929_p11 = scmp.lt.u32.totalorder %s8300_s18, %s9353_s0  ;;  %p7930_p12 = scmp.lt.u32.totalorder %s7928_s17, %s7923_s21 }
  0xa9   : > { %p7926_p1 = pnand %p7925_p8, %p7924_p10  ;;  %p7932_p6 = scmp.lt.u32.totalorder %s7923_s21, %s8300_s18 }
  0xaa   : > { %p7931_p13 = por %p7930_p12, %p7929_p11 }
  0xab   : > { %p7927_p3 = pneg %p7926_p1 }
  0xac   : > { %p7933_p2 = por %p7932_p6, %p7931_p13 }
  0xae   : > { %p7934_p5 = pnand %p7933_p2, %p7927_p3 }
  0xb0   : > { %7937 = shalt.err (!%p7934_p5)
}
  0xb1   : > { %s7938_s22 = scalar_lea.vmem %s8302_s9, 5120  ;;  %s8043_s12 = smov [#allocation2]  }
  0xb2   : > { %p7939_p10 = scmp.ne.s32.totalorder %s8302_s9, %s7938_s22  ;;  %s7943_s20 = sshll.u32 %s8043_s12, 4  ;;  %s7944_s20 = int_to_ptr.vmem [resolvable:$false] %s7943_s20 }
  0xb3   : > { %s7945_s1 = scalar_lea.vmem %s7944_s20, 10240  ;;  %p7946_p7 = scmp.lt.s32.totalorder %s8302_s9, %s7944_s20 }
  0xb4   : > { %p7941_p1 = pnand %p7939_p10, %p7925_p8  ;;  %p7947_p11 = scmp.lt.s32.totalorder %s7945_s1, %s7938_s22 }
  0xb6   : > { %p7942_p9 = pneg %p7941_p1  ;;  %p7948_p12 = por %p7947_p11, %p7946_p7 }
  0xb8   : > { %p7949_p13 = pnand %p7948_p12, %p7942_p9 }
  0xba   : > { %7952 = shalt.err (!%p7949_p13)
}
  0xbb   : > { %s8044_s21 = smov 320   ;;  %s8045_s10 = smov 20  }
  0xbc   : > { %7168 = dma.hbm_to_vmem [thread:$0]  (!%p8293_p4), %s8300_s18, 5120, %s8302_s9, %s8304_s19, %s8044_s21, %s8044_s21, %s8045_s10  }
  0xbd   : > { %p9376_p8 = scmp.ne.s32.totalorder %s9367_s8, 0 }
  0xbf   : > { %318 = sbr.rel (%p9376_p8) target bundleno = 1562 (0x61a), region = 48 }
  0xc6   : > { %s8335_s15 = sand.u32 1, %s8023_s25  }
  0xc7   : > { %s7117_s17 = smul.u32 320, %s8335_s15  ;;  %s321_s14 = scalar_lea.sflag [#allocation3], %s8335_s15 }
  0xc9   : > { %s8339_s22 = scalar_lea.vmem [#allocation2], %s7117_s17 }
  0xca   : > { %7998 = dma.done.wait (%p8277_p0), %s321_s14, 5120  }
  0xcb   : > { %8000 = vsyncadd (%p8277_p0), %s321_s14, 4294962176  ;;  %p9377_p7 = scmp.eq.s32.totalorder %s8111_s30, 0 }
  0xcd   : > { %8002 = dma.done.wait (%p9377_p7), [#allocation6], 41088   ;;  %p9378_p9 = pmov %p9377_p7 }
  0xce   : > { %p9379_p4 = pmov %p9377_p7 }
  0xcf   : > { %8004 = vsyncadd (%p9378_p9), [#allocation6], 4294926208 }
  0xd0   : > { %8006 = dma.done.wait (%p9379_p4), [#allocation9], 8208   ;;  %p9380_p3 = pmov %p9379_p4 }
  0xd2   : > { %8008 = vsyncadd (%p9380_p3), [#allocation9], 4294959088  ;;  %p9381_p6 = pmov %p9380_p3 }
  0xd3   : > { %p9382_p2 = pmov %p9380_p3 }
  0xd4   : > { %8010 = dma.done.wait (%p9381_p6), [#allocation12], 1040  }
  0xd5   : > { %8012 = vsyncadd (%p9382_p2), [#allocation12], 4294966256  ;;  %v430_v0 = vld [vmem:[#allocation5] sm:$0xff]  ;;  %v431_v2 = vld [vmem:[#allocation5 + $0x8] sm:$0xff]  ;;  %s5970_s8 = sshll.u32 %s8335_s15, 7  ;;  %s6410_s16 = sshll.u32 %s8111_s30, 11 }
  0xd6   : > { %v434_v1 = vld [vmem:[#allocation5 + $0x20] sm:$0xff]  ;;  %v435_v4 = vld [vmem:[#allocation5 + $0x28] sm:$0xff]  ;;  %s9270_s23 = scalar_lea.vmem [#allocation14], %s5970_s8  ;;  %s9304_s12 = scalar_lea.hbm %s9360_s7, %s6410_s16 }
  0xd7   : > { %v6012_v3 = vcombine.high %v430_v0, %v434_v1  ;;  %v6011_v5 = vcombine.low %v430_v0, %v434_v1  ;;  %v438_v6 = vld [vmem:[#allocation5 + $0x40] sm:$0xff]  ;;  %v6014_v8 = vcombine.high %v431_v2, %v435_v4  ;;  %v6013_v9 = vcombine.low %v431_v2, %v435_v4  ;;  %v439_v11 = vld [vmem:[#allocation5 + $0x48] sm:$0xff]  ;;  %s5821_s18 = sshll.u32 %s9270_s23, 4  ;;  %s5808_s30 = scalar_lea.sflag [#allocation4], %s8335_s15  ;;  %s9306_s18 = int_to_ptr.vmem [resolvable:$true] %s5821_s18 }
  0xd8   : > { %v442_v7 = vld [vmem:[#allocation5 + $0x60] sm:$0xff]  ;;  %v443_v12 = vld [vmem:[#allocation5 + $0x68] sm:$0xff]  ;;  %s7953_s20 = scalar_lea.vmem %s9306_s18, 2048  ;;  %p9391_p5 = scmp.ne.s32.totalorder %s9373_s29, 0 }
  0xd9   : > { %v6020_v10 = vcombine.high %v438_v6, %v442_v7  ;;  %v446_v13 = vld [vmem:[#allocation5 + $0x80] sm:$0xff]  ;;  %2600 = vmatprep.subr.bf16.mxu0 %v6012_v3  ;;  %v6022_v14 = vcombine.high %v439_v11, %v443_v12  ;;  %v447_v16 = vld [vmem:[#allocation5 + $0x88] sm:$0xff]  ;;  %2939 = vmatprep.subr.bf16.mxu1 %v6014_v8  ;;  %v6019_v18 = vcombine.low %v438_v6, %v442_v7  ;;  %p7954_p0 = scmp.ne.s32.totalorder %s9306_s18, %s7953_s20  ;;  %s8047_s1 = smov [#allocation14]  }
  0xda   : > { %v450_v15 = vld [vmem:[#allocation5 + $0xa0] sm:$0xff]  ;;  %v451_v17 = vld [vmem:[#allocation5 + $0xa8] sm:$0xff]  ;;  %2601 = vmatpush1.bf16.msra.mxu0 %v6011_v5  ;;  %2940 = vmatpush1.bf16.msra.mxu1 %v6013_v9  ;;  %v6021_v19 = vcombine.low %v439_v11, %v443_v12  ;;  %s7957_s21 = sshll.u32 %s8047_s1, 4  ;;  %s7958_s21 = int_to_ptr.vmem [resolvable:$false] %s7957_s21 }
  0xdb   : > { %2602 = vmatprep.subr.bf16.mxu0 %v6020_v10  ;;  %v6028_v20 = vcombine.high %v446_v13, %v450_v15  ;;  %2941 = vmatprep.subr.bf16.mxu1 %v6022_v14  ;;  %v6030_v21 = vcombine.high %v447_v16, %v451_v17  ;;  %v454_v22 = vld [vmem:[#allocation5 + $0xc0] sm:$0xff]  ;;  %v455_v24 = vld [vmem:[#allocation5 + $0xc8] sm:$0xff]  ;;  %v6027_v26 = vcombine.low %v446_v13, %v450_v15  ;;  %p7955_p10 = pnand %p7954_p0, %p9391_p5  ;;  %s7959_s10 = scalar_lea.vmem %s7958_s21, 4096 }
  0xdc   : > { %v458_v23 = vld [vmem:[#allocation5 + $0xe0] sm:$0xff]  ;;  %v459_v25 = vld [vmem:[#allocation5 + $0xe8] sm:$0xff]  ;;  %v6029_v27 = vcombine.low %v447_v16, %v451_v17  ;;  %p7960_p11 = scmp.lt.s32.totalorder %s9306_s18, %s7958_s21  ;;  %p7961_p12 = scmp.lt.s32.totalorder %s7959_s10, %s7953_s20 }
  0xdd   : > { %v6036_v28 = vcombine.high %v454_v22, %v458_v23  ;;  %v6038_v29 = vcombine.high %v455_v24, %v459_v25  ;;  %v462_v30 = vld [vmem:[#allocation5 + $0x100] sm:$0xff]  ;;  %v463_v32 = vld [vmem:[#allocation5 + $0x108] sm:$0xff]  ;;  %v6035_v34 = vcombine.low %v454_v22, %v458_v23  ;;  %v6037_v35 = vcombine.low %v455_v24, %v459_v25  ;;  %p7956_p1 = pneg %p7955_p10 }
  0xde   : > { %2603 = vmatpush1.bf16.msra.mxu0 %v6019_v18  ;;  %2942 = vmatpush1.bf16.msra.mxu1 %v6021_v19  ;;  %v466_v31 = vld [vmem:[#allocation5 + $0x120] sm:$0xff]  ;;  %v467_v33 = vld [vmem:[#allocation5 + $0x128] sm:$0xff]  ;;  %p7962_p13 = por %p7961_p12, %p7960_p11 }
  0xdf   : > { %2604 = vmatprep.subr.bf16.mxu0 %v6028_v20  ;;  %2943 = vmatprep.subr.bf16.mxu1 %v6030_v21  ;;  %v6044_v36 = vcombine.high %v462_v30, %v466_v31  ;;  %v6046_v37 = vcombine.high %v463_v32, %v467_v33  ;;  %v470_v38 = vld [vmem:[#allocation5 + $0x140] sm:$0xff]  ;;  %v471_v40 = vld [vmem:[#allocation5 + $0x148] sm:$0xff]  ;;  %v6043_v42 = vcombine.low %v462_v30, %v466_v31 }
  0xe0   : > { %v474_v39 = vld [vmem:[#allocation5 + $0x160] sm:$0xff]  ;;  %v475_v41 = vld [vmem:[#allocation5 + $0x168] sm:$0xff]  ;;  %v6045_v43 = vcombine.low %v463_v32, %v467_v33  ;;  %p7963_p8 = pnand %p7962_p13, %p7956_p1 }
  0xe1   : > { %v6052_v44 = vcombine.high %v470_v38, %v474_v39  ;;  %v6054_v45 = vcombine.high %v471_v40, %v475_v41  ;;  %v478_v46 = vld [vmem:[#allocation5 + $0x180] sm:$0xff]  ;;  %v479_v48 = vld [vmem:[#allocation5 + $0x188] sm:$0xff]  ;;  %v6051_v50 = vcombine.low %v470_v38, %v474_v39  ;;  %v6053_v51 = vcombine.low %v471_v40, %v475_v41 }
  0xe2   : > { %2605 = vmatpush1.bf16.msra.mxu0 %v6027_v26  ;;  %2944 = vmatpush1.bf16.msra.mxu1 %v6029_v27  ;;  %v482_v47 = vld [vmem:[#allocation5 + $0x1a0] sm:$0xff]  ;;  %v483_v49 = vld [vmem:[#allocation5 + $0x1a8] sm:$0xff] }
  0xe3   : > { %2606 = vmatprep.subr.bf16.mxu0 %v6036_v28  ;;  %2945 = vmatprep.subr.bf16.mxu1 %v6038_v29  ;;  %v6060_v52 = vcombine.high %v478_v46, %v482_v47  ;;  %v6062_v53 = vcombine.high %v479_v48, %v483_v49  ;;  %v486_v54 = vld [vmem:[#allocation5 + $0x1c0] sm:$0xff]  ;;  %v487_v57 = vld [vmem:[#allocation5 + $0x1c8] sm:$0xff]  ;;  %v6059_v59 = vcombine.low %v478_v46, %v482_v47 }
  0xe4   : > { %v490_v55 = vld [vmem:[#allocation5 + $0x1e0] sm:$0xff]  ;;  %v491_v58 = vld [vmem:[#allocation5 + $0x1e8] sm:$0xff]  ;;  %v6061_v60 = vcombine.low %v479_v48, %v483_v49 }
  0xe5   : > { %v7234_v56 = vld [vmem:[%s8339_s22 + $0x4] ss:$20 sps:$4 sm:$0xff]   ;;  %v6068_v61 = vcombine.high %v486_v54, %v490_v55  ;;  %v6070_v62 = vcombine.high %v487_v57, %v491_v58  ;;  %v495_v1 = vld [vmem:[#allocation5 + $0x208] sm:$0xff]  ;;  %v6067_v3 = vcombine.low %v486_v54, %v490_v55  ;;  %v6069_v4 = vcombine.low %v487_v57, %v491_v58 }
  0xe6   : > { %2607 = vmatpush1.bf16.msra.mxu0 %v6035_v34  ;;  %2946 = vmatpush1.bf16.msra.mxu1 %v6037_v35  ;;  %v494_v63 = vld [vmem:[#allocation5 + $0x200] sm:$0xff]  ;;  %v499_v2 = vld [vmem:[#allocation5 + $0x228] sm:$0xff] }
  0xe7   : > { %2608 = vmatprep.subr.bf16.mxu0 %v6044_v36  ;;  %2947 = vmatprep.subr.bf16.mxu1 %v6046_v37  ;;  %v498_v0 = vld [vmem:[#allocation5 + $0x220] sm:$0xff]  ;;  %v6078_v6 = vcombine.high %v495_v1, %v499_v2  ;;  %v503_v9 = vld [vmem:[#allocation5 + $0x248] sm:$0xff]  ;;  %v6077_v12 = vcombine.low %v495_v1, %v499_v2 }
  0xe8   : > { %2632 = vmatprep.mubr.bf16.mxu0 %v7234_v56  ;;  %2971 = vmatprep.mubr.bf16.mxu1 %v7234_v56  ;;  %v6076_v5 = vcombine.high %v494_v63, %v498_v0  ;;  %v502_v7 = vld [vmem:[#allocation5 + $0x240] sm:$0xff]  ;;  %v507_v10 = vld [vmem:[#allocation5 + $0x268] sm:$0xff]  ;;  %v6075_v11 = vcombine.low %v494_v63, %v498_v0 }
  0xe9   : > { %v506_v8 = vld [vmem:[#allocation5 + $0x260] sm:$0xff]  ;;  %v6086_v14 = vcombine.high %v503_v9, %v507_v10  ;;  %v511_v17 = vld [vmem:[#allocation5 + $0x288] sm:$0xff]  ;;  %v6085_v20 = vcombine.low %v503_v9, %v507_v10 }
  0xea   : > { %2609 = vmatpush1.bf16.msra.mxu0 %v6043_v42  ;;  %2948 = vmatpush1.bf16.msra.mxu1 %v6045_v43  ;;  %v6084_v13 = vcombine.high %v502_v7, %v506_v8  ;;  %v510_v15 = vld [vmem:[#allocation5 + $0x280] sm:$0xff]  ;;  %v515_v18 = vld [vmem:[#allocation5 + $0x2a8] sm:$0xff]  ;;  %v6083_v19 = vcombine.low %v502_v7, %v506_v8 }
  0xeb   : > { %2610 = vmatprep.subr.bf16.mxu0 %v6052_v44  ;;  %2949 = vmatprep.subr.bf16.mxu1 %v6054_v45  ;;  %v514_v16 = vld [vmem:[#allocation5 + $0x2a0] sm:$0xff]  ;;  %v6094_v22 = vcombine.high %v511_v17, %v515_v18  ;;  %v519_v25 = vld [vmem:[#allocation5 + $0x2c8] sm:$0xff]  ;;  %v6093_v28 = vcombine.low %v511_v17, %v515_v18 }
  0xec   : > { %v6092_v21 = vcombine.high %v510_v15, %v514_v16  ;;  %v518_v23 = vld [vmem:[#allocation5 + $0x2c0] sm:$0xff]  ;;  %v523_v26 = vld [vmem:[#allocation5 + $0x2e8] sm:$0xff]  ;;  %v6091_v27 = vcombine.low %v510_v15, %v514_v16 }
  0xed   : > { %v522_v24 = vld [vmem:[#allocation5 + $0x2e0] sm:$0xff]  ;;  %v6102_v30 = vcombine.high %v519_v25, %v523_v26  ;;  %v527_v33 = vld [vmem:[#allocation5 + $0x308] sm:$0xff]  ;;  %v6101_v36 = vcombine.low %v519_v25, %v523_v26 }
  0xee   : > { %2611 = vmatpush1.bf16.msra.mxu0 %v6051_v50  ;;  %2950 = vmatpush1.bf16.msra.mxu1 %v6053_v51  ;;  %v6100_v29 = vcombine.high %v518_v23, %v522_v24  ;;  %v526_v31 = vld [vmem:[#allocation5 + $0x300] sm:$0xff]  ;;  %v531_v34 = vld [vmem:[#allocation5 + $0x328] sm:$0xff]  ;;  %v6099_v35 = vcombine.low %v518_v23, %v522_v24 }
  0xef   : > { %2612 = vmatprep.subr.bf16.mxu0 %v6060_v52  ;;  %2951 = vmatprep.subr.bf16.mxu1 %v6062_v53  ;;  %v530_v32 = vld [vmem:[#allocation5 + $0x320] sm:$0xff]  ;;  %v6110_v38 = vcombine.high %v527_v33, %v531_v34  ;;  %v535_v41 = vld [vmem:[#allocation5 + $0x348] sm:$0xff]  ;;  %v6109_v44 = vcombine.low %v527_v33, %v531_v34 }
  0xf0   : > { %v6108_v37 = vcombine.high %v526_v31, %v530_v32  ;;  %v534_v39 = vld [vmem:[#allocation5 + $0x340] sm:$0xff]  ;;  %v539_v42 = vld [vmem:[#allocation5 + $0x368] sm:$0xff]  ;;  %v6107_v43 = vcombine.low %v526_v31, %v530_v32 }
  0xf1   : > { %v538_v40 = vld [vmem:[#allocation5 + $0x360] sm:$0xff]  ;;  %v6118_v46 = vcombine.high %v535_v41, %v539_v42  ;;  %v543_v49 = vld [vmem:[#allocation5 + $0x388] sm:$0xff]  ;;  %v6117_v52 = vcombine.low %v535_v41, %v539_v42 }
  0xf2   : > { %2613 = vmatpush1.bf16.msra.mxu0 %v6059_v59  ;;  %2952 = vmatpush1.bf16.msra.mxu1 %v6061_v60  ;;  %v6116_v45 = vcombine.high %v534_v39, %v538_v40  ;;  %v542_v47 = vld [vmem:[#allocation5 + $0x380] sm:$0xff]  ;;  %v547_v50 = vld [vmem:[#allocation5 + $0x3a8] sm:$0xff]  ;;  %v6115_v51 = vcombine.low %v534_v39, %v538_v40 }
  0xf3   : > { %2614 = vmatprep.subr.bf16.mxu0 %v6068_v61  ;;  %2953 = vmatprep.subr.bf16.mxu1 %v6070_v62  ;;  %v546_v48 = vld [vmem:[#allocation5 + $0x3a0] sm:$0xff]  ;;  %v6126_v54 = vcombine.high %v543_v49, %v547_v50  ;;  %v551_v57 = vld [vmem:[#allocation5 + $0x3c8] sm:$0xff]  ;;  %v6125_v60 = vcombine.low %v543_v49, %v547_v50 }
  0xf4   : > { %v6124_v53 = vcombine.high %v542_v47, %v546_v48  ;;  %v550_v55 = vld [vmem:[#allocation5 + $0x3c0] sm:$0xff]  ;;  %v555_v58 = vld [vmem:[#allocation5 + $0x3e8] sm:$0xff]  ;;  %v6123_v59 = vcombine.low %v542_v47, %v546_v48 }
  0xf5   : > { %v554_v56 = vld [vmem:[#allocation5 + $0x3e0] sm:$0xff]  ;;  %v6134_v62 = vcombine.high %v551_v57, %v555_v58  ;;  %v559_v1 = vld [vmem:[#allocation5 + $0x408] sm:$0xff] }
  0xf6   : > { %2615 = vmatpush1.bf16.msra.mxu0 %v6067_v3  ;;  %2954 = vmatpush1.bf16.msra.mxu1 %v6069_v4  ;;  %v6132_v61 = vcombine.high %v550_v55, %v554_v56  ;;  %v558_v63 = vld [vmem:[#allocation5 + $0x400] sm:$0xff]  ;;  %v563_v2 = vld [vmem:[#allocation5 + $0x428] sm:$0xff]  ;;  %v6131_v3 = vcombine.low %v550_v55, %v554_v56  ;;  %v6133_v4 = vcombine.low %v551_v57, %v555_v58 }
  0xf7   : > { %2616 = vmatprep.subr.bf16.mxu0 %v6076_v5  ;;  %2955 = vmatprep.subr.bf16.mxu1 %v6078_v6  ;;  %v562_v0 = vld [vmem:[#allocation5 + $0x420] sm:$0xff]  ;;  %v6142_v6 = vcombine.high %v559_v1, %v563_v2  ;;  %v567_v10 = vld [vmem:[#allocation5 + $0x448] sm:$0xff] }
  0xf8   : > { %v6140_v5 = vcombine.high %v558_v63, %v562_v0  ;;  %v566_v7 = vld [vmem:[#allocation5 + $0x440] sm:$0xff]  ;;  %v7240_v33 = vld [vmem:[%s8339_s22 + $0x54] ss:$20 sps:$4 sm:$0xff]  }
  0xf9   : > { %v570_v8 = vld [vmem:[#allocation5 + $0x460] sm:$0xff]  ;;  %v603_v47 = vld [vmem:[#allocation5 + $0x568] sm:$0xff] }
  0xfa   : > { %2617 = vmatpush1.bf16.msra.mxu0 %v6075_v11  ;;  %2956 = vmatpush1.bf16.msra.mxu1 %v6077_v12  ;;  %v7236_v9 = vld [vmem:[%s8339_s22] ss:$20 sps:$4 sm:$0xff]   ;;  %v571_v11 = vld [vmem:[#allocation5 + $0x468] sm:$0xff]  ;;  %v6139_v12 = vcombine.low %v558_v63, %v562_v0 }
  0xfb   : > { %2618 = vmatprep.subr.bf16.mxu0 %v6084_v13  ;;  %2957 = vmatprep.subr.bf16.mxu1 %v6086_v14  ;;  %v6141_v13 = vcombine.low %v559_v1, %v563_v2  ;;  %v6148_v14 = vcombine.high %v566_v7, %v570_v8  ;;  %v7237_v15 = vld [vmem:[%s8339_s22 + $0x2c] ss:$20 sps:$4 sm:$0xff]   ;;  %v6150_v16 = vcombine.high %v567_v10, %v571_v11 }
  0xfc   : > { %v574_v17 = vld [vmem:[#allocation5 + $0x480] sm:$0xff]  ;;  %v607_v55 = vld [vmem:[#allocation5 + $0x588] sm:$0xff] }
  0xfd   : > { %v578_v18 = vld [vmem:[#allocation5 + $0x4a0] sm:$0xff]  ;;  %v611_v56 = vld [vmem:[#allocation5 + $0x5a8] sm:$0xff] }
  0xfe   : > { %2619 = vmatpush1.bf16.msra.mxu0 %v6083_v19  ;;  %2958 = vmatpush1.bf16.msra.mxu1 %v6085_v20  ;;  %v575_v19 = vld [vmem:[#allocation5 + $0x488] sm:$0xff]  ;;  %v6156_v23 = vcombine.high %v574_v17, %v578_v18  ;;  %v582_v25 = vld [vmem:[#allocation5 + $0x4c0] sm:$0xff]  ;;  %v6190_v0 = vcombine.high %v607_v55, %v611_v56 }
  0xff   : > { %2620 = vmatprep.subr.bf16.mxu0 %v6092_v21  ;;  %2959 = vmatprep.subr.bf16.mxu1 %v6094_v22  ;;  %v579_v20 = vld [vmem:[#allocation5 + $0x4a8] sm:$0xff]  ;;  %v6147_v21 = vcombine.low %v566_v7, %v570_v8  ;;  %v6149_v22 = vcombine.low %v567_v10, %v571_v11  ;;  %v586_v26 = vld [vmem:[#allocation5 + $0x4e0] sm:$0xff] }
 0x100   : > { %v6158_v24 = vcombine.high %v575_v19, %v579_v20  ;;  %v6157_v31 = vcombine.low %v575_v19, %v579_v20  ;;  %v6164_v32 = vcombine.high %v582_v25, %v586_v26  ;;  %v6163_v39 = vcombine.low %v582_v25, %v586_v26  ;;  %v598_v42 = vld [vmem:[#allocation5 + $0x540] sm:$0xff]  ;;  %v615_v63 = vld [vmem:[#allocation5 + $0x5c8] sm:$0xff] }
 0x101   : > { %v619_v1 = vld [vmem:[#allocation5 + $0x5e8] sm:$0xff]  ;;  %v626_v7 = vld [vmem:[#allocation5 + $0x620] sm:$0xff] }
 0x102   : > { %2621 = vmatpush1.bf16.msra.mxu0 %v6091_v27  ;;  %2960 = vmatpush1.bf16.msra.mxu1 %v6093_v28  ;;  %v7239_v27 = vld [vmem:[%s8339_s22 + $0x28] ss:$20 sps:$4 sm:$0xff]   ;;  %v6198_v8 = vcombine.high %v615_v63, %v619_v1  ;;  %v642_v25 = vld [vmem:[#allocation5 + $0x6a0] sm:$0xff] }
 0x103   : > { %2622 = vmatprep.subr.bf16.mxu0 %v6100_v29  ;;  %2961 = vmatprep.subr.bf16.mxu1 %v6102_v30  ;;  %v583_v28 = vld [vmem:[#allocation5 + $0x4c8] sm:$0xff]  ;;  %v6155_v30 = vcombine.low %v574_v17, %v578_v18 }
 0x104   : > { %v587_v29 = vld [vmem:[#allocation5 + $0x4e8] sm:$0xff] }
 0x105   : > { %v6166_v34 = vcombine.high %v583_v28, %v587_v29  ;;  %v6165_v40 = vcombine.low %v583_v28, %v587_v29  ;;  %v627_v10 = vld [vmem:[#allocation5 + $0x628] sm:$0xff] }
 0x106   : > { %2623 = vmatpush1.bf16.msra.mxu0 %v6099_v35  ;;  %2962 = vmatpush1.bf16.msra.mxu1 %v6101_v36  ;;  %v590_v35 = vld [vmem:[#allocation5 + $0x500] sm:$0xff]  ;;  %v631_v17 = vld [vmem:[#allocation5 + $0x648] sm:$0xff] }
 0x107   : > { %2624 = vmatprep.subr.bf16.mxu0 %v6108_v37  ;;  %2963 = vmatprep.subr.bf16.mxu1 %v6110_v38  ;;  %v594_v36 = vld [vmem:[#allocation5 + $0x520] sm:$0xff]  ;;  %v591_v37 = vld [vmem:[#allocation5 + $0x508] sm:$0xff] }
 0x108   : > { %v595_v38 = vld [vmem:[#allocation5 + $0x528] sm:$0xff]  ;;  %v6172_v41 = vcombine.high %v590_v35, %v594_v36  ;;  %v6171_v48 = vcombine.low %v590_v35, %v594_v36 }
 0x109   : > { %v6173_v49 = vcombine.low %v591_v37, %v595_v38  ;;  %v635_v19 = vld [vmem:[#allocation5 + $0x668] sm:$0xff] }
 0x10a   : > { %2625 = vmatpush1.bf16.msra.mxu0 %v6107_v43  ;;  %2964 = vmatpush1.bf16.msra.mxu1 %v6109_v44  ;;  %v6174_v43 = vcombine.high %v591_v37, %v595_v38  ;;  %v602_v44 = vld [vmem:[#allocation5 + $0x560] sm:$0xff]  ;;  %v6214_v26 = vcombine.high %v631_v17, %v635_v19  ;;  %v643_v28 = vld [vmem:[#allocation5 + $0x6a8] sm:$0xff] }
 0x10b   : > { %2626 = vmatprep.subr.bf16.mxu0 %v6116_v45  ;;  %2965 = vmatprep.subr.bf16.mxu1 %v6118_v46  ;;  %v7242_v45 = vld [vmem:[%s8339_s22 + $0x50] ss:$20 sps:$4 sm:$0xff]   ;;  %v599_v46 = vld [vmem:[#allocation5 + $0x548] sm:$0xff]  ;;  %v6180_v50 = vcombine.high %v598_v42, %v602_v44  ;;  %v6179_v57 = vcombine.low %v598_v42, %v602_v44 }
 0x10c   : > { %v6181_v58 = vcombine.low %v599_v46, %v603_v47  ;;  %v647_v35 = vld [vmem:[#allocation5 + $0x6c8] sm:$0xff]  ;;  %v654_v42 = vld [vmem:[#allocation5 + $0x700] sm:$0xff] }
 0x10d   : > { %v651_v37 = vld [vmem:[#allocation5 + $0x6e8] sm:$0xff] }
 0x10e   : > { %2627 = vmatpush1.bf16.msra.mxu0 %v6115_v51  ;;  %2966 = vmatpush1.bf16.msra.mxu1 %v6117_v52  ;;  %v7243_v51 = vld [vmem:[%s8339_s22 + $0x7c] ss:$20 sps:$4 sm:$0xff]   ;;  %v606_v52 = vld [vmem:[#allocation5 + $0x580] sm:$0xff]  ;;  %v6230_v44 = vcombine.high %v647_v35, %v651_v37 }
 0x10f   : > { %2628 = vmatprep.subr.bf16.mxu0 %v6124_v53  ;;  %2967 = vmatprep.subr.bf16.mxu1 %v6126_v54  ;;  %v6182_v53 = vcombine.high %v599_v46, %v603_v47  ;;  %v610_v54 = vld [vmem:[#allocation5 + $0x5a0] sm:$0xff]  ;;  %v659_v46 = vld [vmem:[#allocation5 + $0x728] sm:$0xff] }
 0x110   : > { %v6187_v2 = vcombine.low %v606_v52, %v610_v54 }
 0x112   : > { %2629 = vmatpush1.bf16.msra.mxu0 %v6123_v59  ;;  %2968 = vmatpush1.bf16.msra.mxu1 %v6125_v60  ;;  %v7245_v59 = vld [vmem:[%s8339_s22 + $0x78] ss:$20 sps:$4 sm:$0xff]   ;;  %v6188_v60 = vcombine.high %v606_v52, %v610_v54  ;;  %v666_v52 = vld [vmem:[#allocation5 + $0x760] sm:$0xff] }
 0x113   : > { %2630 = vmatprep.subr.bf16.mxu0 %v6132_v61  ;;  %2969 = vmatprep.subr.bf16.mxu1 %v6134_v62  ;;  %v614_v61 = vld [vmem:[#allocation5 + $0x5c0] sm:$0xff] }
 0x114   : > { %v618_v62 = vld [vmem:[#allocation5 + $0x5e0] sm:$0xff] }
 0x115   : > { %v6195_v11 = vcombine.low %v614_v61, %v618_v62 }
 0x116   : > { %2631 = vmatpush1.bf16.msra.mxu0 %v6131_v3  ;;  %2970 = vmatpush1.bf16.msra.mxu1 %v6133_v4  ;;  %v6189_v3 = vcombine.low %v607_v55, %v611_v56  ;;  %v6196_v4 = vcombine.high %v614_v61, %v618_v62  ;;  %v667_v55 = vld [vmem:[#allocation5 + $0x768] sm:$0xff]  ;;  %v674_v61 = vld [vmem:[#allocation5 + $0x7a0] sm:$0xff] }
 0x117   : > { %2713 = vmatprep.subr.bf16.mxu0 %v6140_v5  ;;  %3052 = vmatprep.subr.bf16.mxu1 %v6142_v6  ;;  %v7246_v5 = vld [vmem:[%s8339_s22 + $0xa4] ss:$20 sps:$4 sm:$0xff]  }
 0x118   : > { %v622_v6 = vld [vmem:[#allocation5 + $0x600] sm:$0xff] }
 0x119   : > { %2633 = vmatmul.mubr.bf16.vlgmr.msra.gmra.mrb[0].mxu0 %v7236_v9  ;;  %2972 = vmatmul.mubr.bf16.vlgmr.msra.gmra.mrb[0].mxu1 %v7236_v9  ;;  %v623_v9 = vld [vmem:[#allocation5 + $0x608] sm:$0xff]  ;;  %v6203_v20 = vcombine.low %v622_v6, %v626_v7 }
 0x11a   : > { %2714 = vmatpush1.bf16.msra.mxu0 %v6139_v12  ;;  %3053 = vmatpush1.bf16.msra.mxu1 %v6141_v13  ;;  %v6197_v12 = vcombine.low %v615_v63, %v619_v1  ;;  %v7248_v13 = vld [vmem:[%s8339_s22 + $0xa0] ss:$20 sps:$4 sm:$0xff]   ;;  %v6206_v18 = vcombine.high %v623_v9, %v627_v10  ;;  %v671_v63 = vld [vmem:[#allocation5 + $0x788] sm:$0xff] }
 0x11b   : > { %2715 = vmatprep.subr.bf16.mxu0 %v6148_v14  ;;  %3054 = vmatprep.subr.bf16.mxu1 %v6150_v16  ;;  %v6204_v14 = vcombine.high %v622_v6, %v626_v7  ;;  %v634_v16 = vld [vmem:[#allocation5 + $0x660] sm:$0xff]  ;;  %v679_v7 = vld [vmem:[#allocation5 + $0x7c8] sm:$0xff] }
 0x11c   : > { %2642 = vmatprep.mubr.bf16.mxu0 %v7237_v15  ;;  %2981 = vmatprep.mubr.bf16.mxu1 %v7237_v15  ;;  %v630_v15 = vld [vmem:[#allocation5 + $0x640] sm:$0xff] }
 0x11d   : > { %v6211_v29 = vcombine.low %v630_v15, %v634_v16  ;;  %v682_v6 = vld [vmem:[#allocation5 + $0x7e0] sm:$0xff] }
 0x11e   : > { %2716 = vmatpush1.bf16.msra.mxu0 %v6147_v21  ;;  %3055 = vmatpush1.bf16.msra.mxu1 %v6149_v22  ;;  %v6205_v21 = vcombine.low %v623_v9, %v627_v10  ;;  %v6212_v22 = vcombine.high %v630_v15, %v634_v16  ;;  %v683_v9 = vld [vmem:[#allocation5 + $0x7e8] sm:$0xff]  ;;  %v690_v15 = vld [vmem:[#allocation5 + $0x820] sm:$0xff] }
 0x11f   : > { %2717 = vmatprep.subr.bf16.mxu0 %v6156_v23  ;;  %3056 = vmatprep.subr.bf16.mxu1 %v6158_v24  ;;  %v7249_v23 = vld [vmem:[%s8339_s22 + $0xcc] ss:$20 sps:$4 sm:$0xff]   ;;  %v6262_v16 = vcombine.high %v679_v7, %v683_v9 }
 0x120   : > { %v638_v24 = vld [vmem:[#allocation5 + $0x680] sm:$0xff] }
 0x121   : > { %2643 = vmatmul.mubr.bf16.gmra.mrb[4].mxu0 %v7239_v27  ;;  %2982 = vmatmul.mubr.bf16.gmra.mrb[4].mxu1 %v7239_v27  ;;  %v639_v27 = vld [vmem:[#allocation5 + $0x688] sm:$0xff]  ;;  %v6219_v38 = vcombine.low %v638_v24, %v642_v25 }
 0x122   : > { %2718 = vmatpush1.bf16.msra.mxu0 %v6155_v30  ;;  %3057 = vmatpush1.bf16.msra.mxu1 %v6157_v31  ;;  %v6213_v30 = vcombine.low %v631_v17, %v635_v19  ;;  %v7251_v31 = vld [vmem:[%s8339_s22 + $0xc8] ss:$20 sps:$4 sm:$0xff]   ;;  %v6222_v36 = vcombine.high %v639_v27, %v643_v28 }
 0x123   : > { %2719 = vmatprep.subr.bf16.mxu0 %v6164_v32  ;;  %3058 = vmatprep.subr.bf16.mxu1 %v6166_v34  ;;  %v6220_v32 = vcombine.high %v638_v24, %v642_v25  ;;  %v650_v34 = vld [vmem:[#allocation5 + $0x6e0] sm:$0xff]  ;;  %v687_v17 = vld [vmem:[#allocation5 + $0x808] sm:$0xff] }
 0x124   : > { %2652 = vmatprep.mubr.bf16.mxu0 %v7240_v33  ;;  %2991 = vmatprep.mubr.bf16.mxu1 %v7240_v33  ;;  %v646_v33 = vld [vmem:[#allocation5 + $0x6c0] sm:$0xff] }
 0x125   : > { %v6227_v47 = vcombine.low %v646_v33, %v650_v34  ;;  %v698_v24 = vld [vmem:[#allocation5 + $0x860] sm:$0xff] }
 0x126   : > { %2720 = vmatpush1.bf16.msra.mxu0 %v6163_v39  ;;  %3059 = vmatpush1.bf16.msra.mxu1 %v6165_v40  ;;  %v6221_v39 = vcombine.low %v639_v27, %v643_v28  ;;  %v6228_v40 = vcombine.high %v646_v33, %v650_v34  ;;  %v699_v27 = vld [vmem:[#allocation5 + $0x868] sm:$0xff] }
 0x127   : > { %2721 = vmatprep.subr.bf16.mxu0 %v6172_v41  ;;  %3060 = vmatprep.subr.bf16.mxu1 %v6174_v43  ;;  %v7252_v41 = vld [vmem:[%s8339_s22 + $0xf4] ss:$20 sps:$4 sm:$0xff]   ;;  %v658_v43 = vld [vmem:[#allocation5 + $0x720] sm:$0xff] }
 0x128   : > { %v6235_v56 = vcombine.low %v654_v42, %v658_v43  ;;  %v7261_v28 = vld [vmem:[%s8339_s22 + $0x34] ss:$20 sps:$4 sm:$0xff]  }
 0x129   : > { %2653 = vmatmul.mubr.bf16.gmra.mrb[8].mxu0 %v7242_v45  ;;  %2992 = vmatmul.mubr.bf16.gmra.mrb[8].mxu1 %v7242_v45  ;;  %v655_v45 = vld [vmem:[#allocation5 + $0x708] sm:$0xff] }
 0x12a   : > { %2722 = vmatpush1.bf16.msra.mxu0 %v6171_v48  ;;  %3061 = vmatpush1.bf16.msra.mxu1 %v6173_v49  ;;  %v6229_v48 = vcombine.low %v647_v35, %v651_v37  ;;  %v7254_v49 = vld [vmem:[%s8339_s22 + $0xf0] ss:$20 sps:$4 sm:$0xff]   ;;  %v6238_v54 = vcombine.high %v655_v45, %v659_v46  ;;  %v703_v33 = vld [vmem:[#allocation5 + $0x888] sm:$0xff] }
 0x12b   : > { %2723 = vmatprep.subr.bf16.mxu0 %v6180_v50  ;;  %3062 = vmatprep.subr.bf16.mxu1 %v6182_v53  ;;  %v6236_v50 = vcombine.high %v654_v42, %v658_v43  ;;  %v663_v53 = vld [vmem:[#allocation5 + $0x748] sm:$0xff]  ;;  %v714_v42 = vld [vmem:[#allocation5 + $0x8e0] sm:$0xff]  ;;  %v7264_v43 = vld [vmem:[%s8339_s22 + $0x5c] ss:$20 sps:$4 sm:$0xff]  }
 0x12c   : > { %2662 = vmatprep.mubr.bf16.mxu0 %v7243_v51  ;;  %3001 = vmatprep.mubr.bf16.mxu1 %v7243_v51  ;;  %v662_v51 = vld [vmem:[#allocation5 + $0x740] sm:$0xff]  ;;  %v6246_v62 = vcombine.high %v663_v53, %v667_v55  ;;  %v707_v35 = vld [vmem:[#allocation5 + $0x8a8] sm:$0xff] }
 0x12d   : > { %v6243_v1 = vcombine.low %v662_v51, %v666_v52 }
 0x12e   : > { %2724 = vmatpush1.bf16.msra.mxu0 %v6179_v57  ;;  %3063 = vmatpush1.bf16.msra.mxu1 %v6181_v58  ;;  %v6237_v57 = vcombine.low %v655_v45, %v659_v46  ;;  %v6244_v58 = vcombine.high %v662_v51, %v666_v52  ;;  %v711_v45 = vld [vmem:[#allocation5 + $0x8c8] sm:$0xff] }
 0x12f   : > { %2725 = vmatprep.subr.bf16.mxu0 %v6188_v60  ;;  %3064 = vmatprep.subr.bf16.mxu1 %v6190_v0  ;;  %v670_v60 = vld [vmem:[#allocation5 + $0x780] sm:$0xff]  ;;  %v675_v0 = vld [vmem:[#allocation5 + $0x7a8] sm:$0xff] }
 0x130   : > { %v6251_v10 = vcombine.low %v670_v60, %v674_v61  ;;  %v715_v46 = vld [vmem:[#allocation5 + $0x8e8] sm:$0xff] }
 0x131   : > { %2663 = vmatmul.mubr.bf16.gmra.mrb[12].mxu0 %v7245_v59  ;;  %3002 = vmatmul.mubr.bf16.gmra.mrb[12].mxu1 %v7245_v59  ;;  %v7255_v59 = vld [vmem:[%s8339_s22 + $0x11c] ss:$20 sps:$4 sm:$0xff]   ;;  %v719_v52 = vld [vmem:[#allocation5 + $0x908] sm:$0xff] }
 0x132   : > { %2726 = vmatpush1.bf16.msra.mxu0 %v6187_v2  ;;  %3065 = vmatpush1.bf16.msra.mxu1 %v6189_v3  ;;  %v6245_v2 = vcombine.low %v663_v53, %v667_v55  ;;  %v7257_v3 = vld [vmem:[%s8339_s22 + $0x118] ss:$20 sps:$4 sm:$0xff]  }
 0x133   : > { %2727 = vmatprep.subr.bf16.mxu0 %v6196_v4  ;;  %3066 = vmatprep.subr.bf16.mxu1 %v6198_v8  ;;  %v6252_v4 = vcombine.high %v670_v60, %v674_v61  ;;  %v6254_v8 = vcombine.high %v671_v63, %v675_v0  ;;  %v723_v53 = vld [vmem:[#allocation5 + $0x928] sm:$0xff]  ;;  %v6293_v60 = vcombine.low %v711_v45, %v715_v46 }
 0x134   : > { %2672 = vmatprep.mubr.bf16.mxu0 %v7246_v5  ;;  %3011 = vmatprep.mubr.bf16.mxu1 %v7246_v5  ;;  %v678_v5 = vld [vmem:[#allocation5 + $0x7c0] sm:$0xff]  ;;  %v7266_v55 = vld [vmem:[%s8339_s22 + $0x58] ss:$20 sps:$4 sm:$0xff]  }
 0x135   : > { %v6259_v19 = vcombine.low %v678_v5, %v682_v6 }
 0x136   : > { %2728 = vmatpush1.bf16.msra.mxu0 %v6195_v11  ;;  %3067 = vmatpush1.bf16.msra.mxu1 %v6197_v12  ;;  %v6253_v11 = vcombine.low %v671_v63, %v675_v0  ;;  %v6260_v12 = vcombine.high %v678_v5, %v682_v6  ;;  %v731_v63 = vld [vmem:[#allocation5 + $0x968] sm:$0xff]  ;;  %v6302_v0 = vcombine.high %v719_v52, %v723_v53 }
 0x137   : > { %2729 = vmatprep.subr.bf16.mxu0 %v6204_v14  ;;  %3068 = vmatprep.subr.bf16.mxu1 %v6206_v18  ;;  %v686_v14 = vld [vmem:[#allocation5 + $0x800] sm:$0xff]  ;;  %v691_v18 = vld [vmem:[#allocation5 + $0x828] sm:$0xff] }
 0x138   : > { %v6270_v25 = vcombine.high %v687_v17, %v691_v18  ;;  %v735_v6 = vld [vmem:[#allocation5 + $0x988] sm:$0xff] }
 0x139   : > { %2673 = vmatmul.mubr.bf16.gmra.mrb[16].mxu0 %v7248_v13  ;;  %3012 = vmatmul.mubr.bf16.gmra.mrb[16].mxu1 %v7248_v13  ;;  %v7260_v13 = vld [vmem:[%s8339_s22 + $0xc] ss:$20 sps:$4 sm:$0xff]  }
 0x13a   : > { %2730 = vmatpush1.bf16.msra.mxu0 %v6203_v20  ;;  %3069 = vmatpush1.bf16.msra.mxu1 %v6205_v21  ;;  %v6261_v20 = vcombine.low %v679_v7, %v683_v9  ;;  %v7258_v21 = vld [vmem:[%s8339_s22 + $0x8] ss:$20 sps:$4 sm:$0xff]   ;;  %v7269_v9 = vld [vmem:[%s8339_s22 + $0x80] ss:$20 sps:$4 sm:$0xff]  }
 0x13b   : > { %2731 = vmatprep.subr.bf16.mxu0 %v6212_v22  ;;  %3070 = vmatprep.subr.bf16.mxu1 %v6214_v26  ;;  %v6268_v22 = vcombine.high %v686_v14, %v690_v15  ;;  %v695_v26 = vld [vmem:[#allocation5 + $0x848] sm:$0xff] }
 0x13c   : > { %2682 = vmatprep.mubr.bf16.mxu0 %v7249_v23  ;;  %3021 = vmatprep.mubr.bf16.mxu1 %v7249_v23  ;;  %v694_v23 = vld [vmem:[#allocation5 + $0x840] sm:$0xff]  ;;  %v739_v7 = vld [vmem:[#allocation5 + $0x9a8] sm:$0xff] }
 0x13d   : > { %v6276_v34 = vcombine.high %v694_v23, %v698_v24  ;;  %v6275_v37 = vcombine.low %v694_v23, %v698_v24  ;;  %v433_v24 = vld [vmem:[#allocation5 + $0x18] sm:$0xff] }
 0x13e   : > { %2732 = vmatpush1.bf16.msra.mxu0 %v6211_v29  ;;  %3071 = vmatpush1.bf16.msra.mxu1 %v6213_v30  ;;  %v6267_v29 = vcombine.low %v686_v14, %v690_v15  ;;  %v6269_v30 = vcombine.low %v687_v17, %v691_v18  ;;  %v747_v17 = vld [vmem:[#allocation5 + $0x9e8] sm:$0xff]  ;;  %v6318_v18 = vcombine.high %v735_v6, %v739_v7 }
 0x13f   : > { %2733 = vmatprep.subr.bf16.mxu0 %v6220_v32  ;;  %3072 = vmatprep.subr.bf16.mxu1 %v6222_v36  ;;  %v706_v32 = vld [vmem:[#allocation5 + $0x8a0] sm:$0xff]  ;;  %v6278_v36 = vcombine.high %v695_v26, %v699_v27 }
 0x141   : > { %2683 = vmatmul.mubr.bf16.gmra.mrb[20].mxu0 %v7251_v31  ;;  %3022 = vmatmul.mubr.bf16.gmra.mrb[20].mxu1 %v7251_v31  ;;  %v702_v31 = vld [vmem:[#allocation5 + $0x880] sm:$0xff] }
 0x142   : > { %2734 = vmatpush1.bf16.msra.mxu0 %v6219_v38  ;;  %3073 = vmatpush1.bf16.msra.mxu1 %v6221_v39  ;;  %v7263_v38 = vld [vmem:[%s8339_s22 + $0x30] ss:$20 sps:$4 sm:$0xff]   ;;  %v6277_v39 = vcombine.low %v695_v26, %v699_v27  ;;  %v7272_v27 = vld [vmem:[%s8339_s22 + $0xa8] ss:$20 sps:$4 sm:$0xff]  }
 0x143   : > { %2735 = vmatprep.subr.bf16.mxu0 %v6228_v40  ;;  %3074 = vmatprep.subr.bf16.mxu1 %v6230_v44  ;;  %v6284_v40 = vcombine.high %v702_v31, %v706_v32  ;;  %v6286_v44 = vcombine.high %v703_v33, %v707_v35 }
 0x144   : > { %2692 = vmatprep.mubr.bf16.mxu0 %v7252_v41  ;;  %3031 = vmatprep.mubr.bf16.mxu1 %v7252_v41  ;;  %v710_v41 = vld [vmem:[#allocation5 + $0x8c0] sm:$0xff] }
 0x145   : > { %v6292_v51 = vcombine.high %v710_v41, %v714_v42 }
 0x146   : > { %2736 = vmatpush1.bf16.msra.mxu0 %v6227_v47  ;;  %3075 = vmatpush1.bf16.msra.mxu1 %v6229_v48  ;;  %v6283_v47 = vcombine.low %v702_v31, %v706_v32  ;;  %v718_v48 = vld [vmem:[#allocation5 + $0x900] sm:$0xff] }
 0x147   : > { %2737 = vmatprep.subr.bf16.mxu0 %v6236_v50  ;;  %3076 = vmatprep.subr.bf16.mxu1 %v6238_v54  ;;  %v6285_v50 = vcombine.low %v703_v33, %v707_v35  ;;  %v6294_v54 = vcombine.high %v711_v45, %v715_v46  ;;  %v7275_v33 = vld [vmem:[%s8339_s22 + $0xd0] ss:$20 sps:$4 sm:$0xff]   ;;  %v7278_v35 = vld [vmem:[%s8339_s22 + $0xf8] ss:$20 sps:$4 sm:$0xff]  }
 0x149   : > { %2693 = vmatmul.mubr.bf16.gmra.mrb[24].mxu0 %v7254_v49  ;;  %3032 = vmatmul.mubr.bf16.gmra.mrb[24].mxu1 %v7254_v49  ;;  %v722_v49 = vld [vmem:[#allocation5 + $0x920] sm:$0xff] }
 0x14a   : > { %2738 = vmatpush1.bf16.msra.mxu0 %v6235_v56  ;;  %3077 = vmatpush1.bf16.msra.mxu1 %v6237_v57  ;;  %v6291_v56 = vcombine.low %v710_v41, %v714_v42  ;;  %v726_v57 = vld [vmem:[#allocation5 + $0x940] sm:$0xff]  ;;  %v6300_v61 = vcombine.high %v718_v48, %v722_v49  ;;  %v441_v42 = vld [vmem:[#allocation5 + $0x58] sm:$0xff] }
 0x14b   : > { %2739 = vmatprep.subr.bf16.mxu0 %v6244_v58  ;;  %3078 = vmatprep.subr.bf16.mxu1 %v6246_v62  ;;  %v730_v58 = vld [vmem:[#allocation5 + $0x960] sm:$0xff]  ;;  %v727_v62 = vld [vmem:[#allocation5 + $0x948] sm:$0xff] }
 0x14c   : > { %2702 = vmatprep.mubr.bf16.mxu0 %v7255_v59  ;;  %3041 = vmatprep.mubr.bf16.mxu1 %v7255_v59  ;;  %v7267_v59 = vld [vmem:[%s8339_s22 + $0x84] ss:$20 sps:$4 sm:$0xff]   ;;  %v6308_v5 = vcombine.high %v726_v57, %v730_v58  ;;  %v6309_v14 = vcombine.low %v727_v62, %v731_v63 }
 0x14d   : > { %v7282_v41 = vld [vmem:[%s8339_s22 + $0x10] ss:$20 sps:$4 sm:$0xff]  }
 0x14e   : > { %2740 = vmatpush1.bf16.msra.mxu0 %v6243_v1  ;;  %3079 = vmatpush1.bf16.msra.mxu1 %v6245_v2  ;;  %v6299_v1 = vcombine.low %v718_v48, %v722_v49  ;;  %v734_v2 = vld [vmem:[#allocation5 + $0x980] sm:$0xff]  ;;  %v448_v48 = vld [vmem:[#allocation5 + $0x90] sm:$0xff] }
 0x14f   : > { %2741 = vmatprep.subr.bf16.mxu0 %v6252_v4  ;;  %3080 = vmatprep.subr.bf16.mxu1 %v6254_v8  ;;  %v6301_v4 = vcombine.low %v719_v52, %v723_v53  ;;  %v6310_v8 = vcombine.high %v727_v62, %v731_v63  ;;  %v452_v49 = vld [vmem:[#allocation5 + $0xb0] sm:$0xff] }
 0x151   : > { %2703 = vmatmul.mubr.bf16.gmra.mrb[28].mxu0 %v7257_v3  ;;  %3042 = vmatmul.mubr.bf16.gmra.mrb[28].mxu1 %v7257_v3  ;;  %v738_v3 = vld [vmem:[#allocation5 + $0x9a0] sm:$0xff] }
 0x152   : > { %2742 = vmatpush1.bf16.msra.mxu0 %v6251_v10  ;;  %3081 = vmatpush1.bf16.msra.mxu1 %v6253_v11  ;;  %v6307_v10 = vcombine.low %v726_v57, %v730_v58  ;;  %v742_v11 = vld [vmem:[#allocation5 + $0x9c0] sm:$0xff]  ;;  %v6316_v15 = vcombine.high %v734_v2, %v738_v3  ;;  %v460_v57 = vld [vmem:[#allocation5 + $0xf0] sm:$0xff]  ;;  %v7283_v58 = vld [vmem:[%s8339_s22 + $0x38] ss:$20 sps:$4 sm:$0xff]  }
 0x153   : > { %2743 = vmatprep.subr.bf16.mxu0 %v6260_v12  ;;  %3082 = vmatprep.subr.bf16.mxu1 %v6262_v16  ;;  %v746_v12 = vld [vmem:[#allocation5 + $0x9e0] sm:$0xff]  ;;  %v743_v16 = vld [vmem:[#allocation5 + $0x9c8] sm:$0xff] }
 0x154   : > { %2745 = vmatprep.mubr.bf16.mxu0 %v7260_v13  ;;  %3084 = vmatprep.mubr.bf16.mxu1 %v7260_v13  ;;  %v7270_v13 = vld [vmem:[%s8339_s22 + $0xac] ss:$20 sps:$4 sm:$0xff]   ;;  %v6324_v23 = vcombine.high %v742_v11, %v746_v12  ;;  %v6326_v26 = vcombine.high %v743_v16, %v747_v17 }
 0x156   : > { %2744 = vmatpush1.bf16.msra.mxu0 %v6259_v19  ;;  %3083 = vmatpush1.bf16.msra.mxu1 %v6261_v20  ;;  %v6315_v19 = vcombine.low %v734_v2, %v738_v3  ;;  %v8382_v20 = vld [vmem:[#allocation5 + $0x10] sm:$0xff]  ;;  %v465_v3 = vld [vmem:[#allocation5 + $0x118] sm:$0xff] }
 0x157   : > { %2826 = vmatprep.subr.bf16.mxu0 %v6268_v22  ;;  %3165 = vmatprep.subr.bf16.mxu1 %v6270_v25  ;;  %v6317_v22 = vcombine.low %v735_v6, %v739_v7  ;;  %v437_v25 = vld [vmem:[#allocation5 + $0x38] sm:$0xff]  ;;  %v468_v2 = vld [vmem:[#allocation5 + $0x130] sm:$0xff] }
 0x158   : > { %v6018_v32 = vcombine.high %v433_v24, %v437_v25  ;;  %v6017_v45 = vcombine.low %v433_v24, %v437_v25 }
 0x159   : > { %2746 = vmatmul.mubr.bf16.vlgmr.msra.gmra.mrb[0].mxu0 %v7258_v21  ;;  %3085 = vmatmul.mubr.bf16.vlgmr.msra.gmra.mrb[0].mxu1 %v7258_v21  ;;  %v8384_v21 = vld [vmem:[#allocation5 + $0x30] sm:$0xff] }
 0x15a   : > { %2827 = vmatpush1.bf16.msra.mxu0 %v6267_v29  ;;  %3166 = vmatpush1.bf16.msra.mxu1 %v6269_v30  ;;  %v7273_v29 = vld [vmem:[%s8339_s22 + $0xd4] ss:$20 sps:$4 sm:$0xff]   ;;  %v6325_v30 = vcombine.low %v743_v16, %v747_v17  ;;  %v6016_v31 = vcombine.high %v8382_v20, %v8384_v21 }
 0x15b   : > { %2755 = vmatprep.mubr.bf16.mxu0 %v7261_v28  ;;  %3094 = vmatprep.mubr.bf16.mxu1 %v7261_v28  ;;  %v6323_v28 = vcombine.low %v742_v11, %v746_v12  ;;  %v7284_v11 = vld [vmem:[%s8339_s22 + $0x60] ss:$20 sps:$4 sm:$0xff]   ;;  %v473_v12 = vld [vmem:[#allocation5 + $0x158] sm:$0xff] }
 0x15c   : > { %2828 = vmatprep.subr.bf16.mxu0 %v6276_v34  ;;  %3167 = vmatprep.subr.bf16.mxu1 %v6278_v36  ;;  %v7276_v34 = vld [vmem:[%s8339_s22 + $0xfc] ss:$20 sps:$4 sm:$0xff]   ;;  %v7279_v36 = vld [vmem:[%s8339_s22 + $0x124] ss:$20 sps:$4 sm:$0xff]  }
 0x15e   : > { %2829 = vmatpush1.bf16.msra.mxu0 %v6275_v37  ;;  %3168 = vmatpush1.bf16.msra.mxu1 %v6277_v39  ;;  %v7281_v37 = vld [vmem:[%s8339_s22 + $0x120] ss:$20 sps:$4 sm:$0xff]  }
 0x15f   : > { %2830 = vmatprep.subr.bf16.mxu0 %v6284_v40  ;;  %3169 = vmatprep.subr.bf16.mxu1 %v6286_v44  ;;  %v440_v39 = vld [vmem:[#allocation5 + $0x50] sm:$0xff]  ;;  %v6015_v44 = vcombine.low %v8382_v20, %v8384_v21  ;;  %v481_v20 = vld [vmem:[#allocation5 + $0x198] sm:$0xff] }
 0x160   : > { %v444_v40 = vld [vmem:[#allocation5 + $0x70] sm:$0xff]  ;;  %v485_v21 = vld [vmem:[#allocation5 + $0x1b8] sm:$0xff] }
 0x161   : > { %2756 = vmatmul.mubr.bf16.gmra.mrb[4].mxu0 %v7263_v38  ;;  %3095 = vmatmul.mubr.bf16.gmra.mrb[4].mxu1 %v7263_v38  ;;  %v8046_v38 = vmov 0   ;;  %v6024_v46 = vcombine.high %v440_v39, %v444_v40  ;;  %v6023_v52 = vcombine.low %v440_v39, %v444_v40  ;;  %v6066_v25 = vcombine.high %v481_v20, %v485_v21  ;;  %v501_v39 = vld [vmem:[#allocation5 + $0x238] sm:$0xff] }
 0x162   : > { %2765 = vmatprep.mubr.bf16.mxu0 %v7264_v43  ;;  %3104 = vmatprep.mubr.bf16.mxu1 %v7264_v43  ;;  %v445_v43 = vld [vmem:[#allocation5 + $0x78] sm:$0xff] }
 0x163   : > { %2831 = vmatpush1.bf16.msra.mxu0 %v6283_v47  ;;  %3170 = vmatpush1.bf16.msra.mxu1 %v6285_v50  ;;  %v6026_v47 = vcombine.high %v441_v42, %v445_v43  ;;  %v449_v50 = vld [vmem:[#allocation5 + $0x98] sm:$0xff]  ;;  %v6025_v53 = vcombine.low %v441_v42, %v445_v43 }
 0x164   : > { %2832 = vmatprep.subr.bf16.mxu0 %v6292_v51  ;;  %3171 = vmatprep.subr.bf16.mxu1 %v6294_v54  ;;  %v453_v51 = vld [vmem:[#allocation5 + $0xb8] sm:$0xff]  ;;  %v6032_v54 = vcombine.high %v448_v48, %v452_v49 }
 0x165   : > { %v6033_v62 = vcombine.low %v449_v50, %v453_v51 }
 0x167   : > { %2833 = vmatpush1.bf16.msra.mxu0 %v6291_v56  ;;  %3172 = vmatpush1.bf16.msra.mxu1 %v6293_v60  ;;  %v456_v56 = vld [vmem:[#allocation5 + $0xd0] sm:$0xff]  ;;  %v461_v60 = vld [vmem:[#allocation5 + $0xf8] sm:$0xff] }
 0x168   : > { %2834 = vmatprep.subr.bf16.mxu0 %v6300_v61  ;;  %3173 = vmatprep.subr.bf16.mxu1 %v6302_v0  ;;  %v6031_v61 = vcombine.low %v448_v48, %v452_v49  ;;  %v6040_v63 = vcombine.high %v456_v56, %v460_v57  ;;  %v509_v48 = vld [vmem:[#allocation5 + $0x278] sm:$0xff] }
 0x169   : > { %2766 = vmatmul.mubr.bf16.gmra.mrb[8].mxu0 %v7266_v55  ;;  %3105 = vmatmul.mubr.bf16.gmra.mrb[8].mxu1 %v7266_v55  ;;  %v6034_v55 = vcombine.high %v449_v50, %v453_v51 }
 0x16a   : > { %2775 = vmatprep.mubr.bf16.mxu0 %v7267_v59  ;;  %3114 = vmatprep.mubr.bf16.mxu1 %v7267_v59  ;;  %v457_v59 = vld [vmem:[#allocation5 + $0xd8] sm:$0xff] }
 0x16b   : > { %2835 = vmatpush1.bf16.msra.mxu0 %v6299_v1  ;;  %3174 = vmatpush1.bf16.msra.mxu1 %v6301_v4  ;;  %v6042_v0 = vcombine.high %v457_v59, %v461_v60  ;;  %v464_v1 = vld [vmem:[#allocation5 + $0x110] sm:$0xff]  ;;  %v469_v4 = vld [vmem:[#allocation5 + $0x138] sm:$0xff]  ;;  %v6041_v6 = vcombine.low %v457_v59, %v461_v60 }
 0x16c   : > { %2836 = vmatprep.subr.bf16.mxu0 %v6308_v5  ;;  %3175 = vmatprep.subr.bf16.mxu1 %v6310_v8  ;;  %v6039_v5 = vcombine.low %v456_v56, %v460_v57  ;;  %v6048_v7 = vcombine.high %v464_v1, %v468_v2  ;;  %v6050_v8 = vcombine.high %v465_v3, %v469_v4  ;;  %v517_v56 = vld [vmem:[#allocation5 + $0x2b8] sm:$0xff] }
 0x16f   : > { %2837 = vmatpush1.bf16.msra.mxu0 %v6307_v10  ;;  %3176 = vmatpush1.bf16.msra.mxu1 %v6309_v14  ;;  %v476_v10 = vld [vmem:[#allocation5 + $0x170] sm:$0xff]  ;;  %v6047_v14 = vcombine.low %v464_v1, %v468_v2  ;;  %v525_v1 = vld [vmem:[#allocation5 + $0x2f8] sm:$0xff] }
 0x170   : > { %2838 = vmatprep.subr.bf16.mxu0 %v6316_v15  ;;  %3177 = vmatprep.subr.bf16.mxu1 %v6318_v18  ;;  %v6049_v15 = vcombine.low %v465_v3, %v469_v4  ;;  %v480_v18 = vld [vmem:[#allocation5 + $0x190] sm:$0xff] }
 0x171   : > { %2776 = vmatmul.mubr.bf16.gmra.mrb[12].mxu0 %v7269_v9  ;;  %3115 = vmatmul.mubr.bf16.gmra.mrb[12].mxu1 %v7269_v9  ;;  %v472_v9 = vld [vmem:[#allocation5 + $0x150] sm:$0xff] }
 0x172   : > { %2785 = vmatprep.mubr.bf16.mxu0 %v7270_v13  ;;  %3124 = vmatprep.mubr.bf16.mxu1 %v7270_v13  ;;  %v477_v13 = vld [vmem:[#allocation5 + $0x178] sm:$0xff]  ;;  %v6056_v16 = vcombine.high %v472_v9, %v476_v10 }
 0x173   : > { %2839 = vmatpush1.bf16.msra.mxu0 %v6315_v19  ;;  %3178 = vmatpush1.bf16.msra.mxu1 %v6317_v22  ;;  %v6058_v17 = vcombine.high %v473_v12, %v477_v13  ;;  %v484_v19 = vld [vmem:[#allocation5 + $0x1b0] sm:$0xff]  ;;  %v6055_v22 = vcombine.low %v472_v9, %v476_v10  ;;  %v533_v9 = vld [vmem:[#allocation5 + $0x338] sm:$0xff] }
 0x174   : > { %2840 = vmatprep.subr.bf16.mxu0 %v6324_v23  ;;  %3179 = vmatprep.subr.bf16.mxu1 %v6326_v26  ;;  %v6057_v23 = vcombine.low %v473_v12, %v477_v13  ;;  %v6064_v24 = vcombine.high %v480_v18, %v484_v19  ;;  %v488_v26 = vld [vmem:[#allocation5 + $0x1d0] sm:$0xff] }
 0x177   : > { %2841 = vmatpush1.bf16.msra.mxu0 %v6323_v28  ;;  %3180 = vmatpush1.bf16.msra.mxu1 %v6325_v30  ;;  %v7285_v28 = vld [vmem:[%s8339_s22 + $0x88] ss:$20 sps:$4 sm:$0xff]  }
 0x178   : > { %3278 = vmatprep.subr.bf16.mxu0 %v6016_v31  ;;  %3617 = vmatprep.subr.bf16.mxu1 %v6018_v32  ;;  %v493_v30 = vld [vmem:[#allocation5 + $0x1f8] sm:$0xff]  ;;  %v6063_v31 = vcombine.low %v480_v18, %v484_v19  ;;  %v6065_v32 = vcombine.low %v481_v20, %v485_v21 }
 0x179   : > { %2786 = vmatmul.mubr.bf16.gmra.mrb[16].mxu0 %v7272_v27  ;;  %3125 = vmatmul.mubr.bf16.gmra.mrb[16].mxu1 %v7272_v27  ;;  %v492_v27 = vld [vmem:[#allocation5 + $0x1f0] sm:$0xff]  ;;  %v541_v18 = vld [vmem:[#allocation5 + $0x378] sm:$0xff] }
 0x17a   : > { %2795 = vmatprep.mubr.bf16.mxu0 %v7273_v29  ;;  %3134 = vmatprep.mubr.bf16.mxu1 %v7273_v29  ;;  %v489_v29 = vld [vmem:[#allocation5 + $0x1d8] sm:$0xff]  ;;  %v6071_v40 = vcombine.low %v488_v26, %v492_v27 }
 0x181   : > { %2796 = vmatmul.mubr.bf16.gmra.mrb[20].mxu0 %v7275_v33  ;;  %3135 = vmatmul.mubr.bf16.gmra.mrb[20].mxu1 %v7275_v33  ;;  %v6072_v33 = vcombine.high %v488_v26, %v492_v27  ;;  %v549_v26 = vld [vmem:[#allocation5 + $0x3b8] sm:$0xff] }
 0x182   : > { %2805 = vmatprep.mubr.bf16.mxu0 %v7276_v34  ;;  %3144 = vmatprep.mubr.bf16.mxu1 %v7276_v34  ;;  %v6074_v34 = vcombine.high %v489_v29, %v493_v30 }
 0x189   : > { %2806 = vmatmul.mubr.bf16.gmra.mrb[24].mxu0 %v7278_v35  ;;  %3145 = vmatmul.mubr.bf16.gmra.mrb[24].mxu1 %v7278_v35  ;;  %v496_v35 = vld [vmem:[#allocation5 + $0x210] sm:$0xff] }
 0x18a   : > { %2815 = vmatprep.mubr.bf16.mxu0 %v7279_v36  ;;  %3154 = vmatprep.mubr.bf16.mxu1 %v7279_v36  ;;  %v500_v36 = vld [vmem:[#allocation5 + $0x230] sm:$0xff] }
 0x18b   : > { %v6080_v42 = vcombine.high %v496_v35, %v500_v36  ;;  %v6079_v49 = vcombine.low %v496_v35, %v500_v36  ;;  %v557_v35 = vld [vmem:[#allocation5 + $0x3f8] sm:$0xff] }
 0x191   : > { %2816 = vmatmul.mubr.bf16.gmra.mrb[28].mxu0 %v7281_v37  ;;  %3155 = vmatmul.mubr.bf16.gmra.mrb[28].mxu1 %v7281_v37  ;;  %v497_v37 = vld [vmem:[#allocation5 + $0x218] sm:$0xff] }
 0x192   : > { %2858 = vmatprep.mubr.bf16.mxu0 %v8046_v38  ;;  %3197 = vmatprep.mubr.bf16.mxu1 %v8046_v38  ;;  %v6082_v43 = vcombine.high %v497_v37, %v501_v39  ;;  %v6081_v50 = vcombine.low %v497_v37, %v501_v39 }
 0x199   : > { %2859 = vmatmul.mubr.bf16.vlgmr.msra.gmra.mrb[0].mxu0 %v7282_v41  ;;  %3198 = vmatmul.mubr.bf16.vlgmr.msra.gmra.mrb[0].mxu1 %v7282_v41  ;;  %v6073_v41 = vcombine.low %v489_v29, %v493_v30 }
 0x19a   : > { %3279 = vmatpush1.bf16.msra.mxu0 %v6015_v44  ;;  %3618 = vmatpush1.bf16.msra.mxu1 %v6017_v45  ;;  %v504_v44 = vld [vmem:[#allocation5 + $0x250] sm:$0xff] }
 0x19b   : > { %3280 = vmatprep.subr.bf16.mxu0 %v6024_v46  ;;  %3619 = vmatprep.subr.bf16.mxu1 %v6026_v47  ;;  %v508_v45 = vld [vmem:[#allocation5 + $0x270] sm:$0xff]  ;;  %v505_v47 = vld [vmem:[#allocation5 + $0x258] sm:$0xff] }
 0x19c   : > { %2868 = vmatprep.mubr.bf16.mxu0 %v8046_v38  ;;  %3207 = vmatprep.mubr.bf16.mxu1 %v8046_v38  ;;  %v7286_v46 = vld [vmem:[%s8339_s22 + $0xb0] ss:$20 sps:$4 sm:$0xff]   ;;  %v6088_v51 = vcombine.high %v504_v44, %v508_v45  ;;  %v6087_v57 = vcombine.low %v504_v44, %v508_v45  ;;  %v565_v44 = vld [vmem:[#allocation5 + $0x438] sm:$0xff] }
 0x19e   : > { %3281 = vmatpush1.bf16.msra.mxu0 %v6023_v52  ;;  %3620 = vmatpush1.bf16.msra.mxu1 %v6025_v53  ;;  %v6090_v52 = vcombine.high %v505_v47, %v509_v48  ;;  %v512_v53 = vld [vmem:[#allocation5 + $0x290] sm:$0xff] }
 0x19f   : > { %3282 = vmatprep.subr.bf16.mxu0 %v6032_v54  ;;  %3621 = vmatprep.subr.bf16.mxu1 %v6034_v55  ;;  %v516_v54 = vld [vmem:[#allocation5 + $0x2b0] sm:$0xff]  ;;  %v513_v55 = vld [vmem:[#allocation5 + $0x298] sm:$0xff] }
 0x1a0   : > { %v6096_v59 = vcombine.high %v512_v53, %v516_v54  ;;  %v6098_v60 = vcombine.high %v513_v55, %v517_v56  ;;  %v6095_v2 = vcombine.low %v512_v53, %v516_v54  ;;  %v6097_v3 = vcombine.low %v513_v55, %v517_v56  ;;  %v573_v53 = vld [vmem:[#allocation5 + $0x478] sm:$0xff] }
 0x1a1   : > { %2869 = vmatmul.mubr.bf16.gmra.mrb[4].mxu0 %v7283_v58  ;;  %3208 = vmatmul.mubr.bf16.gmra.mrb[4].mxu1 %v7283_v58  ;;  %v6089_v58 = vcombine.low %v505_v47, %v509_v48  ;;  %v7714_v48 = vld [vmem:[%s8339_s22 + $0x4] ss:$20 sps:$4 sm:$0xff]  }
 0x1a2   : > { %3283 = vmatpush1.bf16.msra.mxu0 %v6031_v61  ;;  %3622 = vmatpush1.bf16.msra.mxu1 %v6033_v62  ;;  %v520_v61 = vld [vmem:[#allocation5 + $0x2d0] sm:$0xff] }
 0x1a3   : > { %3284 = vmatprep.subr.bf16.mxu0 %v6040_v63  ;;  %3623 = vmatprep.subr.bf16.mxu1 %v6042_v0  ;;  %v524_v62 = vld [vmem:[#allocation5 + $0x2f0] sm:$0xff]  ;;  %v7287_v63 = vld [vmem:[%s8339_s22 + $0xd8] ss:$20 sps:$4 sm:$0xff]  }
 0x1a4   : > { %2878 = vmatprep.mubr.bf16.mxu0 %v8046_v38  ;;  %3217 = vmatprep.mubr.bf16.mxu1 %v8046_v38  ;;  %v521_v0 = vld [vmem:[#allocation5 + $0x2d8] sm:$0xff]  ;;  %v6104_v4 = vcombine.high %v520_v61, %v524_v62  ;;  %v6103_v10 = vcombine.low %v520_v61, %v524_v62 }
 0x1a5   : > { %v577_v61 = vld [vmem:[#allocation5 + $0x498] sm:$0xff] }
 0x1a6   : > { %3285 = vmatpush1.bf16.msra.mxu0 %v6039_v5  ;;  %3624 = vmatpush1.bf16.msra.mxu1 %v6041_v6  ;;  %v6106_v5 = vcombine.high %v521_v0, %v525_v1  ;;  %v528_v6 = vld [vmem:[#allocation5 + $0x310] sm:$0xff]  ;;  %v581_v62 = vld [vmem:[#allocation5 + $0x4b8] sm:$0xff] }
 0x1a7   : > { %3286 = vmatprep.subr.bf16.mxu0 %v6048_v7  ;;  %3625 = vmatprep.subr.bf16.mxu1 %v6050_v8  ;;  %v532_v7 = vld [vmem:[#allocation5 + $0x330] sm:$0xff]  ;;  %v529_v8 = vld [vmem:[#allocation5 + $0x318] sm:$0xff] }
 0x1a8   : > { %v6112_v12 = vcombine.high %v528_v6, %v532_v7  ;;  %v6114_v13 = vcombine.high %v529_v8, %v533_v9  ;;  %v6111_v19 = vcombine.low %v528_v6, %v532_v7  ;;  %v6113_v20 = vcombine.low %v529_v8, %v533_v9  ;;  %v585_v6 = vld [vmem:[#allocation5 + $0x4d8] sm:$0xff] }
 0x1a9   : > { %2879 = vmatmul.mubr.bf16.gmra.mrb[8].mxu0 %v7284_v11  ;;  %3218 = vmatmul.mubr.bf16.gmra.mrb[8].mxu1 %v7284_v11  ;;  %v6105_v11 = vcombine.low %v521_v0, %v525_v1  ;;  %v589_v7 = vld [vmem:[#allocation5 + $0x4f8] sm:$0xff]  ;;  %v6161_v9 = vcombine.low %v577_v61, %v581_v62 }
 0x1aa   : > { %3287 = vmatpush1.bf16.msra.mxu0 %v6047_v14  ;;  %3626 = vmatpush1.bf16.msra.mxu1 %v6049_v15  ;;  %v536_v14 = vld [vmem:[#allocation5 + $0x350] sm:$0xff] }
 0x1ab   : > { %3288 = vmatprep.subr.bf16.mxu0 %v6056_v16  ;;  %3627 = vmatprep.subr.bf16.mxu1 %v6058_v17  ;;  %v540_v15 = vld [vmem:[#allocation5 + $0x370] sm:$0xff]  ;;  %v537_v17 = vld [vmem:[#allocation5 + $0x358] sm:$0xff] }
 0x1ac   : > { %2888 = vmatprep.mubr.bf16.mxu0 %v8046_v38  ;;  %3227 = vmatprep.mubr.bf16.mxu1 %v8046_v38  ;;  %v7288_v16 = vld [vmem:[%s8339_s22 + $0x100] ss:$20 sps:$4 sm:$0xff]   ;;  %v6120_v21 = vcombine.high %v536_v14, %v540_v15  ;;  %v6119_v27 = vcombine.low %v536_v14, %v540_v15  ;;  %v7717_v14 = vld [vmem:[%s8339_s22 + $0x28] ss:$20 sps:$4 sm:$0xff]  }
 0x1ad   : > { %v593_v15 = vld [vmem:[#allocation5 + $0x518] sm:$0xff] }
 0x1ae   : > { %3289 = vmatpush1.bf16.msra.mxu0 %v6055_v22  ;;  %3628 = vmatpush1.bf16.msra.mxu1 %v6057_v23  ;;  %v6122_v22 = vcombine.high %v537_v17, %v541_v18  ;;  %v544_v23 = vld [vmem:[#allocation5 + $0x390] sm:$0xff] }
 0x1af   : > { %3290 = vmatprep.subr.bf16.mxu0 %v6064_v24  ;;  %3629 = vmatprep.subr.bf16.mxu1 %v6066_v25  ;;  %v548_v24 = vld [vmem:[#allocation5 + $0x3b0] sm:$0xff]  ;;  %v545_v25 = vld [vmem:[#allocation5 + $0x398] sm:$0xff] }
 0x1b0   : > { %v6128_v29 = vcombine.high %v544_v23, %v548_v24  ;;  %v6130_v30 = vcombine.high %v545_v25, %v549_v26  ;;  %v6127_v36 = vcombine.low %v544_v23, %v548_v24  ;;  %v6129_v37 = vcombine.low %v545_v25, %v549_v26  ;;  %v604_v23 = vld [vmem:[#allocation5 + $0x570] sm:$0xff]  ;;  %v601_v24 = vld [vmem:[#allocation5 + $0x558] sm:$0xff] }
 0x1b1   : > { %2889 = vmatmul.mubr.bf16.gmra.mrb[12].mxu0 %v7285_v28  ;;  %3228 = vmatmul.mubr.bf16.gmra.mrb[12].mxu1 %v7285_v28  ;;  %v6121_v28 = vcombine.low %v537_v17, %v541_v18  ;;  %v6169_v18 = vcombine.low %v585_v6, %v589_v7  ;;  %v605_v25 = vld [vmem:[#allocation5 + $0x578] sm:$0xff] }
 0x1b2   : > { %3291 = vmatpush1.bf16.msra.mxu0 %v6063_v31  ;;  %3630 = vmatpush1.bf16.msra.mxu1 %v6065_v32  ;;  %v552_v31 = vld [vmem:[#allocation5 + $0x3d0] sm:$0xff] }
 0x1b3   : > { %3292 = vmatprep.subr.bf16.mxu0 %v6072_v33  ;;  %3631 = vmatprep.subr.bf16.mxu1 %v6074_v34  ;;  %v556_v32 = vld [vmem:[#allocation5 + $0x3f0] sm:$0xff]  ;;  %v7289_v33 = vld [vmem:[%s8339_s22 + $0x128] ss:$20 sps:$4 sm:$0xff]  }
 0x1b4   : > { %2898 = vmatprep.mubr.bf16.mxu0 %v8046_v38  ;;  %3237 = vmatprep.mubr.bf16.mxu1 %v8046_v38  ;;  %v553_v34 = vld [vmem:[#allocation5 + $0x3d8] sm:$0xff]  ;;  %v6136_v39 = vcombine.high %v552_v31, %v556_v32  ;;  %v6135_v45 = vcombine.low %v552_v31, %v556_v32  ;;  %v612_v31 = vld [vmem:[#allocation5 + $0x5b0] sm:$0xff] }
 0x1b5   : > { %v7719_v32 = vld [vmem:[%s8339_s22 + $0x50] ss:$20 sps:$4 sm:$0xff]  }
 0x1b6   : > { %3293 = vmatpush1.bf16.msra.mxu0 %v6071_v40  ;;  %3632 = vmatpush1.bf16.msra.mxu1 %v6073_v41  ;;  %v6138_v40 = vcombine.high %v553_v34, %v557_v35  ;;  %v560_v41 = vld [vmem:[#allocation5 + $0x410] sm:$0xff] }
 0x1b7   : > { %3294 = vmatprep.subr.bf16.mxu0 %v6080_v42  ;;  %3633 = vmatprep.subr.bf16.mxu1 %v6082_v43  ;;  %v564_v42 = vld [vmem:[#allocation5 + $0x430] sm:$0xff]  ;;  %v561_v43 = vld [vmem:[#allocation5 + $0x418] sm:$0xff] }
 0x1b8   : > { %v6144_v47 = vcombine.high %v560_v41, %v564_v42  ;;  %v6143_v54 = vcombine.low %v560_v41, %v564_v42  ;;  %v6145_v55 = vcombine.low %v561_v43, %v565_v44  ;;  %v616_v41 = vld [vmem:[#allocation5 + $0x5d0] sm:$0xff] }
 0x1b9   : > { %2899 = vmatmul.mubr.bf16.gmra.mrb[16].mxu0 %v7286_v46  ;;  %3238 = vmatmul.mubr.bf16.gmra.mrb[16].mxu1 %v7286_v46  ;;  %v6137_v46 = vcombine.low %v553_v34, %v557_v35  ;;  %v613_v34 = vld [vmem:[#allocation5 + $0x5b8] sm:$0xff]  ;;  %v620_v42 = vld [vmem:[#allocation5 + $0x5f0] sm:$0xff] }
 0x1ba   : > { %3295 = vmatpush1.bf16.msra.mxu0 %v6079_v49  ;;  %3634 = vmatpush1.bf16.msra.mxu1 %v6081_v50  ;;  %v6146_v49 = vcombine.high %v561_v43, %v565_v44  ;;  %v568_v50 = vld [vmem:[#allocation5 + $0x450] sm:$0xff]  ;;  %v617_v43 = vld [vmem:[#allocation5 + $0x5d8] sm:$0xff] }
 0x1bb   : > { %3296 = vmatprep.subr.bf16.mxu0 %v6088_v51  ;;  %3635 = vmatprep.subr.bf16.mxu1 %v6090_v52  ;;  %v572_v51 = vld [vmem:[#allocation5 + $0x470] sm:$0xff]  ;;  %v569_v52 = vld [vmem:[#allocation5 + $0x458] sm:$0xff] }
 0x1bc   : > { %2908 = vmatprep.mubr.bf16.mxu0 %v8046_v38  ;;  %3247 = vmatprep.mubr.bf16.mxu1 %v8046_v38  ;;  %v6152_v56 = vcombine.high %v568_v50, %v572_v51  ;;  %v6153_v0 = vcombine.low %v569_v52, %v573_v53  ;;  %v621_v44 = vld [vmem:[#allocation5 + $0x5f8] sm:$0xff] }
 0x1be   : > { %3297 = vmatpush1.bf16.msra.mxu0 %v6087_v57  ;;  %3636 = vmatpush1.bf16.msra.mxu1 %v6089_v58  ;;  %v6154_v57 = vcombine.high %v569_v52, %v573_v53  ;;  %v576_v58 = vld [vmem:[#allocation5 + $0x490] sm:$0xff]  ;;  %v625_v52 = vld [vmem:[#allocation5 + $0x618] sm:$0xff] }
 0x1bf   : > { %3298 = vmatprep.subr.bf16.mxu0 %v6096_v59  ;;  %3637 = vmatprep.subr.bf16.mxu1 %v6098_v60  ;;  %v580_v59 = vld [vmem:[#allocation5 + $0x4b0] sm:$0xff]  ;;  %v629_v53 = vld [vmem:[#allocation5 + $0x638] sm:$0xff] }
 0x1c0   : > { %v7715_v60 = vld [vmem:[%s8339_s22] ss:$20 sps:$4 sm:$0xff]   ;;  %v6160_v1 = vcombine.high %v576_v58, %v580_v59  ;;  %v6159_v8 = vcombine.low %v576_v58, %v580_v59  ;;  %v6210_v58 = vcombine.high %v625_v52, %v629_v53 }
 0x1c1   : > { %2909 = vmatmul.mubr.bf16.gmra.mrb[20].mxu0 %v7287_v63  ;;  %3248 = vmatmul.mubr.bf16.gmra.mrb[20].mxu1 %v7287_v63  ;;  %v6151_v63 = vcombine.low %v568_v50, %v572_v51  ;;  %v628_v50 = vld [vmem:[#allocation5 + $0x630] sm:$0xff]  ;;  %v7721_v51 = vld [vmem:[%s8339_s22 + $0x78] ss:$20 sps:$4 sm:$0xff]  }
 0x1c2   : > { %3299 = vmatpush1.bf16.msra.mxu0 %v6095_v2  ;;  %3638 = vmatpush1.bf16.msra.mxu1 %v6097_v3  ;;  %v7716_v2 = vld [vmem:[%s8339_s22 + $0x2c] ss:$20 sps:$4 sm:$0xff]   ;;  %v6162_v3 = vcombine.high %v577_v61, %v581_v62  ;;  %v632_v59 = vld [vmem:[#allocation5 + $0x650] sm:$0xff]  ;;  %v633_v61 = vld [vmem:[#allocation5 + $0x658] sm:$0xff] }
 0x1c3   : > { %3300 = vmatprep.subr.bf16.mxu0 %v6104_v4  ;;  %3639 = vmatprep.subr.bf16.mxu1 %v6106_v5  ;;  %v584_v4 = vld [vmem:[#allocation5 + $0x4d0] sm:$0xff]  ;;  %v637_v62 = vld [vmem:[#allocation5 + $0x678] sm:$0xff] }
 0x1c4   : > { %2918 = vmatprep.mubr.bf16.mxu0 %v8046_v38  ;;  %3257 = vmatprep.mubr.bf16.mxu1 %v8046_v38  ;;  %v588_v5 = vld [vmem:[#allocation5 + $0x4f0] sm:$0xff] }
 0x1c5   : > { %v6167_v17 = vcombine.low %v584_v4, %v588_v5 }
 0x1c6   : > { %3301 = vmatpush1.bf16.msra.mxu0 %v6103_v10  ;;  %3640 = vmatpush1.bf16.msra.mxu1 %v6105_v11  ;;  %v6168_v10 = vcombine.high %v584_v4, %v588_v5  ;;  %v6170_v11 = vcombine.high %v585_v6, %v589_v7  ;;  %v644_v4 = vld [vmem:[#allocation5 + $0x6b0] sm:$0xff]  ;;  %v641_v6 = vld [vmem:[#allocation5 + $0x698] sm:$0xff] }
 0x1c7   : > { %3302 = vmatprep.subr.bf16.mxu0 %v6112_v12  ;;  %3641 = vmatprep.subr.bf16.mxu1 %v6114_v13  ;;  %v592_v12 = vld [vmem:[#allocation5 + $0x510] sm:$0xff]  ;;  %v645_v7 = vld [vmem:[#allocation5 + $0x6b8] sm:$0xff] }
 0x1c8   : > { %v596_v13 = vld [vmem:[#allocation5 + $0x530] sm:$0xff] }
 0x1c9   : > { %2919 = vmatmul.mubr.bf16.gmra.mrb[24].mxu0 %v7288_v16  ;;  %3258 = vmatmul.mubr.bf16.gmra.mrb[24].mxu1 %v7288_v16  ;;  %v597_v16 = vld [vmem:[#allocation5 + $0x538] sm:$0xff]  ;;  %v6175_v26 = vcombine.low %v592_v12, %v596_v13  ;;  %v7723_v5 = vld [vmem:[%s8339_s22 + $0xa0] ss:$20 sps:$4 sm:$0xff]  }
 0x1ca   : > { %3303 = vmatpush1.bf16.msra.mxu0 %v6111_v19  ;;  %3642 = vmatpush1.bf16.msra.mxu1 %v6113_v20  ;;  %v6176_v19 = vcombine.high %v592_v12, %v596_v13  ;;  %v7718_v20 = vld [vmem:[%s8339_s22 + $0x54] ss:$20 sps:$4 sm:$0xff]   ;;  %v6226_v12 = vcombine.high %v641_v6, %v645_v7 }
 0x1cb   : > { %3304 = vmatprep.subr.bf16.mxu0 %v6120_v21  ;;  %3643 = vmatprep.subr.bf16.mxu1 %v6122_v22  ;;  %v6178_v21 = vcombine.high %v593_v15, %v597_v16  ;;  %v600_v22 = vld [vmem:[#allocation5 + $0x550] sm:$0xff] }
 0x1cc   : > { %2928 = vmatprep.mubr.bf16.mxu0 %v8046_v38  ;;  %3267 = vmatprep.mubr.bf16.mxu1 %v8046_v38  ;;  %v6183_v35 = vcombine.low %v600_v22, %v604_v23  ;;  %v648_v13 = vld [vmem:[#allocation5 + $0x6d0] sm:$0xff] }
 0x1ce   : > { %3305 = vmatpush1.bf16.msra.mxu0 %v6119_v27  ;;  %3644 = vmatpush1.bf16.msra.mxu1 %v6121_v28  ;;  %v6177_v27 = vcombine.low %v593_v15, %v597_v16  ;;  %v6184_v28 = vcombine.high %v600_v22, %v604_v23  ;;  %v649_v15 = vld [vmem:[#allocation5 + $0x6d8] sm:$0xff]  ;;  %v660_v22 = vld [vmem:[#allocation5 + $0x730] sm:$0xff] }
 0x1cf   : > { %3306 = vmatprep.subr.bf16.mxu0 %v6128_v29  ;;  %3645 = vmatprep.subr.bf16.mxu1 %v6130_v30  ;;  %v6186_v29 = vcombine.high %v601_v24, %v605_v25  ;;  %v608_v30 = vld [vmem:[#allocation5 + $0x590] sm:$0xff]  ;;  %v653_v16 = vld [vmem:[#allocation5 + $0x6f8] sm:$0xff] }
 0x1d0   : > { %v7725_v23 = vld [vmem:[%s8339_s22 + $0xc8] ss:$20 sps:$4 sm:$0xff]  }
 0x1d1   : > { %2929 = vmatmul.mubr.bf16.gmra.mrb[28].mxu0 %v7289_v33  ;;  %3268 = vmatmul.mubr.bf16.gmra.mrb[28].mxu1 %v7289_v33  ;;  %v609_v33 = vld [vmem:[#allocation5 + $0x598] sm:$0xff] }
 0x1d2   : > { %3307 = vmatpush1.bf16.msra.mxu0 %v6127_v36  ;;  %3646 = vmatpush1.bf16.msra.mxu1 %v6129_v37  ;;  %v6185_v36 = vcombine.low %v601_v24, %v605_v25  ;;  %v6192_v37 = vcombine.high %v608_v30, %v612_v31  ;;  %v657_v24 = vld [vmem:[#allocation5 + $0x718] sm:$0xff] }
 0x1d3   : > { %3308 = vmatprep.subr.bf16.mxu0 %v6136_v39  ;;  %3647 = vmatprep.subr.bf16.mxu1 %v6138_v40  ;;  %v7720_v39 = vld [vmem:[%s8339_s22 + $0x7c] ss:$20 sps:$4 sm:$0xff]   ;;  %v6194_v40 = vcombine.high %v609_v33, %v613_v34 }
 0x1d4   : > { %3310 = vmatprep.mubr.bf16.mxu0 %v7714_v48  ;;  %3649 = vmatprep.mubr.bf16.mxu1 %v7714_v48  ;;  %v6202_v48 = vcombine.high %v617_v43, %v621_v44  ;;  %v661_v25 = vld [vmem:[#allocation5 + $0x738] sm:$0xff] }
 0x1d6   : > { %3309 = vmatpush1.bf16.msra.mxu0 %v6135_v45  ;;  %3648 = vmatpush1.bf16.msra.mxu1 %v6137_v46  ;;  %v6191_v45 = vcombine.low %v608_v30, %v612_v31  ;;  %v6193_v46 = vcombine.low %v609_v33, %v613_v34  ;;  %v6242_v30 = vcombine.high %v657_v24, %v661_v25  ;;  %v664_v31 = vld [vmem:[#allocation5 + $0x750] sm:$0xff]  ;;  %v665_v33 = vld [vmem:[#allocation5 + $0x758] sm:$0xff] }
 0x1d7   : > { %3391 = vmatprep.subr.bf16.mxu0 %v6144_v47  ;;  %3730 = vmatprep.subr.bf16.mxu1 %v6146_v49  ;;  %v6200_v47 = vcombine.high %v616_v41, %v620_v42  ;;  %v624_v49 = vld [vmem:[#allocation5 + $0x610] sm:$0xff]  ;;  %v669_v34 = vld [vmem:[#allocation5 + $0x778] sm:$0xff] }
 0x1d9   : > { %3311 = vmatmul.mubr.bf16.vlgmr.msra.gmra.mrb[32].mxu0 %v7715_v60  ;;  %3650 = vmatmul.mubr.bf16.vlgmr.msra.gmra.mrb[32].mxu1 %v7715_v60  ;;  %v636_v60 = vld [vmem:[#allocation5 + $0x670] sm:$0xff] }
 0x1da   : > { %3392 = vmatpush1.bf16.msra.mxu0 %v6143_v54  ;;  %3731 = vmatpush1.bf16.msra.mxu1 %v6145_v55  ;;  %v6199_v54 = vcombine.low %v616_v41, %v620_v42  ;;  %v6201_v55 = vcombine.low %v617_v43, %v621_v44  ;;  %v676_v41 = vld [vmem:[#allocation5 + $0x7b0] sm:$0xff]  ;;  %v673_v43 = vld [vmem:[#allocation5 + $0x798] sm:$0xff] }
 0x1db   : > { %3393 = vmatprep.subr.bf16.mxu0 %v6152_v56  ;;  %3732 = vmatprep.subr.bf16.mxu1 %v6154_v57  ;;  %v6208_v56 = vcombine.high %v624_v49, %v628_v50  ;;  %v7722_v57 = vld [vmem:[%s8339_s22 + $0xa4] ss:$20 sps:$4 sm:$0xff]  }
 0x1dc   : > { %3320 = vmatprep.mubr.bf16.mxu0 %v7716_v2  ;;  %3659 = vmatprep.mubr.bf16.mxu1 %v7716_v2  ;;  %v6218_v2 = vcombine.high %v633_v61, %v637_v62  ;;  %v7727_v42 = vld [vmem:[%s8339_s22 + $0xf0] ss:$20 sps:$4 sm:$0xff]   ;;  %v677_v44 = vld [vmem:[#allocation5 + $0x7b8] sm:$0xff] }
 0x1de   : > { %3394 = vmatpush1.bf16.msra.mxu0 %v6151_v63  ;;  %3733 = vmatpush1.bf16.msra.mxu1 %v6153_v0  ;;  %v6207_v63 = vcombine.low %v624_v49, %v628_v50  ;;  %v6209_v0 = vcombine.low %v625_v52, %v629_v53  ;;  %v6258_v49 = vcombine.high %v673_v43, %v677_v44  ;;  %v680_v50 = vld [vmem:[#allocation5 + $0x7d0] sm:$0xff]  ;;  %v681_v52 = vld [vmem:[#allocation5 + $0x7d8] sm:$0xff] }
 0x1df   : > { %3395 = vmatprep.subr.bf16.mxu0 %v6160_v1  ;;  %3734 = vmatprep.subr.bf16.mxu1 %v6162_v3  ;;  %v6216_v1 = vcombine.high %v632_v59, %v636_v60  ;;  %v640_v3 = vld [vmem:[#allocation5 + $0x690] sm:$0xff]  ;;  %v685_v53 = vld [vmem:[#allocation5 + $0x7f8] sm:$0xff] }
 0x1e1   : > { %3321 = vmatmul.mubr.bf16.gmra.mrb[36].mxu0 %v7717_v14  ;;  %3660 = vmatmul.mubr.bf16.gmra.mrb[36].mxu1 %v7717_v14  ;;  %v652_v14 = vld [vmem:[#allocation5 + $0x6f0] sm:$0xff] }
 0x1e2   : > { %3396 = vmatpush1.bf16.msra.mxu0 %v6159_v8  ;;  %3735 = vmatpush1.bf16.msra.mxu1 %v6161_v9  ;;  %v6215_v8 = vcombine.low %v632_v59, %v636_v60  ;;  %v6217_v9 = vcombine.low %v633_v61, %v637_v62  ;;  %v692_v59 = vld [vmem:[#allocation5 + $0x830] sm:$0xff]  ;;  %v7729_v60 = vld [vmem:[%s8339_s22 + $0x118] ss:$20 sps:$4 sm:$0xff]  }
 0x1e3   : > { %3397 = vmatprep.subr.bf16.mxu0 %v6168_v10  ;;  %3736 = vmatprep.subr.bf16.mxu1 %v6170_v11  ;;  %v6224_v10 = vcombine.high %v640_v3, %v644_v4  ;;  %v7724_v11 = vld [vmem:[%s8339_s22 + $0xcc] ss:$20 sps:$4 sm:$0xff]   ;;  %v689_v61 = vld [vmem:[#allocation5 + $0x818] sm:$0xff] }
 0x1e4   : > { %3330 = vmatprep.mubr.bf16.mxu0 %v7718_v20  ;;  %3669 = vmatprep.mubr.bf16.mxu1 %v7718_v20  ;;  %v6234_v20 = vcombine.high %v649_v15, %v653_v16  ;;  %v693_v62 = vld [vmem:[#allocation5 + $0x838] sm:$0xff] }
 0x1e6   : > { %3398 = vmatpush1.bf16.msra.mxu0 %v6167_v17  ;;  %3737 = vmatpush1.bf16.msra.mxu1 %v6169_v18  ;;  %v6223_v17 = vcombine.low %v640_v3, %v644_v4  ;;  %v6225_v18 = vcombine.low %v641_v6, %v645_v7  ;;  %v6274_v3 = vcombine.high %v689_v61, %v693_v62  ;;  %v696_v4 = vld [vmem:[#allocation5 + $0x850] sm:$0xff]  ;;  %v697_v7 = vld [vmem:[#allocation5 + $0x858] sm:$0xff] }
 0x1e7   : > { %3399 = vmatprep.subr.bf16.mxu0 %v6176_v19  ;;  %3738 = vmatprep.subr.bf16.mxu1 %v6178_v21  ;;  %v6232_v19 = vcombine.high %v648_v13, %v652_v14  ;;  %v656_v21 = vld [vmem:[#allocation5 + $0x710] sm:$0xff] }
 0x1e9   : > { %3331 = vmatmul.mubr.bf16.gmra.mrb[40].mxu0 %v7719_v32  ;;  %3670 = vmatmul.mubr.bf16.gmra.mrb[40].mxu1 %v7719_v32  ;;  %v668_v32 = vld [vmem:[#allocation5 + $0x770] sm:$0xff] }
 0x1ea   : > { %3400 = vmatpush1.bf16.msra.mxu0 %v6175_v26  ;;  %3739 = vmatpush1.bf16.msra.mxu1 %v6177_v27  ;;  %v6231_v26 = vcombine.low %v648_v13, %v652_v14  ;;  %v6233_v27 = vcombine.low %v649_v15, %v653_v16  ;;  %v7731_v13 = vld [vmem:[%s8339_s22 + $0x8] ss:$20 sps:$4 sm:$0xff]  }
 0x1eb   : > { %3401 = vmatprep.subr.bf16.mxu0 %v6184_v28  ;;  %3740 = vmatprep.subr.bf16.mxu1 %v6186_v29  ;;  %v6240_v28 = vcombine.high %v656_v21, %v660_v22  ;;  %v7726_v29 = vld [vmem:[%s8339_s22 + $0xf4] ss:$20 sps:$4 sm:$0xff]   ;;  %v705_v15 = vld [vmem:[#allocation5 + $0x898] sm:$0xff] }
 0x1ec   : > { %3340 = vmatprep.mubr.bf16.mxu0 %v7720_v39  ;;  %3679 = vmatprep.mubr.bf16.mxu1 %v7720_v39  ;;  %v6250_v39 = vcombine.high %v665_v33, %v669_v34  ;;  %v709_v16 = vld [vmem:[#allocation5 + $0x8b8] sm:$0xff] }
 0x1ee   : > { %3402 = vmatpush1.bf16.msra.mxu0 %v6183_v35  ;;  %3741 = vmatpush1.bf16.msra.mxu1 %v6185_v36  ;;  %v6239_v35 = vcombine.low %v656_v21, %v660_v22  ;;  %v6241_v36 = vcombine.low %v657_v24, %v661_v25  ;;  %v6290_v21 = vcombine.high %v705_v15, %v709_v16  ;;  %v712_v22 = vld [vmem:[#allocation5 + $0x8d0] sm:$0xff]  ;;  %v713_v24 = vld [vmem:[#allocation5 + $0x8d8] sm:$0xff] }
 0x1ef   : > { %3403 = vmatprep.subr.bf16.mxu0 %v6192_v37  ;;  %3742 = vmatprep.subr.bf16.mxu1 %v6194_v40  ;;  %v6248_v37 = vcombine.high %v664_v31, %v668_v32  ;;  %v672_v40 = vld [vmem:[#allocation5 + $0x790] sm:$0xff]  ;;  %v717_v25 = vld [vmem:[#allocation5 + $0x8f8] sm:$0xff] }
 0x1f1   : > { %3341 = vmatmul.mubr.bf16.gmra.mrb[44].mxu0 %v7721_v51  ;;  %3680 = vmatmul.mubr.bf16.gmra.mrb[44].mxu1 %v7721_v51  ;;  %v684_v51 = vld [vmem:[#allocation5 + $0x7f0] sm:$0xff] }
 0x1f2   : > { %3404 = vmatpush1.bf16.msra.mxu0 %v6191_v45  ;;  %3743 = vmatpush1.bf16.msra.mxu1 %v6193_v46  ;;  %v6247_v45 = vcombine.low %v664_v31, %v668_v32  ;;  %v6249_v46 = vcombine.low %v665_v33, %v669_v34  ;;  %v720_v31 = vld [vmem:[#allocation5 + $0x910] sm:$0xff]  ;;  %v721_v34 = vld [vmem:[#allocation5 + $0x918] sm:$0xff] }
 0x1f3   : > { %3405 = vmatprep.subr.bf16.mxu0 %v6200_v47  ;;  %3744 = vmatprep.subr.bf16.mxu1 %v6202_v48  ;;  %v6256_v47 = vcombine.high %v672_v40, %v676_v41  ;;  %v7728_v48 = vld [vmem:[%s8339_s22 + $0x11c] ss:$20 sps:$4 sm:$0xff]  }
 0x1f4   : > { %3350 = vmatprep.mubr.bf16.mxu0 %v7722_v57  ;;  %3689 = vmatprep.mubr.bf16.mxu1 %v7722_v57  ;;  %v6266_v57 = vcombine.high %v681_v52, %v685_v53  ;;  %v724_v32 = vld [vmem:[#allocation5 + $0x930] sm:$0xff] }
 0x1f5   : > { %v7734_v33 = vld [vmem:[%s8339_s22 + $0x5c] ss:$20 sps:$4 sm:$0xff]  }
 0x1f6   : > { %3406 = vmatpush1.bf16.msra.mxu0 %v6199_v54  ;;  %3745 = vmatpush1.bf16.msra.mxu1 %v6201_v55  ;;  %v6255_v54 = vcombine.low %v672_v40, %v676_v41  ;;  %v6257_v55 = vcombine.low %v673_v43, %v677_v44  ;;  %v728_v41 = vld [vmem:[#allocation5 + $0x950] sm:$0xff]  ;;  %v729_v43 = vld [vmem:[#allocation5 + $0x958] sm:$0xff] }
 0x1f7   : > { %3407 = vmatprep.subr.bf16.mxu0 %v6208_v56  ;;  %3746 = vmatprep.subr.bf16.mxu1 %v6210_v58  ;;  %v6264_v56 = vcombine.high %v680_v50, %v684_v51  ;;  %v688_v58 = vld [vmem:[#allocation5 + $0x810] sm:$0xff]  ;;  %v733_v44 = vld [vmem:[#allocation5 + $0x978] sm:$0xff] }
 0x1f8   : > { %v6271_v6 = vcombine.low %v688_v58, %v692_v59 }
 0x1f9   : > { %3351 = vmatmul.mubr.bf16.gmra.mrb[48].mxu0 %v7723_v5  ;;  %3690 = vmatmul.mubr.bf16.gmra.mrb[48].mxu1 %v7723_v5  ;;  %v700_v5 = vld [vmem:[#allocation5 + $0x870] sm:$0xff] }
 0x1fa   : > { %3408 = vmatpush1.bf16.msra.mxu0 %v6207_v63  ;;  %3747 = vmatpush1.bf16.msra.mxu1 %v6209_v0  ;;  %v6263_v63 = vcombine.low %v680_v50, %v684_v51  ;;  %v6265_v0 = vcombine.low %v681_v52, %v685_v53  ;;  %v736_v50 = vld [vmem:[#allocation5 + $0x990] sm:$0xff]  ;;  %v7736_v52 = vld [vmem:[%s8339_s22 + $0x84] ss:$20 sps:$4 sm:$0xff]  }
 0x1fb   : > { %3409 = vmatprep.subr.bf16.mxu0 %v6216_v1  ;;  %3748 = vmatprep.subr.bf16.mxu1 %v6218_v2  ;;  %v6272_v1 = vcombine.high %v688_v58, %v692_v59  ;;  %v7730_v2 = vld [vmem:[%s8339_s22 + $0xc] ss:$20 sps:$4 sm:$0xff]   ;;  %v740_v51 = vld [vmem:[#allocation5 + $0x9b0] sm:$0xff]  ;;  %v737_v53 = vld [vmem:[#allocation5 + $0x998] sm:$0xff] }
 0x1fc   : > { %3360 = vmatprep.mubr.bf16.mxu0 %v7724_v11  ;;  %3699 = vmatprep.mubr.bf16.mxu1 %v7724_v11  ;;  %v704_v11 = vld [vmem:[#allocation5 + $0x890] sm:$0xff] }
 0x1fd   : > { %v744_v59 = vld [vmem:[#allocation5 + $0x9d0] sm:$0xff] }
 0x1fe   : > { %3410 = vmatpush1.bf16.msra.mxu0 %v6215_v8  ;;  %3749 = vmatpush1.bf16.msra.mxu1 %v6217_v9  ;;  %v701_v8 = vld [vmem:[#allocation5 + $0x878] sm:$0xff]  ;;  %v6273_v9 = vcombine.low %v689_v61, %v693_v62 }
 0x1ff   : > { %3411 = vmatprep.subr.bf16.mxu0 %v6224_v10  ;;  %3750 = vmatprep.subr.bf16.mxu1 %v6226_v12  ;;  %v6280_v10 = vcombine.high %v696_v4, %v700_v5  ;;  %v708_v12 = vld [vmem:[#allocation5 + $0x8b0] sm:$0xff]  ;;  %v6282_v14 = vcombine.high %v697_v7, %v701_v8  ;;  %v745_v61 = vld [vmem:[#allocation5 + $0x9d8] sm:$0xff] }
 0x200   : > { %v749_v62 = vld [vmem:[#allocation5 + $0x9f8] sm:$0xff] }
 0x201   : > { %3361 = vmatmul.mubr.bf16.gmra.mrb[52].mxu0 %v7725_v23  ;;  %3700 = vmatmul.mubr.bf16.gmra.mrb[52].mxu1 %v7725_v23  ;;  %v716_v23 = vld [vmem:[#allocation5 + $0x8f0] sm:$0xff] }
 0x202   : > { %3412 = vmatpush1.bf16.msra.mxu0 %v6223_v17  ;;  %3751 = vmatpush1.bf16.msra.mxu1 %v6225_v18  ;;  %v6279_v17 = vcombine.low %v696_v4, %v700_v5  ;;  %v7732_v18 = vld [vmem:[%s8339_s22 + $0x34] ss:$20 sps:$4 sm:$0xff]   ;;  %v7738_v4 = vld [vmem:[%s8339_s22 + $0xac] ss:$20 sps:$4 sm:$0xff]  }
 0x203   : > { %3413 = vmatprep.subr.bf16.mxu0 %v6232_v19  ;;  %3752 = vmatprep.subr.bf16.mxu1 %v6234_v20  ;;  %v6281_v19 = vcombine.low %v697_v7, %v701_v8  ;;  %v6288_v20 = vcombine.high %v704_v11, %v708_v12  ;;  %v7290_v7 = vld [vmem:[#allocation8 + $0x40] sm:$0xff]  }
 0x204   : > { %3370 = vmatprep.mubr.bf16.mxu0 %v7726_v29  ;;  %3709 = vmatprep.mubr.bf16.mxu1 %v7726_v29  ;;  %v7733_v29 = vld [vmem:[%s8339_s22 + $0x30] ss:$20 sps:$4 sm:$0xff]   ;;  %v7291_v8 = vld [vmem:[#allocation8 + $0xc0] sm:$0xff]  }
 0x206   : > { %3414 = vmatpush1.bf16.msra.mxu0 %v6231_v26  ;;  %3753 = vmatpush1.bf16.msra.mxu1 %v6233_v27  ;;  %v6287_v26 = vcombine.low %v704_v11, %v708_v12  ;;  %v6289_v27 = vcombine.low %v705_v15, %v709_v16  ;;  %v7741_v11 = vld [vmem:[%s8339_s22 + $0xd0] ss:$20 sps:$4 sm:$0xff]   ;;  %v7745_v15 = vld [vmem:[%s8339_s22 + $0x120] ss:$20 sps:$4 sm:$0xff]   ;;  %v7292_v16 = vld [vmem:[#allocation8] sm:$0xff]  }
 0x207   : > { %3415 = vmatprep.subr.bf16.mxu0 %v6240_v28  ;;  %3754 = vmatprep.subr.bf16.mxu1 %v6242_v30  ;;  %v6296_v28 = vcombine.high %v712_v22, %v716_v23  ;;  %v6298_v30 = vcombine.high %v713_v24, %v717_v25  ;;  %v7742_v12 = vld [vmem:[%s8339_s22 + $0xfc] ss:$20 sps:$4 sm:$0xff]  }
 0x209   : > { %3371 = vmatmul.mubr.bf16.gmra.mrb[56].mxu0 %v7727_v42  ;;  %3710 = vmatmul.mubr.bf16.gmra.mrb[56].mxu1 %v7727_v42  ;;  %v732_v42 = vld [vmem:[#allocation5 + $0x970] sm:$0xff] }
 0x20a   : > { %3416 = vmatpush1.bf16.msra.mxu0 %v6239_v35  ;;  %3755 = vmatpush1.bf16.msra.mxu1 %v6241_v36  ;;  %v725_v35 = vld [vmem:[#allocation5 + $0x938] sm:$0xff]  ;;  %v6295_v36 = vcombine.low %v712_v22, %v716_v23  ;;  %v7297_v22 = vld [vmem:[#allocation8 + $0x88] sm:$0xff]  }
 0x20b   : > { %3417 = vmatprep.subr.bf16.mxu0 %v6248_v37  ;;  %3756 = vmatprep.subr.bf16.mxu1 %v6250_v39  ;;  %v6297_v37 = vcombine.low %v713_v24, %v717_v25  ;;  %v6304_v39 = vcombine.high %v720_v31, %v724_v32  ;;  %v6306_v40 = vcombine.high %v721_v34, %v725_v35  ;;  %v7298_v23 = vld [vmem:[#allocation8 + $0x50] sm:$0xff]   ;;  %v752_v24 = vlaneseq }
 0x20c   : > { %3380 = vmatprep.mubr.bf16.mxu0 %v7728_v48  ;;  %3719 = vmatprep.mubr.bf16.mxu1 %v7728_v48  ;;  %v7735_v48 = vld [vmem:[%s8339_s22 + $0x58] ss:$20 sps:$4 sm:$0xff]  }
 0x20d   : > { %v7299_v25 = vld [vmem:[#allocation8 + $0xd0] sm:$0xff]  }
 0x20e   : > { %3418 = vmatpush1.bf16.msra.mxu0 %v6247_v45  ;;  %3757 = vmatpush1.bf16.msra.mxu1 %v6249_v46  ;;  %v6303_v45 = vcombine.low %v720_v31, %v724_v32  ;;  %v6305_v46 = vcombine.low %v721_v34, %v725_v35  ;;  %v7303_v31 = vld [vmem:[#allocation8 + $0xd8] sm:$0xff]   ;;  %v7306_v34 = vld [vmem:[#allocation8 + $0x60] sm:$0xff]  }
 0x20f   : > { %3419 = vmatprep.subr.bf16.mxu0 %v6256_v47  ;;  %3758 = vmatprep.subr.bf16.mxu1 %v6258_v49  ;;  %v6312_v47 = vcombine.high %v728_v41, %v732_v42  ;;  %v6314_v49 = vcombine.high %v729_v43, %v733_v44  ;;  %v7304_v32 = vld [vmem:[#allocation8 + $0x18] sm:$0xff]  }
 0x211   : > { %3381 = vmatmul.mubr.bf16.gmra.mrb[60].mxu0 %v7729_v60  ;;  %3720 = vmatmul.mubr.bf16.gmra.mrb[60].mxu1 %v7729_v60  ;;  %v748_v60 = vld [vmem:[#allocation5 + $0x9f0] sm:$0xff] }
 0x212   : > { %3420 = vmatpush1.bf16.msra.mxu0 %v6255_v54  ;;  %3759 = vmatpush1.bf16.msra.mxu1 %v6257_v55  ;;  %v741_v54 = vld [vmem:[#allocation5 + $0x9b8] sm:$0xff]  ;;  %v6311_v55 = vcombine.low %v728_v41, %v732_v42  ;;  %v6327_v5 = vcombine.low %v744_v59, %v748_v60  ;;  %v7308_v42 = vld [vmem:[#allocation8 + $0x20] sm:$0xff]  }
 0x213   : > { %3421 = vmatprep.subr.bf16.mxu0 %v6264_v56  ;;  %3760 = vmatprep.subr.bf16.mxu1 %v6266_v57  ;;  %v6313_v56 = vcombine.low %v729_v43, %v733_v44  ;;  %v6320_v57 = vcombine.high %v736_v50, %v740_v51  ;;  %v6322_v58 = vcombine.high %v737_v53, %v741_v54  ;;  %v7309_v43 = vld [vmem:[#allocation8 + $0xa0] sm:$0xff]   ;;  %v7310_v44 = vld [vmem:[#allocation8 + $0x68] sm:$0xff]  }
 0x214   : > { %3423 = vmatprep.mubr.bf16.mxu0 %v7730_v2  ;;  %3762 = vmatprep.mubr.bf16.mxu1 %v7730_v2  ;;  %v7737_v2 = vld [vmem:[%s8339_s22 + $0x80] ss:$20 sps:$4 sm:$0xff]  }
 0x216   : > { %3422 = vmatpush1.bf16.msra.mxu0 %v6263_v63  ;;  %3761 = vmatpush1.bf16.msra.mxu1 %v6265_v0  ;;  %v6319_v63 = vcombine.low %v736_v50, %v740_v51  ;;  %v6321_v0 = vcombine.low %v737_v53, %v741_v54  ;;  %v7312_v51 = vld [vmem:[#allocation8 + $0x28] sm:$0xff]   ;;  %v7314_v54 = vld [vmem:[#allocation8 + $0x70] sm:$0xff]  }
 0x217   : > { %3504 = vmatprep.subr.bf16.mxu0 %v6272_v1  ;;  %3843 = vmatprep.subr.bf16.mxu1 %v6274_v3  ;;  %v6328_v1 = vcombine.high %v744_v59, %v748_v60  ;;  %v6330_v3 = vcombine.high %v745_v61, %v749_v62  ;;  %v7313_v53 = vld [vmem:[#allocation8 + $0xa8] sm:$0xff]  }
 0x219   : > { %3424 = vmatmul.mubr.bf16.vlgmr.msra.gmra.mrb[32].mxu0 %v7731_v13  ;;  %3763 = vmatmul.mubr.bf16.vlgmr.msra.gmra.mrb[32].mxu1 %v7731_v13  ;;  %v7743_v13 = vld [vmem:[%s8339_s22 + $0xf8] ss:$20 sps:$4 sm:$0xff]  }
 0x21a   : > { %3505 = vmatpush1.bf16.msra.mxu0 %v6271_v6  ;;  %3844 = vmatpush1.bf16.msra.mxu1 %v6273_v9  ;;  %v6329_v6 = vcombine.low %v745_v61, %v749_v62  ;;  %v7739_v9 = vld [vmem:[%s8339_s22 + $0xa8] ss:$20 sps:$4 sm:$0xff]  }
 0x21b   : > { %3433 = vmatprep.mubr.bf16.mxu0 %v7732_v18  ;;  %3772 = vmatprep.mubr.bf16.mxu1 %v7732_v18  ;;  %v7294_v18 = vld [vmem:[#allocation8 + $0x48] sm:$0xff]  }
 0x21c   : > { %3506 = vmatprep.subr.bf16.mxu0 %v6280_v10  ;;  %3845 = vmatprep.subr.bf16.mxu1 %v6282_v14  ;;  %v7740_v10 = vld [vmem:[%s8339_s22 + $0xd4] ss:$20 sps:$4 sm:$0xff]   ;;  %v7744_v14 = vld [vmem:[%s8339_s22 + $0x124] ss:$20 sps:$4 sm:$0xff]  }
 0x21e   : > { %3507 = vmatpush1.bf16.msra.mxu0 %v6279_v17  ;;  %3846 = vmatpush1.bf16.msra.mxu1 %v6281_v19  ;;  %v7293_v17 = vld [vmem:[#allocation8 + $0x80] sm:$0xff]   ;;  %v7746_v19 = vld [vmem:[%s8339_s22 + $0x10] ss:$20 sps:$4 sm:$0xff]  }
 0x21f   : > { %3508 = vmatprep.subr.bf16.mxu0 %v6288_v20  ;;  %3847 = vmatprep.subr.bf16.mxu1 %v6290_v21  ;;  %v7295_v20 = vld [vmem:[#allocation8 + $0xc8] sm:$0xff]  }
 0x220   : > { %v7296_v21 = vld [vmem:[#allocation8 + $0x8] sm:$0xff]  }
 0x221   : > { %3434 = vmatmul.mubr.bf16.gmra.mrb[36].mxu0 %v7733_v29  ;;  %3773 = vmatmul.mubr.bf16.gmra.mrb[36].mxu1 %v7733_v29  ;;  %v7747_v29 = vld [vmem:[%s8339_s22 + $0x38] ss:$20 sps:$4 sm:$0xff]  }
 0x222   : > { %3443 = vmatprep.mubr.bf16.mxu0 %v7734_v33  ;;  %3782 = vmatprep.mubr.bf16.mxu1 %v7734_v33  ;;  %v7305_v33 = vld [vmem:[#allocation8 + $0x98] sm:$0xff]  }
 0x223   : > { %3509 = vmatpush1.bf16.msra.mxu0 %v6287_v26  ;;  %3848 = vmatpush1.bf16.msra.mxu1 %v6289_v27  ;;  %v7300_v26 = vld [vmem:[#allocation8 + $0x10] sm:$0xff]  }
 0x224   : > { %3510 = vmatprep.subr.bf16.mxu0 %v6296_v28  ;;  %3849 = vmatprep.subr.bf16.mxu1 %v6298_v30  ;;  %v7301_v27 = vld [vmem:[#allocation8 + $0x90] sm:$0xff]   ;;  %v7302_v28 = vld [vmem:[#allocation8 + $0x58] sm:$0xff]   ;;  %v8459_v30 = vshrl.u32 %v752_v24, 7 }
 0x226   : > { %9383 = vst [vmem:[#allocation20_spill] sm:$0xff] %v8459_v30  ;;  %v754_v35 = vsub.s32 0, %v8459_v30  ;;  %v766_v41 = vsub.s32 3, %v8459_v30 }
 0x227   : > { %3511 = vmatpush1.bf16.msra.mxu0 %v6295_v36  ;;  %3850 = vmatpush1.bf16.msra.mxu1 %v6297_v37  ;;  %v7307_v36 = vld [vmem:[#allocation8 + $0xe0] sm:$0xff]   ;;  %v750_v37 = vld [vmem:[#allocation7] sm:$0xff] }
 0x228   : > { %3512 = vmatprep.subr.bf16.mxu0 %v6304_v39  ;;  %3851 = vmatprep.subr.bf16.mxu1 %v6306_v40  ;;  %v762_v39 = vsub.s32 2, %v8459_v30  ;;  %v758_v40 = vsub.s32 1, %v8459_v30  ;;  %v8475_v50 = vrot.slane %v750_v37, %v766_v41 }
 0x229   : > { %3444 = vmatmul.mubr.bf16.gmra.mrb[40].mxu0 %v7735_v48  ;;  %3783 = vmatmul.mubr.bf16.gmra.mrb[40].mxu1 %v7735_v48 }
 0x22a   : > { %3453 = vmatprep.mubr.bf16.mxu0 %v7736_v52  ;;  %3792 = vmatprep.mubr.bf16.mxu1 %v7736_v52  ;;  %v8470_v48 = vrot.slane %v750_v37, %v762_v39 }
 0x22b   : > { %3513 = vmatpush1.bf16.msra.mxu0 %v6303_v45  ;;  %3852 = vmatpush1.bf16.msra.mxu1 %v6305_v46  ;;  %v7748_v45 = vld [vmem:[%s8339_s22 + $0x60] ss:$20 sps:$4 sm:$0xff]   ;;  %v8468_v46 = vrot.slane %v750_v37, %v754_v35 }
 0x22c   : > { %3514 = vmatprep.subr.bf16.mxu0 %v6312_v47  ;;  %3853 = vmatprep.subr.bf16.mxu1 %v6314_v49  ;;  %v7311_v47 = vld [vmem:[#allocation8 + $0xe8] sm:$0xff]   ;;  %v8472_v49 = vrot.slane %v750_v37, %v758_v40 }
 0x22f   : > { %3515 = vmatpush1.bf16.msra.mxu0 %v6311_v55  ;;  %3854 = vmatpush1.bf16.msra.mxu1 %v6313_v56 }
 0x230   : > { %3516 = vmatprep.subr.bf16.mxu0 %v6320_v57  ;;  %3855 = vmatprep.subr.bf16.mxu1 %v6322_v58  ;;  %v7315_v58 = vld [vmem:[#allocation8 + $0xf0] sm:$0xff]  }
 0x231   : > { %3454 = vmatmul.mubr.bf16.gmra.mrb[44].mxu0 %v7737_v2  ;;  %3793 = vmatmul.mubr.bf16.gmra.mrb[44].mxu1 %v7737_v2 }
 0x232   : > { %3463 = vmatprep.mubr.bf16.mxu0 %v7738_v4  ;;  %3802 = vmatprep.mubr.bf16.mxu1 %v7738_v4  ;;  %v7316_v4 = vld [vmem:[#allocation8 + $0x30] sm:$0xff]  }
 0x233   : > { %3517 = vmatpush1.bf16.msra.mxu0 %v6319_v63  ;;  %3856 = vmatpush1.bf16.msra.mxu1 %v6321_v0 }
 0x234   : > { %3518 = vmatprep.subr.bf16.mxu0 %v6328_v1  ;;  %3857 = vmatprep.subr.bf16.mxu1 %v6330_v3 }
 0x237   : > { %3519 = vmatpush1.bf16.msra.mxu0 %v6327_v5  ;;  %3858 = vmatpush1.bf16.msra.mxu1 %v6329_v6 }
 0x238   : > { %6411 = vmatprep.subr.bf16.mxu0 %v7290_v7  ;;  %6475 = vmatprep.subr.bf16.mxu1 %v7291_v8 }
 0x239   : > { %3464 = vmatmul.mubr.bf16.gmra.mrb[48].mxu0 %v7739_v9  ;;  %3803 = vmatmul.mubr.bf16.gmra.mrb[48].mxu1 %v7739_v9 }
 0x23a   : > { %3473 = vmatprep.mubr.bf16.mxu0 %v7740_v10  ;;  %3812 = vmatprep.mubr.bf16.mxu1 %v7740_v10  ;;  %v7317_v10 = vld [vmem:[#allocation8 + $0xb0] sm:$0xff]  }
 0x241   : > { %3474 = vmatmul.mubr.bf16.gmra.mrb[52].mxu0 %v7741_v11  ;;  %3813 = vmatmul.mubr.bf16.gmra.mrb[52].mxu1 %v7741_v11  ;;  %v7318_v11 = vld [vmem:[#allocation8 + $0x78] sm:$0xff]  }
 0x242   : > { %3483 = vmatprep.mubr.bf16.mxu0 %v7742_v12  ;;  %3822 = vmatprep.mubr.bf16.mxu1 %v7742_v12 }
 0x249   : > { %3484 = vmatmul.mubr.bf16.gmra.mrb[56].mxu0 %v7743_v13  ;;  %3823 = vmatmul.mubr.bf16.gmra.mrb[56].mxu1 %v7743_v13 }
 0x24a   : > { %3493 = vmatprep.mubr.bf16.mxu0 %v7744_v14  ;;  %3832 = vmatprep.mubr.bf16.mxu1 %v7744_v14 }
 0x251   : > { %3494 = vmatmul.mubr.bf16.gmra.mrb[60].mxu0 %v7745_v15  ;;  %3833 = vmatmul.mubr.bf16.gmra.mrb[60].mxu1 %v7745_v15  ;;  %v7749_v15 = vld [vmem:[%s8339_s22 + $0x88] ss:$20 sps:$4 sm:$0xff]  }
 0x252   : > { %3536 = vmatprep.mubr.bf16.mxu0 %v8046_v38  ;;  %3875 = vmatprep.mubr.bf16.mxu1 %v8046_v38 }
 0x259   : > { %3537 = vmatmul.mubr.bf16.vlgmr.msra.gmra.mrb[32].mxu0 %v7746_v19  ;;  %3876 = vmatmul.mubr.bf16.vlgmr.msra.gmra.mrb[32].mxu1 %v7746_v19  ;;  %v7320_v19 = vld [vmem:[#allocation8 + $0x38] sm:$0xff]  }
 0x25a   : > { %3546 = vmatprep.mubr.bf16.mxu0 %v8046_v38  ;;  %3885 = vmatprep.mubr.bf16.mxu1 %v8046_v38 }
 0x25b   : > { %6412 = vmatpush3.bf16.msra.mxu0 %v7292_v16  ;;  %6476 = vmatpush3.bf16.msra.mxu1 %v7293_v17  ;;  %v7319_v16 = vld [vmem:[#allocation8 + $0xf8] sm:$0xff]  }
 0x25c   : > { %6413 = vmatprep.subr.bf16.mxu0 %v7294_v18  ;;  %6477 = vmatprep.subr.bf16.mxu1 %v7295_v20 }
 0x25f   : > { %6414 = vmatpush3.bf16.msra.mxu0 %v7296_v21  ;;  %6478 = vmatpush3.bf16.msra.mxu1 %v7297_v22  ;;  %v7321_v22 = vld [vmem:[#allocation8 + $0xb8] sm:$0xff]  }
 0x260   : > { %6415 = vmatprep.subr.bf16.mxu0 %v7298_v23  ;;  %6479 = vmatprep.subr.bf16.mxu1 %v7299_v25  ;;  %v7322_v23 = vld [vmem:[#allocation8 + $0x140] sm:$0xff]  }
 0x261   : > { %3547 = vmatmul.mubr.bf16.gmra.mrb[36].mxu0 %v7747_v29  ;;  %3886 = vmatmul.mubr.bf16.gmra.mrb[36].mxu1 %v7747_v29 }
 0x262   : > { %3556 = vmatprep.mubr.bf16.mxu0 %v8046_v38  ;;  %3895 = vmatprep.mubr.bf16.mxu1 %v8046_v38 }
 0x263   : > { %6416 = vmatpush3.bf16.msra.mxu0 %v7300_v26  ;;  %6480 = vmatpush3.bf16.msra.mxu1 %v7301_v27  ;;  %v7324_v27 = vld [vmem:[#allocation8 + $0x1c0] sm:$0xff]  }
 0x264   : > { %6417 = vmatprep.subr.bf16.mxu0 %v7302_v28  ;;  %6481 = vmatprep.subr.bf16.mxu1 %v7303_v31 }
 0x267   : > { %6418 = vmatpush3.bf16.msra.mxu0 %v7304_v32  ;;  %6482 = vmatpush3.bf16.msra.mxu1 %v7305_v33 }
 0x268   : > { %6419 = vmatprep.subr.bf16.mxu0 %v7306_v34  ;;  %6483 = vmatprep.subr.bf16.mxu1 %v7307_v36 }
 0x269   : > { %3557 = vmatmul.mubr.bf16.gmra.mrb[40].mxu0 %v7748_v45  ;;  %3896 = vmatmul.mubr.bf16.gmra.mrb[40].mxu1 %v7748_v45 }
 0x26a   : > { %3566 = vmatprep.mubr.bf16.mxu0 %v8046_v38  ;;  %3905 = vmatprep.mubr.bf16.mxu1 %v8046_v38 }
 0x26b   : > { %6420 = vmatpush3.bf16.msra.mxu0 %v7308_v42  ;;  %6484 = vmatpush3.bf16.msra.mxu1 %v7309_v43 }
 0x26c   : > { %v2860_v52 = vpop.f32.mrb[0].mxu0  ;;  %6421 = vmatprep.subr.bf16.mxu0 %v7310_v44  ;;  %v3199_v56 = vpop.f32.mrb[0].mxu1  ;;  %6485 = vmatprep.subr.bf16.mxu1 %v7311_v47  ;;  %v7750_v47 = vld [vmem:[%s8339_s22 + $0xb0] ss:$20 sps:$4 sm:$0xff]  }
 0x26d   : > { %v6731_v55 = vadd.f32 %v2860_v52, %v8468_v46  ;;  %v2862_v57 = vpop.f32.mrb[1].mxu0  ;;  %v6763_v59 = vadd.f32 %v3199_v56, %v8470_v48  ;;  %v3201_v61 = vpop.f32.mrb[1].mxu1 }
 0x26e   : > { %v6732_v60 = vadd.f32 %v2862_v57, %v8472_v49  ;;  %v2864_v62 = vpop.f32.mrb[2].mxu0  ;;  %v6764_v0 = vadd.f32 %v3201_v61, %v8475_v50  ;;  %v3203_v2 = vpop.f32.mrb[2].mxu1 }
 0x26f   : > { %v3956_v63 = vmul.f32 0.5, %v6731_v55  ;;  %v6733_v1 = vadd.f32 %v2864_v62, %v8468_v46  ;;  %v2866_v3 = vpop.f32.mrb[3].mxu0  ;;  %6422 = vmatpush3.bf16.msra.mxu0 %v7312_v51  ;;  %v3958_v5 = vmul.f32 0.5, %v6763_v59  ;;  %v6765_v7 = vadd.f32 %v3203_v2, %v8470_v48  ;;  %v3205_v9 = vpop.f32.mrb[3].mxu1  ;;  %6486 = vmatpush3.bf16.msra.mxu1 %v7313_v53 }
 0x270   : > { %v3957_v6 = vmul.f32 0.5, %v6732_v60  ;;  %v6734_v8 = vadd.f32 %v2866_v3, %v8472_v49  ;;  %6423 = vmatprep.subr.bf16.mxu0 %v7314_v54  ;;  %v3959_v12 = vmul.f32 0.5, %v6764_v0  ;;  %v6766_v14 = vadd.f32 %v3205_v9, %v8475_v50  ;;  %6487 = vmatprep.subr.bf16.mxu1 %v7315_v58 }
 0x271   : > { %7362 = vtanh.f32 %v3956_v63  ;;  %v3964_v13 = vmul.f32 0.5, %v6733_v1  ;;  %3567 = vmatmul.mubr.bf16.gmra.mrb[44].mxu0 %v7749_v15  ;;  %v3966_v17 = vmul.f32 0.5, %v6765_v7  ;;  %3906 = vmatmul.mubr.bf16.gmra.mrb[44].mxu1 %v7749_v15 }
 0x272   : > { %7364 = vtanh.f32 %v3958_v5  ;;  %3576 = vmatprep.mubr.bf16.mxu0 %v8046_v38  ;;  %v3965_v18 = vmul.f32 0.5, %v6734_v8  ;;  %3915 = vmatprep.mubr.bf16.mxu1 %v8046_v38  ;;  %v3967_v20 = vmul.f32 0.5, %v6766_v14 }
 0x273   : > { %7366 = vtanh.f32 %v3957_v6  ;;  %6424 = vmatpush3.bf16.msra.mxu0 %v7316_v4  ;;  %6488 = vmatpush3.bf16.msra.mxu1 %v7317_v10 }
 0x274   : > { %7368 = vtanh.f32 %v3959_v12  ;;  %v2870_v21 = vpop.f32.mrb[4].mxu0  ;;  %6425 = vmatprep.subr.bf16.mxu0 %v7318_v11  ;;  %v3209_v25 = vpop.f32.mrb[4].mxu1  ;;  %6489 = vmatprep.subr.bf16.mxu1 %v7319_v16 }
 0x275   : > { %7370 = vtanh.f32 %v3964_v13  ;;  %v6735_v24 = vadd.f32 %v2870_v21, %v8468_v46  ;;  %v2872_v26 = vpop.f32.mrb[5].mxu0  ;;  %v6767_v28 = vadd.f32 %v3209_v25, %v8470_v48  ;;  %v3211_v31 = vpop.f32.mrb[5].mxu1  ;;  %v7751_v21 = vld [vmem:[%s8339_s22 + $0xd8] ss:$20 sps:$4 sm:$0xff]  }
 0x276   : > { %7372 = vtanh.f32 %v3966_v17  ;;  %v6736_v29 = vadd.f32 %v2872_v26, %v8472_v49  ;;  %v2874_v32 = vpop.f32.mrb[6].mxu0  ;;  %v6768_v34 = vadd.f32 %v3211_v31, %v8475_v50  ;;  %v3213_v36 = vpop.f32.mrb[6].mxu1 }
 0x277   : > { %7374 = vtanh.f32 %v3965_v18  ;;  %v3972_v33 = vmul.f32 0.5, %v6735_v24  ;;  %v6737_v35 = vadd.f32 %v2874_v32, %v8468_v46  ;;  %v2876_v37 = vpop.f32.mrb[7].mxu0  ;;  %6426 = vmatpush3.bf16.msra.mxu0 %v7320_v19  ;;  %v3974_v39 = vmul.f32 0.5, %v6767_v28  ;;  %v3215_v42 = vpop.f32.mrb[7].mxu1  ;;  %6490 = vmatpush3.bf16.msra.mxu1 %v7321_v22 }
 0x278   : > { %7376 = vtanh.f32 %v3967_v20  ;;  %v3973_v40 = vmul.f32 0.5, %v6736_v29  ;;  %v6769_v41 = vadd.f32 %v3213_v36, %v8470_v48  ;;  %6539 = vmatprep.subr.bf16.mxu0 %v7322_v23  ;;  %v3975_v43 = vmul.f32 0.5, %v6768_v34  ;;  %6603 = vmatprep.subr.bf16.mxu1 %v7324_v27 }
 0x279   : > { %7378 = vtanh.f32 %v3972_v33  ;;  %v3980_v44 = vmul.f32 0.5, %v6737_v35  ;;  %v6738_v45 = vadd.f32 %v2876_v37, %v8472_v49  ;;  %3577 = vmatmul.mubr.bf16.gmra.mrb[48].mxu0 %v7750_v47  ;;  %v6770_v52 = vadd.f32 %v3215_v42, %v8475_v50  ;;  %3916 = vmatmul.mubr.bf16.gmra.mrb[48].mxu1 %v7750_v47 }
 0x27a   : > { %7380 = vtanh.f32 %v3974_v39  ;;  %v3982_v51 = vmul.f32 0.5, %v6769_v41  ;;  %3586 = vmatprep.mubr.bf16.mxu0 %v8046_v38  ;;  %3925 = vmatprep.mubr.bf16.mxu1 %v8046_v38 }
 0x27b   : > { %v7363_v53 = vpop.eup %7362  ;;  %7382 = vtanh.f32 %v3973_v40  ;;  %v3981_v54 = vmul.f32 0.5, %v6738_v45  ;;  %v3983_v57 = vmul.f32 0.5, %v6770_v52 }
 0x27c   : > { %v7365_v55 = vpop.eup %7364  ;;  %v4212_v56 = vadd.f32 1.0, %v7363_v53  ;;  %7384 = vtanh.f32 %v3975_v43  ;;  %v2880_v58 = vpop.f32.mrb[8].mxu0 }
 0x27d   : > { %v7367_v59 = vpop.eup %7366  ;;  %v4214_v60 = vadd.f32 1.0, %v7365_v55  ;;  %7386 = vtanh.f32 %v3980_v44  ;;  %v6739_v61 = vadd.f32 %v2880_v58, %v8468_v46  ;;  %v3219_v62 = vpop.f32.mrb[8].mxu1 }
 0x27e   : > { %v2882_v63 = vpop.f32.mrb[9].mxu0  ;;  %v7369_v0 = vpop.eup %7368  ;;  %v8501_v1 = vmul.f32 0.5, %v4212_v56  ;;  %v4213_v2 = vadd.f32 1.0, %v7367_v59  ;;  %7388 = vtanh.f32 %v3982_v51  ;;  %v6771_v3 = vadd.f32 %v3219_v62, %v8470_v48 }
 0x27f   : > { %v3221_v4 = vpop.f32.mrb[9].mxu1  ;;  %v2884_v5 = vpop.f32.mrb[10].mxu0  ;;  %v8504_v7 = vmul.f32 0.5, %v4214_v60  ;;  %v4215_v8 = vadd.f32 1.0, %v7369_v0  ;;  %7390 = vtanh.f32 %v3981_v54  ;;  %v3988_v9 = vmul.f32 0.5, %v6739_v61 }
 0x280   : > { %v7371_v6 = vpop.eup %7370  ;;  %v3223_v10 = vpop.f32.mrb[10].mxu1  ;;  %v8506_v13 = vmul.f32 0.5, %v4213_v2  ;;  %7392 = vtanh.f32 %v3983_v57  ;;  %v3990_v15 = vmul.f32 0.5, %v6771_v3  ;;  %v6740_v20 = vadd.f32 %v2882_v63, %v8472_v49 }
 0x281   : > { %v2886_v11 = vpop.f32.mrb[11].mxu0  ;;  %v7373_v12 = vpop.eup %7372  ;;  %v4220_v14 = vadd.f32 1.0, %v7371_v6  ;;  %v8508_v18 = vmul.f32 0.5, %v4215_v8  ;;  %7394 = vtanh.f32 %v3988_v9  ;;  %3587 = vmatmul.mubr.bf16.gmra.mrb[52].mxu0 %v7751_v21  ;;  %v6772_v25 = vadd.f32 %v3221_v4, %v8475_v50  ;;  %3926 = vmatmul.mubr.bf16.gmra.mrb[52].mxu1 %v7751_v21 }
 0x282   : > { %v3225_v16 = vpop.f32.mrb[11].mxu1  ;;  %v7375_v17 = vpop.eup %7374  ;;  %v4222_v19 = vadd.f32 1.0, %v7373_v12  ;;  %7396 = vtanh.f32 %v3990_v15  ;;  %3596 = vmatprep.mubr.bf16.mxu0 %v8046_v38  ;;  %v3989_v29 = vmul.f32 0.5, %v6740_v20  ;;  %v6741_v31 = vadd.f32 %v2884_v5, %v8468_v46  ;;  %3935 = vmatprep.mubr.bf16.mxu1 %v8046_v38  ;;  %v7752_v12 = vld [vmem:[%s8339_s22 + $0x100] ss:$20 sps:$4 sm:$0xff]  }
 0x283   : > { %v7377_v22 = vpop.eup %7376  ;;  %v8512_v23 = vmul.f32 0.5, %v4220_v14  ;;  %v4221_v24 = vadd.f32 1.0, %v7375_v17  ;;  %v3991_v36 = vmul.f32 0.5, %v6772_v25  ;;  %v6773_v58 = vadd.f32 %v3223_v10, %v8470_v48 }
 0x284   : > { %v7379_v26 = vpop.eup %7378  ;;  %v8516_v27 = vmul.f32 0.5, %v4222_v19  ;;  %v4223_v28 = vadd.f32 1.0, %v7377_v22  ;;  %v2890_v37 = vpop.f32.mrb[12].mxu0  ;;  %7398 = vtanh.f32 %v3989_v29  ;;  %v3996_v52 = vmul.f32 0.5, %v6741_v31 }
 0x285   : > { %v7381_v32 = vpop.eup %7380  ;;  %v4468_v33 = vpack.c.bf16 %v8512_v23, %v8501_v1  ;;  %v8522_v34 = vmul.f32 0.5, %v4221_v24  ;;  %v4228_v35 = vadd.f32 1.0, %v7379_v26  ;;  %v3229_v43 = vpop.f32.mrb[12].mxu1  ;;  %7400 = vtanh.f32 %v3991_v36  ;;  %v7329_v1 = vld [vmem:[#allocation8 + $0x188] sm:$0xff]  }
 0x286   : > { %v7383_v39 = vpop.eup %7382  ;;  %v4470_v40 = vpack.c.bf16 %v8516_v27, %v8504_v7  ;;  %v8526_v41 = vmul.f32 0.5, %v4223_v28  ;;  %v4230_v42 = vadd.f32 1.0, %v7381_v32  ;;  %v2892_v44 = vpop.f32.mrb[13].mxu0  ;;  %v6742_v59 = vadd.f32 %v2886_v11, %v8472_v49 }
 0x287   : > { %v7385_v45 = vpop.eup %7384  ;;  %v8528_v47 = vmul.f32 0.5, %v4228_v35  ;;  %v4229_v51 = vadd.f32 1.0, %v7383_v39  ;;  %v3231_v53 = vpop.f32.mrb[13].mxu1  ;;  %7402 = vtanh.f32 %v3996_v52  ;;  %v6774_v2 = vadd.f32 %v3225_v16, %v8475_v50 }
 0x288   : > { %v2894_v54 = vpop.f32.mrb[14].mxu0  ;;  %v7387_v55 = vpop.eup %7386  ;;  %v8530_v56 = vmul.f32 0.5, %v4230_v42  ;;  %v4231_v57 = vadd.f32 1.0, %v7385_v45  ;;  %v3998_v8 = vmul.f32 0.5, %v6773_v58  ;;  %v3997_v9 = vmul.f32 0.5, %v6742_v59 }
 0x289   : > { %v3233_v60 = vpop.f32.mrb[14].mxu1  ;;  %v2896_v61 = vpop.f32.mrb[15].mxu0  ;;  %v8534_v63 = vmul.f32 0.5, %v4229_v51  ;;  %v4236_v0 = vadd.f32 1.0, %v7387_v55  ;;  %3597 = vmatmul.mubr.bf16.gmra.mrb[56].mxu0 %v7752_v12  ;;  %v3999_v15 = vmul.f32 0.5, %v6774_v2  ;;  %v6743_v17 = vadd.f32 %v2890_v37, %v8468_v46  ;;  %3936 = vmatmul.mubr.bf16.gmra.mrb[56].mxu1 %v7752_v12 }
 0x28a   : > { %v7389_v62 = vpop.eup %7388  ;;  %v3235_v3 = vpop.f32.mrb[15].mxu1  ;;  %v8537_v5 = vmul.f32 0.5, %v4231_v57  ;;  %3606 = vmatprep.mubr.bf16.mxu0 %v8046_v38  ;;  %7404 = vtanh.f32 %v3998_v8  ;;  %v6775_v21 = vadd.f32 %v3229_v43, %v8470_v48  ;;  %3945 = vmatprep.mubr.bf16.mxu1 %v8046_v38  ;;  %v6744_v39 = vadd.f32 %v2892_v44, %v8472_v49  ;;  %v7753_v12 = vld [vmem:[%s8339_s22 + $0x128] ss:$20 sps:$4 sm:$0xff]  }
 0x28b   : > { %v7391_v4 = vpop.eup %7390  ;;  %v4238_v6 = vadd.f32 1.0, %v7389_v62  ;;  %v8540_v11 = vmul.f32 0.5, %v4236_v0  ;;  %7406 = vtanh.f32 %v3997_v9  ;;  %v4004_v26 = vmul.f32 0.5, %v6743_v17 }
 0x28c   : > { %v7393_v10 = vpop.eup %7392  ;;  %v4237_v14 = vadd.f32 1.0, %v7391_v4  ;;  %v2900_v28 = vpop.f32.mrb[16].mxu0  ;;  %7408 = vtanh.f32 %v3999_v15  ;;  %v4006_v32 = vmul.f32 0.5, %v6775_v21  ;;  %v6776_v38 = vadd.f32 %v3231_v53, %v8475_v50 }
 0x28d   : > { %v7395_v16 = vpop.eup %7394  ;;  %v8544_v19 = vmul.f32 0.5, %v4238_v6  ;;  %v4239_v20 = vadd.f32 1.0, %v7393_v10  ;;  %v3239_v35 = vpop.f32.mrb[16].mxu1  ;;  %7410 = vtanh.f32 %v4004_v26  ;;  %v6745_v52 = vadd.f32 %v2894_v54, %v8468_v46 }
 0x28e   : > { %v7397_v22 = vpop.eup %7396  ;;  %v8548_v24 = vmul.f32 0.5, %v4237_v14  ;;  %v4244_v25 = vadd.f32 1.0, %v7395_v16  ;;  %v2902_v36 = vpop.f32.mrb[17].mxu0  ;;  %7412 = vtanh.f32 %v4006_v32  ;;  %v6777_v55 = vadd.f32 %v3233_v60, %v8470_v48 }
 0x28f   : > { %v8550_v29 = vmul.f32 0.5, %v4239_v20  ;;  %v4246_v31 = vadd.f32 1.0, %v7397_v22  ;;  %v3241_v42 = vpop.f32.mrb[17].mxu1  ;;  %v2904_v43 = vpop.f32.mrb[18].mxu0  ;;  %v4005_v0 = vmul.f32 0.5, %v6744_v39  ;;  %v4007_v2 = vmul.f32 0.5, %v6776_v38 }
 0x290   : > { %v8552_v37 = vmul.f32 0.5, %v4244_v25  ;;  %v7399_v45 = vpop.eup %7398  ;;  %v3243_v57 = vpop.f32.mrb[18].mxu1  ;;  %v6746_v44 = vadd.f32 %v2896_v61, %v8472_v49  ;;  %v4012_v6 = vmul.f32 0.5, %v6745_v52  ;;  %v4014_v8 = vmul.f32 0.5, %v6777_v55 }
 0x291   : > { %v8556_v51 = vmul.f32 0.5, %v4246_v31  ;;  %v2906_v58 = vpop.f32.mrb[19].mxu0  ;;  %v7401_v59 = vpop.eup %7400  ;;  %v4245_v62 = vadd.f32 1.0, %v7399_v45  ;;  %v6778_v9 = vadd.f32 %v3235_v3, %v8475_v50  ;;  %3607 = vmatmul.mubr.bf16.gmra.mrb[60].mxu0 %v7753_v12  ;;  %7414 = vtanh.f32 %v4005_v0  ;;  %3946 = vmatmul.mubr.bf16.gmra.mrb[60].mxu1 %v7753_v12 }
 0x292   : > { %v3245_v53 = vpop.f32.mrb[19].mxu1  ;;  %v4247_v4 = vadd.f32 1.0, %v7401_v59  ;;  %v7403_v10 = vpop.eup %7402  ;;  %v4013_v60 = vmul.f32 0.5, %v6746_v44  ;;  %v6747_v14 = vadd.f32 %v2900_v28, %v8468_v46  ;;  %7416 = vtanh.f32 %v4007_v2 }
 0x293   : > { %v8563_v54 = vmul.f32 0.5, %v4245_v62  ;;  %v4252_v17 = vadd.f32 1.0, %v7403_v10  ;;  %v4015_v61 = vmul.f32 0.5, %v6778_v9  ;;  %7418 = vtanh.f32 %v4012_v6 }
 0x294   : > { %v8566_v15 = vmul.f32 0.5, %v4247_v4  ;;  %v4020_v16 = vmul.f32 0.5, %v6747_v14  ;;  %v6779_v20 = vadd.f32 %v3239_v35, %v8470_v48  ;;  %v6748_v3 = vadd.f32 %v2902_v36, %v8472_v49  ;;  %v2910_v21 = vpop.f32.mrb[20].mxu0  ;;  %v7405_v22 = vpop.eup %7404 }
 0x295   : > { %v8570_v25 = vmul.f32 0.5, %v4252_v17  ;;  %7420 = vtanh.f32 %v4014_v8  ;;  %v6780_v26 = vadd.f32 %v3241_v42, %v8475_v50  ;;  %v6749_v28 = vadd.f32 %v2904_v43, %v8468_v46  ;;  %v3249_v31 = vpop.f32.mrb[20].mxu1  ;;  %v2912_v32 = vpop.f32.mrb[21].mxu0 }
 0x296   : > { %v7407_v39 = vpop.eup %7406  ;;  %v4254_v38 = vadd.f32 1.0, %v7405_v22  ;;  %7422 = vtanh.f32 %v4013_v60  ;;  %v4022_v45 = vmul.f32 0.5, %v6779_v20  ;;  %v4021_v52 = vmul.f32 0.5, %v6748_v3  ;;  %v8574_v55 = vpop.f32.mrb[21].mxu1 }
 0x297   : > { %v8576_v35 = vpop.f32.mrb[22].mxu0  ;;  %v7409_v36 = vpop.eup %7408  ;;  %v4253_v59 = vadd.f32 1.0, %v7407_v39  ;;  %7424 = vtanh.f32 %v4015_v61  ;;  %v4023_v62 = vmul.f32 0.5, %v6780_v26  ;;  %v4028_v0 = vmul.f32 0.5, %v6749_v28  ;;  %v7323_v39 = vld [vmem:[#allocation8 + $0x100] sm:$0xff]  }
 0x298   : > { %v8578_v2 = vpop.f32.mrb[22].mxu1  ;;  %v8580_v42 = vpop.f32.mrb[23].mxu0  ;;  %v8582_v44 = vmul.f32 0.5, %v4254_v38  ;;  %v4255_v4 = vadd.f32 1.0, %v7409_v36  ;;  %7426 = vtanh.f32 %v4020_v16  ;;  %v6781_v6 = vadd.f32 %v3243_v57, %v8470_v48  ;;  %v7325_v38 = vld [vmem:[#allocation8 + $0x180] sm:$0xff]  }
 0x299   : > { %v7411_v43 = vpop.eup %7410  ;;  %v8585_v8 = vpop.f32.mrb[23].mxu1  ;;  %v8587_v12 = vmul.f32 0.5, %v4253_v59  ;;  %7428 = vtanh.f32 %v4022_v45  ;;  %v6750_v60 = vadd.f32 %v2906_v58, %v8472_v49  ;;  %v6782_v57 = vadd.f32 %v3245_v53, %v8475_v50 }
 0x29a   : > { %v7413_v9 = vpop.eup %7412  ;;  %v4260_v10 = vadd.f32 1.0, %v7411_v43  ;;  %v8590_v14 = vmul.f32 0.5, %v4255_v4  ;;  %7430 = vtanh.f32 %v4021_v52  ;;  %v4030_v61 = vmul.f32 0.5, %v6781_v6  ;;  %v7328_v43 = vld [vmem:[#allocation8 + $0x1c8] sm:$0xff]  }
 0x29b   : > { %v4262_v17 = vadd.f32 1.0, %v7413_v9  ;;  %7432 = vtanh.f32 %v4023_v62  ;;  %v4029_v16 = vmul.f32 0.5, %v6750_v60  ;;  %v7415_v3 = vpop.eup %7414  ;;  %v4469_v26 = vpack.c.bf16 %v8522_v34, %v8506_v13 }
 0x29c   : > { %v8592_v20 = vmul.f32 0.5, %v4260_v10  ;;  %7434 = vtanh.f32 %v4028_v0  ;;  %v4471_v58 = vpack.c.bf16 %v8526_v41, %v8508_v18  ;;  %v8601_v28 = vpop.f32.mrb[24].mxu0  ;;  %v7417_v45 = vpop.eup %7416  ;;  %v4261_v52 = vadd.f32 1.0, %v7415_v3  ;;  %v7326_v0 = vld [vmem:[#allocation8 + $0x148] sm:$0xff]  }
 0x29d   : > { %v8595_v22 = vmul.f32 0.5, %v4262_v17  ;;  %7436 = vtanh.f32 %v4030_v61  ;;  %v4031_v36 = vmul.f32 0.5, %v6782_v57  ;;  %v6751_v53 = vadd.f32 %v2910_v21, %v8468_v46  ;;  %v8604_v59 = vpop.f32.mrb[24].mxu1  ;;  %v8606_v62 = vpop.f32.mrb[25].mxu0  ;;  %5083 = vmatprep.mubr.bf16.mxu0 %v4469_v26  ;;  %v7327_v17 = vld [vmem:[#allocation8 + $0x108] sm:$0xff]  }
 0x29e   : > { %v7419_v13 = vpop.eup %7418  ;;  %v4263_v34 = vadd.f32 1.0, %v7417_v45  ;;  %7438 = vtanh.f32 %v4029_v16  ;;  %5180 = vmatprep.mubr.bf16.mxu1 %v4471_v58  ;;  %v6783_v18 = vadd.f32 %v3249_v31, %v8470_v48  ;;  %v6752_v41 = vadd.f32 %v2912_v32, %v8472_v49  ;;  %v8610_v4 = vpop.f32.mrb[25].mxu1  ;;  %5084 = vmatmul.mubr.bf16.vlgmr.msra.gmra.mrb[64].mxu0 %v4468_v33  ;;  %v7332_v45 = vld [vmem:[#allocation8 + $0x1d0] sm:$0xff]  }
 0x29f   : > { %v8612_v6 = vpop.f32.mrb[26].mxu0  ;;  %v7421_v21 = vpop.eup %7420  ;;  %v8614_v9 = vmul.f32 0.5, %v4261_v52  ;;  %v4268_v10 = vadd.f32 1.0, %v7419_v13  ;;  %7440 = vtanh.f32 %v4031_v36  ;;  %v4036_v60 = vmul.f32 0.5, %v6751_v53  ;;  %5181 = vmatmul.mubr.bf16.vlgmr.msra.gmra.mrb[64].mxu1 %v4470_v40  ;;  %6540 = vmatpush3.bf16.msra.mxu0 %v7323_v39  ;;  %v7330_v40 = vld [vmem:[#allocation8 + $0x150] sm:$0xff]  }
 0x2a0   : > { %v8622_v31 = vpop.f32.mrb[26].mxu1  ;;  %v8624_v32 = vpop.f32.mrb[27].mxu0  ;;  %v8626_v16 = vmul.f32 0.5, %v4263_v34  ;;  %v4270_v57 = vadd.f32 1.0, %v7421_v21  ;;  %v4038_v3 = vmul.f32 0.5, %v6783_v18  ;;  %v4037_v26 = vmul.f32 0.5, %v6752_v41  ;;  %6604 = vmatpush3.bf16.msra.mxu1 %v7325_v38  ;;  %6541 = vmatprep.subr.bf16.mxu0 %v7326_v0 }
 0x2a1   : > { %v7423_v61 = vpop.eup %7422  ;;  %v8628_v58 = vpop.f32.mrb[27].mxu1  ;;  %v8630_v33 = vmul.f32 0.5, %v4268_v10  ;;  %7442 = vtanh.f32 %v4036_v60  ;;  %v6784_v27 = vadd.f32 %v8574_v55, %v8475_v50  ;;  %6605 = vmatprep.subr.bf16.mxu1 %v7328_v43  ;;  %v6753_v39 = vadd.f32 %v8576_v35, %v8468_v46  ;;  %v7331_v60 = vld [vmem:[#allocation8 + $0x110] sm:$0xff]  }
 0x2a2   : > { %v7425_v23 = vpop.eup %7424  ;;  %v4269_v7 = vadd.f32 1.0, %v7423_v61  ;;  %v8634_v36 = vmul.f32 0.5, %v4270_v57  ;;  %7444 = vtanh.f32 %v4038_v3  ;;  %v6785_v21 = vadd.f32 %v8578_v2, %v8470_v48  ;;  %v7333_v35 = vld [vmem:[#allocation8 + $0x190] sm:$0xff]   ;;  %v7334_v2 = vld [vmem:[#allocation8 + $0x158] sm:$0xff]  }
 0x2a3   : > { %v7427_v52 = vpop.eup %7426  ;;  %v4271_v53 = vadd.f32 1.0, %v7425_v23  ;;  %7446 = vtanh.f32 %v4037_v26  ;;  %v4039_v18 = vmul.f32 0.5, %v6784_v27  ;;  %v4044_v43 = vmul.f32 0.5, %v6753_v39  ;;  %6542 = vmatpush3.bf16.msra.mxu0 %v7327_v17  ;;  %v7336_v27 = vld [vmem:[#allocation8 + $0x1d8] sm:$0xff]  }
 0x2a4   : > { %v7429_v38 = vpop.eup %7428  ;;  %v8638_v13 = vmul.f32 0.5, %v4269_v7  ;;  %v4276_v34 = vadd.f32 1.0, %v7427_v52  ;;  %v8644_v10 = vpop.f32.mrb[28].mxu0  ;;  %6606 = vmatpush3.bf16.msra.mxu1 %v7329_v1  ;;  %v6754_v26 = vadd.f32 %v8580_v42, %v8472_v49  ;;  %6543 = vmatprep.subr.bf16.mxu0 %v7330_v40  ;;  %v6786_v40 = vadd.f32 %v8585_v8, %v8475_v50 }
 0x2a5   : > { %v7431_v41 = vpop.eup %7430  ;;  %v8640_v55 = vmul.f32 0.5, %v4271_v53  ;;  %v4278_v0 = vadd.f32 1.0, %v7429_v38  ;;  %7448 = vtanh.f32 %v4039_v18  ;;  %v8650_v23 = vpop.f32.mrb[28].mxu1  ;;  %6607 = vmatprep.subr.bf16.mxu1 %v7332_v45  ;;  %v4046_v53 = vmul.f32 0.5, %v6785_v21 }
 0x2a6   : > { %v7433_v61 = vpop.eup %7432  ;;  %v8646_v57 = vmul.f32 0.5, %v4276_v34  ;;  %v4277_v3 = vadd.f32 1.0, %v7431_v41  ;;  %v8652_v7 = vpop.f32.mrb[29].mxu0  ;;  %7450 = vtanh.f32 %v4044_v43  ;;  %v4045_v41 = vmul.f32 0.5, %v6754_v26 }
 0x2a7   : > { %v7435_v17 = vpop.eup %7434  ;;  %v8654_v1 = vmul.f32 0.5, %v4278_v0  ;;  %v4279_v52 = vadd.f32 1.0, %v7433_v61  ;;  %v8656_v39 = vpop.f32.mrb[29].mxu1  ;;  %7452 = vtanh.f32 %v4046_v53  ;;  %v4477_v21 = vpack.c.bf16 %v8548_v24, %v8534_v63  ;;  %6544 = vmatpush3.bf16.msra.mxu0 %v7331_v60  ;;  %v7340_v60 = vld [vmem:[#allocation8 + $0x1e0] sm:$0xff]  }
 0x2a8   : > { %9384 = vst [vmem:[#allocation21_spill] sm:$0xff] %v8646_v57  ;;  %v8658_v38 = vpop.f32.mrb[30].mxu0  ;;  %v7437_v34 = vpop.eup %7436  ;;  %v8660_v42 = vmul.f32 0.5, %v4277_v3  ;;  %v4284_v18 = vadd.f32 1.0, %v7435_v17  ;;  %6608 = vmatpush3.bf16.msra.mxu1 %v7333_v35  ;;  %v7335_v3 = vld [vmem:[#allocation8 + $0x118] sm:$0xff]   ;;  %7454 = vtanh.f32 %v4045_v41  ;;  %v4047_v57 = vmul.f32 0.5, %v6786_v40  ;;  %6545 = vmatprep.subr.bf16.mxu0 %v7334_v2 }
 0x2a9   : > { %9385 = vst [vmem:[#allocation22_spill] sm:$0xff] %v8654_v1  ;;  %v8664_v45 = vpop.f32.mrb[30].mxu1  ;;  %v8666_v30 = vpop.f32.mrb[31].mxu0  ;;  %v8668_v61 = vmul.f32 0.5, %v4279_v52  ;;  %v4286_v43 = vadd.f32 1.0, %v7437_v34  ;;  %6609 = vmatprep.subr.bf16.mxu1 %v7336_v27  ;;  %v7337_v52 = vld [vmem:[#allocation8 + $0x198] sm:$0xff]   ;;  %5091 = vmatprep.mubr.bf16.mxu0 %v4477_v21  ;;  %v4479_v63 = vpack.c.bf16 %v8550_v29, %v8537_v5  ;;  %v6755_v24 = vadd.f32 %v8601_v28, %v8468_v46 }
 0x2aa   : > { %v7439_v0 = vpop.eup %7438  ;;  %v8672_v1 = vpop.f32.mrb[31].mxu1  ;;  %v8674_v17 = vmul.f32 0.5, %v4284_v18  ;;  %7456 = vtanh.f32 %v4047_v57  ;;  %v6787_v2 = vadd.f32 %v8604_v59, %v8470_v48  ;;  %v6756_v27 = vadd.f32 %v8606_v62, %v8472_v49  ;;  %v7339_v28 = vld [vmem:[#allocation8 + $0x120] sm:$0xff]  }
 0x2ab   : > { %9386 = vst [vmem:[#allocation23_spill] sm:$0xff] %v8668_v61  ;;  %v7441_v26 = vpop.eup %7440  ;;  %v4285_v8 = vadd.f32 1.0, %v7439_v0  ;;  %v7338_v61 = vld [vmem:[#allocation8 + $0x160] sm:$0xff]   ;;  %v8676_v34 = vmul.f32 0.5, %v4286_v43  ;;  %5188 = vmatprep.mubr.bf16.mxu1 %v4479_v63  ;;  %v4052_v5 = vmul.f32 0.5, %v6755_v24  ;;  %v6788_v29 = vadd.f32 %v8610_v4, %v8475_v50  ;;  %6546 = vmatpush3.bf16.msra.mxu0 %v7335_v3 }
 0x2ac   : > { %v4287_v53 = vadd.f32 1.0, %v7441_v26  ;;  %v7443_v35 = vpop.eup %7442  ;;  %v4054_v57 = vmul.f32 0.5, %v6787_v2  ;;  %v4053_v26 = vmul.f32 0.5, %v6756_v27  ;;  %v6757_v59 = vadd.f32 %v8612_v6, %v8468_v46  ;;  %6610 = vmatpush3.bf16.msra.mxu1 %v7337_v52  ;;  %6547 = vmatprep.subr.bf16.mxu0 %v7338_v61  ;;  %v7341_v62 = vld [vmem:[#allocation8 + $0x1a0] sm:$0xff]  }
 0x2ad   : > { %v8682_v18 = vmul.f32 0.5, %v4285_v8  ;;  %v7445_v41 = vpop.eup %7444  ;;  %v4292_v0 = vadd.f32 1.0, %v7443_v35  ;;  %7458 = vtanh.f32 %v4052_v5  ;;  %v4055_v63 = vmul.f32 0.5, %v6788_v29  ;;  %6611 = vmatprep.subr.bf16.mxu1 %v7340_v60 }
 0x2ae   : > { %v8688_v40 = vmul.f32 0.5, %v4287_v53  ;;  %v7447_v43 = vpop.eup %7446  ;;  %v4294_v21 = vadd.f32 1.0, %v7445_v41  ;;  %7460 = vtanh.f32 %v4054_v57  ;;  %v4060_v3 = vmul.f32 0.5, %v6757_v59 }
 0x2af   : > { %v8694_v8 = vmul.f32 0.5, %v4292_v0  ;;  %v4293_v53 = vadd.f32 1.0, %v7447_v43  ;;  %v7449_v24 = vpop.eup %7448  ;;  %v6789_v35 = vadd.f32 %v8622_v31, %v8470_v48  ;;  %7462 = vtanh.f32 %v4053_v26  ;;  %6548 = vmatpush3.bf16.msra.mxu0 %v7339_v28 }
 0x2b0   : > { %v8696_v4 = vmul.f32 0.5, %v4294_v21  ;;  %v7451_v2 = vpop.eup %7450  ;;  %v4295_v6 = vadd.f32 1.0, %v7449_v24  ;;  %v6758_v61 = vadd.f32 %v8624_v32, %v8472_v49  ;;  %7464 = vtanh.f32 %v4055_v63  ;;  %6612 = vmatpush3.bf16.msra.mxu1 %v7341_v62 }
 0x2b1   : > { %v8700_v27 = vmul.f32 0.5, %v4293_v53  ;;  %v4300_v52 = vadd.f32 1.0, %v7451_v2  ;;  %v4062_v60 = vmul.f32 0.5, %v6789_v35  ;;  %v6790_v41 = vadd.f32 %v8628_v58, %v8475_v50  ;;  %v7453_v0 = vpop.eup %7452 }
 0x2b2   : > { %v8706_v5 = vmul.f32 0.5, %v4295_v6  ;;  %7466 = vtanh.f32 %v4060_v3  ;;  %v4061_v31 = vmul.f32 0.5, %v6758_v61  ;;  %v4476_v29 = vpack.c.bf16 %v8540_v11, %v8528_v47  ;;  %v7455_v43 = vpop.eup %7454 }
 0x2b3   : > { %v8710_v21 = vmul.f32 0.5, %v4300_v52  ;;  %v4302_v32 = vadd.f32 1.0, %v7453_v0  ;;  %7468 = vtanh.f32 %v4062_v60  ;;  %v4063_v28 = vmul.f32 0.5, %v6790_v41 }
 0x2b4   : > { %v4301_v57 = vadd.f32 1.0, %v7455_v43  ;;  %7470 = vtanh.f32 %v4061_v31  ;;  %5092 = vmatmul.mubr.bf16.gmra.mrb[68].mxu0 %v4476_v29  ;;  %v4478_v58 = vpack.c.bf16 %v8544_v19, %v8530_v56  ;;  %v4485_v26 = vpack.c.bf16 %v8587_v12, %v8563_v54  ;;  %v7457_v59 = vpop.eup %7456 }
 0x2b5   : > { %v8716_v62 = vmul.f32 0.5, %v4302_v32  ;;  %7472 = vtanh.f32 %v4063_v28  ;;  %v4487_v47 = vpack.c.bf16 %v8590_v14, %v8566_v15  ;;  %v6759_v11 = vadd.f32 %v8644_v10, %v8468_v46 }
 0x2b6   : > { %v8722_v53 = vmul.f32 0.5, %v4301_v57  ;;  %v4303_v63 = vadd.f32 1.0, %v7457_v59  ;;  %5189 = vmatmul.mubr.bf16.gmra.mrb[68].mxu1 %v4478_v58  ;;  %5099 = vmatprep.mubr.bf16.mxu0 %v4485_v26  ;;  %v6791_v56 = vadd.f32 %v8650_v23, %v8470_v48  ;;  %v6760_v19 = vadd.f32 %v8652_v7, %v8472_v49 }
 0x2b7   : > { %5196 = vmatprep.mubr.bf16.mxu1 %v4487_v47  ;;  %v4068_v54 = vmul.f32 0.5, %v6759_v11  ;;  %v6792_v12 = vadd.f32 %v8656_v39, %v8475_v50  ;;  %v6761_v15 = vadd.f32 %v8658_v38, %v8468_v46  ;;  %v6793_v14 = vadd.f32 %v8664_v45, %v8470_v48  ;;  %v7459_v10 = vpop.eup %7458 }
 0x2b8   : > { %v8734_v24 = vmul.f32 0.5, %v4303_v63  ;;  %v4070_v3 = vmul.f32 0.5, %v6791_v56  ;;  %v4069_v35 = vmul.f32 0.5, %v6760_v19  ;;  %v6762_v23 = vadd.f32 %v8666_v30, %v8472_v49  ;;  %v7461_v7 = vpop.eup %7460  ;;  %v9387_v19 = vld [vmem:[#allocation23_spill] sm:$0xff] }
 0x2b9   : > { %v4308_v2 = vadd.f32 1.0, %v7459_v10  ;;  %7474 = vtanh.f32 %v4068_v54  ;;  %v4071_v6 = vmul.f32 0.5, %v6792_v12  ;;  %v4076_v61 = vmul.f32 0.5, %v6761_v15  ;;  %v7463_v39 = vpop.eup %7462  ;;  %v9388_v12 = vld [vmem:[#allocation21_spill] sm:$0xff] }
 0x2ba   : > { %v4310_v52 = vadd.f32 1.0, %v7461_v7  ;;  %7476 = vtanh.f32 %v4070_v3  ;;  %v4078_v46 = vmul.f32 0.5, %v6793_v14  ;;  %v4077_v38 = vmul.f32 0.5, %v6762_v23  ;;  %v7465_v60 = vpop.eup %7464 }
 0x2bb   : > { %v8738_v48 = vmul.f32 0.5, %v4308_v2  ;;  %v4309_v45 = vadd.f32 1.0, %v7463_v39  ;;  %7478 = vtanh.f32 %v4069_v35  ;;  %v6794_v41 = vadd.f32 %v8672_v1, %v8475_v50 }
 0x2bc   : > { %v7467_v0 = vpop.eup %7466  ;;  %v8742_v30 = vmul.f32 0.5, %v4310_v52  ;;  %v4311_v49 = vadd.f32 1.0, %v7465_v60  ;;  %7480 = vtanh.f32 %v4071_v6  ;;  %v4484_v31 = vpack.c.bf16 %v8570_v25, %v8552_v37 }
 0x2bd   : > { %v7469_v29 = vpop.eup %7468  ;;  %v8746_v43 = vmul.f32 0.5, %v4309_v45  ;;  %v4316_v32 = vadd.f32 1.0, %v7467_v0  ;;  %7482 = vtanh.f32 %v4076_v61  ;;  %v4079_v28 = vmul.f32 0.5, %v6794_v41  ;;  %v7346_v41 = vld [vmem:[#allocation8 + $0x170] sm:$0xff]  }
 0x2be   : > { %v7471_v57 = vpop.eup %7470  ;;  %v8748_v58 = vmul.f32 0.5, %v4311_v49  ;;  %v4318_v26 = vadd.f32 1.0, %v7469_v29  ;;  %7484 = vtanh.f32 %v4078_v46  ;;  %5100 = vmatmul.mubr.bf16.gmra.mrb[72].mxu0 %v4484_v31  ;;  %v4486_v50 = vpack.c.bf16 %v8582_v44, %v8556_v51 }
 0x2bf   : > { %v7473_v1 = vpop.eup %7472  ;;  %v8752_v59 = vmul.f32 0.5, %v4316_v32  ;;  %v4317_v47 = vadd.f32 1.0, %v7471_v57  ;;  %7486 = vtanh.f32 %v4077_v38  ;;  %v4493_v37 = vpack.c.bf16 %v8638_v13, %v8614_v9  ;;  %v7348_v57 = vld [vmem:[#allocation8 + $0x1f0] sm:$0xff]  }
 0x2c0   : > { %v8756_v25 = vmul.f32 0.5, %v4318_v26  ;;  %v4319_v11 = vadd.f32 1.0, %v7473_v1  ;;  %7488 = vtanh.f32 %v4079_v28  ;;  %5197 = vmatmul.mubr.bf16.gmra.mrb[72].mxu1 %v4486_v50  ;;  %v4495_v63 = vpack.c.bf16 %v8640_v55, %v8626_v16  ;;  %v9389_v55 = vld [vmem:[#allocation22_spill] sm:$0xff] }
 0x2c1   : > { %v8760_v56 = vmul.f32 0.5, %v4317_v47  ;;  %5107 = vmatprep.mubr.bf16.mxu0 %v4493_v37  ;;  %v4492_v51 = vpack.c.bf16 %v8630_v33, %v8592_v20  ;;  %v4494_v44 = vpack.c.bf16 %v8634_v36, %v8595_v22  ;;  %v4501_v9 = vpack.c.bf16 %v8682_v18, %v8660_v42  ;;  %v7347_v28 = vld [vmem:[#allocation8 + $0x130] sm:$0xff]   ;;  %v7350_v1 = vld [vmem:[#allocation8 + $0x178] sm:$0xff]  }
 0x2c2   : > { %v8768_v13 = vmul.f32 0.5, %v4319_v11  ;;  %5204 = vmatprep.mubr.bf16.mxu1 %v4495_v63  ;;  %v4503_v54 = vpack.c.bf16 %v8688_v40, %v9387_v19  ;;  %v4500_v16 = vpack.c.bf16 %v8674_v17, %v9388_v12  ;;  %v4502_v15 = vpack.c.bf16 %v8676_v34, %v9389_v55  ;;  %v7351_v47 = vld [vmem:[#allocation8 + $0x138] sm:$0xff]   ;;  %v9390_v63 = vld [vmem:[#allocation20_spill] sm:$0xff] }
 0x2c3   : > { %v7475_v14 = vpop.eup %7474  ;;  %v4509_v20 = vpack.c.bf16 %v8722_v53, %v8700_v27  ;;  %v4511_v22 = vpack.c.bf16 %v8734_v24, %v8706_v5  ;;  %v4508_v33 = vpack.c.bf16 %v8710_v21, %v8694_v8  ;;  %v4510_v36 = vpack.c.bf16 %v8716_v62, %v8696_v4  ;;  %v7342_v5 = vld [vmem:[#allocation8 + $0x168] sm:$0xff]   ;;  %v7352_v37 = vld [vmem:[#allocation8 + $0x1f8] sm:$0xff]  }
 0x2c4   : > { %v7477_v42 = vpop.eup %7476  ;;  %v4517_v17 = vpack.c.bf16 %v8760_v56, %v8746_v43  ;;  %v4519_v34 = vpack.c.bf16 %v8768_v13, %v8748_v58  ;;  %v4516_v18 = vpack.c.bf16 %v8752_v59, %v8738_v48  ;;  %v4518_v27 = vpack.c.bf16 %v8756_v25, %v8742_v30  ;;  %v7343_v53 = vld [vmem:[#allocation8 + $0x128] sm:$0xff]   ;;  %6549 = vmatprep.subr.bf16.mxu0 %v7342_v5  ;;  %v7349_v58 = vld [vmem:[#allocation8 + $0x1b0] sm:$0xff]   ;;  %v7353_v11 = vld [vmem:[#allocation8 + $0x1b8] sm:$0xff]  }
 0x2c5   : > { %v7479_v40 = vpop.eup %7478  ;;  %v7344_v8 = vld [vmem:[#allocation8 + $0x1e8] sm:$0xff]   ;;  %v4324_v10 = vadd.f32 1.0, %v7475_v14  ;;  %v4326_v24 = vadd.f32 1.0, %v7477_v42  ;;  %6550 = vmatpush3.bf16.msra.mxu0 %v7343_v53  ;;  %v770_v56 = vsub.s32 4, %v9390_v63  ;;  %v7754_v13 = vld [vmem:[#allocation7] sm:$0xff] }
 0x2c6   : > { %v7481_v21 = vpop.eup %7480  ;;  %5108 = vmatmul.mubr.bf16.gmra.mrb[76].mxu0 %v4492_v51  ;;  %v7345_v4 = vld [vmem:[#allocation8 + $0x1a8] sm:$0xff]   ;;  %v4325_v35 = vadd.f32 1.0, %v7479_v40  ;;  %6613 = vmatprep.subr.bf16.mxu1 %v7344_v8  ;;  %v778_v51 = vsub.s32 6, %v9390_v63 }
 0x2c7   : > { %v7483_v62 = vpop.eup %7482  ;;  %5115 = vmatprep.mubr.bf16.mxu0 %v4501_v9  ;;  %v4327_v2 = vadd.f32 1.0, %v7481_v21  ;;  %v4452_v39 = vmul.f32 0.5, %v4324_v10  ;;  %6614 = vmatpush3.bf16.msra.mxu1 %v7345_v4  ;;  %v4454_v38 = vmul.f32 0.5, %v4326_v24  ;;  %v782_v9 = vsub.s32 7, %v9390_v63 }
 0x2c8   : > { %v7485_v3 = vpop.eup %7484  ;;  %v4332_v23 = vadd.f32 1.0, %v7483_v62  ;;  %5205 = vmatmul.mubr.bf16.gmra.mrb[76].mxu1 %v4494_v44  ;;  %v4453_v0 = vmul.f32 0.5, %v4325_v35  ;;  %6551 = vmatprep.subr.bf16.mxu0 %v7346_v41  ;;  %v774_v44 = vsub.s32 5, %v9390_v63  ;;  %v8802_v19 = vrot.slane %v7754_v13, %v770_v56 }
 0x2c9   : > { %v7487_v7 = vpop.eup %7486  ;;  %v4334_v6 = vadd.f32 1.0, %v7485_v3  ;;  %5212 = vmatprep.mubr.bf16.mxu1 %v4503_v54  ;;  %v4455_v29 = vmul.f32 0.5, %v4327_v2  ;;  %6552 = vmatpush3.bf16.msra.mxu0 %v7347_v28  ;;  %v8804_v48 = vrot.slane %v7754_v13, %v778_v51  ;;  %v8808_v30 = vrot.slane %v7754_v13, %v782_v9 }
 0x2ca   : > { %v7489_v61 = vpop.eup %7488  ;;  %v4460_v52 = vmul.f32 0.5, %v4332_v23  ;;  %v4333_v46 = vadd.f32 1.0, %v7487_v7  ;;  %6615 = vmatprep.subr.bf16.mxu1 %v7348_v57  ;;  %6553 = vmatprep.subr.bf16.mxu0 %v7350_v1  ;;  %v8806_v59 = vrot.slane %v7754_v13, %v774_v44 }
 0x2cb   : > { %v4462_v60 = vmul.f32 0.5, %v4334_v6  ;;  %v4335_v45 = vadd.f32 1.0, %v7489_v61  ;;  %6616 = vmatpush3.bf16.msra.mxu1 %v7349_v58 }
 0x2cc   : > { %v4461_v49 = vmul.f32 0.5, %v4333_v46  ;;  %v4524_v31 = vpack.c.bf16 %v4460_v52, %v4452_v39  ;;  %6617 = vmatprep.subr.bf16.mxu1 %v7352_v37 }
 0x2cd   : > { %v4463_v43 = vmul.f32 0.5, %v4335_v45  ;;  %v4526_v32 = vpack.c.bf16 %v4462_v60, %v4454_v38  ;;  %6554 = vmatpush3.bf16.msra.mxu0 %v7351_v47 }
 0x2ce   : > { %5116 = vmatmul.mubr.bf16.gmra.mrb[80].mxu0 %v4500_v16  ;;  %v4525_v26 = vpack.c.bf16 %v4461_v49, %v4453_v0 }
 0x2cf   : > { %5123 = vmatprep.mubr.bf16.mxu0 %v4509_v20  ;;  %v4527_v50 = vpack.c.bf16 %v4463_v43, %v4455_v29  ;;  %6618 = vmatpush3.bf16.msra.mxu1 %v7353_v11 }
 0x2d0   : > { %5213 = vmatmul.mubr.bf16.gmra.mrb[80].mxu1 %v4502_v15 }
 0x2d1   : > { %5220 = vmatprep.mubr.bf16.mxu1 %v4511_v22 }
 0x2d6   : > { %5124 = vmatmul.mubr.bf16.gmra.mrb[84].mxu0 %v4508_v33 }
 0x2d7   : > { %5131 = vmatprep.mubr.bf16.mxu0 %v4517_v17 }
 0x2d8   : > { %5221 = vmatmul.mubr.bf16.gmra.mrb[84].mxu1 %v4510_v36 }
 0x2d9   : > { %5228 = vmatprep.mubr.bf16.mxu1 %v4519_v34 }
 0x2de   : > { %5132 = vmatmul.mubr.bf16.gmra.mrb[88].mxu0 %v4516_v18 }
 0x2df   : > { %5139 = vmatprep.mubr.bf16.mxu0 %v4525_v26 }
 0x2e0   : > { %5229 = vmatmul.mubr.bf16.gmra.mrb[88].mxu1 %v4518_v27 }
 0x2e1   : > { %5236 = vmatprep.mubr.bf16.mxu1 %v4527_v50 }
 0x2e6   : > { %5140 = vmatmul.mubr.bf16.gmra.mrb[92].mxu0 %v4524_v31 }
 0x2e8   : > { %5237 = vmatmul.mubr.bf16.gmra.mrb[92].mxu1 %v4526_v32 }
 0x32c   : > { %v3538_v25 = vpop.f32.mrb[32].mxu0  ;;  %v3877_v12 = vpop.f32.mrb[32].mxu1 }
 0x32d   : > { %v6795_v54 = vadd.f32 %v3538_v25, %v8802_v19  ;;  %v3540_v16 = vpop.f32.mrb[33].mxu0  ;;  %v6827_v55 = vadd.f32 %v3877_v12, %v8804_v48  ;;  %v3879_v14 = vpop.f32.mrb[33].mxu1 }
 0x32e   : > { %v6796_v15 = vadd.f32 %v3540_v16, %v8806_v59  ;;  %v3542_v20 = vpop.f32.mrb[34].mxu0  ;;  %v6828_v33 = vadd.f32 %v3879_v14, %v8808_v30  ;;  %v3881_v42 = vpop.f32.mrb[34].mxu1 }
 0x32f   : > { %v3960_v22 = vmul.f32 0.5, %v6795_v54  ;;  %v6797_v36 = vadd.f32 %v3542_v20, %v8802_v19  ;;  %v3544_v17 = vpop.f32.mrb[35].mxu0  ;;  %v3962_v34 = vmul.f32 0.5, %v6827_v55  ;;  %v6829_v40 = vadd.f32 %v3881_v42, %v8804_v48  ;;  %v3883_v5 = vpop.f32.mrb[35].mxu1 }
 0x330   : > { %v3961_v18 = vmul.f32 0.5, %v6796_v15  ;;  %v6798_v27 = vadd.f32 %v3544_v17, %v8806_v59  ;;  %v3963_v53 = vmul.f32 0.5, %v6828_v33  ;;  %v6830_v21 = vadd.f32 %v3883_v5, %v8808_v30 }
 0x331   : > { %7490 = vtanh.f32 %v3960_v22  ;;  %v3968_v8 = vmul.f32 0.5, %v6797_v36  ;;  %v3970_v10 = vmul.f32 0.5, %v6829_v40 }
 0x332   : > { %7492 = vtanh.f32 %v3962_v34  ;;  %v3969_v4 = vmul.f32 0.5, %v6798_v27  ;;  %v3971_v62 = vmul.f32 0.5, %v6830_v21  ;;  %v8833_v27 = vld [vmem:[#allocation11] sm:$0xff]  }
 0x333   : > { %7494 = vtanh.f32 %v3961_v18  ;;  %6683 = vmatprep.subr.bf16.mxu0 %v8833_v27  ;;  %6715 = vmatprep.subr.bf16.mxu1 %v8833_v27 }
 0x334   : > { %7496 = vtanh.f32 %v3963_v53  ;;  %v3548_v24 = vpop.f32.mrb[36].mxu0  ;;  %v3887_v35 = vpop.f32.mrb[36].mxu1 }
 0x335   : > { %7498 = vtanh.f32 %v3968_v8  ;;  %v6799_v3 = vadd.f32 %v3548_v24, %v8802_v19  ;;  %v3550_v23 = vpop.f32.mrb[37].mxu0  ;;  %v6831_v7 = vadd.f32 %v3887_v35, %v8804_v48  ;;  %v3889_v6 = vpop.f32.mrb[37].mxu1 }
 0x336   : > { %7500 = vtanh.f32 %v3970_v10  ;;  %v6800_v2 = vadd.f32 %v3550_v23, %v8806_v59  ;;  %v3552_v61 = vpop.f32.mrb[38].mxu0  ;;  %v6832_v52 = vadd.f32 %v3889_v6, %v8808_v30  ;;  %v3891_v38 = vpop.f32.mrb[38].mxu1 }
 0x337   : > { %7502 = vtanh.f32 %v3969_v4  ;;  %v3976_v39 = vmul.f32 0.5, %v6799_v3  ;;  %v6801_v46 = vadd.f32 %v3552_v61, %v8802_v19  ;;  %v3554_v60 = vpop.f32.mrb[39].mxu0  ;;  %v3978_v45 = vmul.f32 0.5, %v6831_v7  ;;  %v3893_v49 = vpop.f32.mrb[39].mxu1 }
 0x338   : > { %7504 = vtanh.f32 %v3971_v62  ;;  %v3977_v41 = vmul.f32 0.5, %v6800_v2  ;;  %v6833_v0 = vadd.f32 %v3891_v38, %v8804_v48  ;;  %v3979_v31 = vmul.f32 0.5, %v6832_v52 }
 0x339   : > { %7506 = vtanh.f32 %v3976_v39  ;;  %v3984_v29 = vmul.f32 0.5, %v6801_v46  ;;  %v6802_v43 = vadd.f32 %v3554_v60, %v8806_v59  ;;  %v6834_v28 = vadd.f32 %v3893_v49, %v8808_v30 }
 0x33a   : > { %7508 = vtanh.f32 %v3978_v45  ;;  %v3986_v32 = vmul.f32 0.5, %v6833_v0 }
 0x33b   : > { %v7491_v57 = vpop.eup %7490  ;;  %7510 = vtanh.f32 %v3977_v41  ;;  %v3985_v58 = vmul.f32 0.5, %v6802_v43  ;;  %v3987_v1 = vmul.f32 0.5, %v6834_v28 }
 0x33c   : > { %v7493_v26 = vpop.eup %7492  ;;  %v4216_v50 = vadd.f32 1.0, %v7491_v57  ;;  %7512 = vtanh.f32 %v3979_v31  ;;  %v3558_v47 = vpop.f32.mrb[40].mxu0 }
 0x33d   : > { %v7495_v37 = vpop.eup %7494  ;;  %v4218_v11 = vadd.f32 1.0, %v7493_v26  ;;  %7514 = vtanh.f32 %v3984_v29  ;;  %v6803_v63 = vadd.f32 %v3558_v47, %v8802_v19  ;;  %v3897_v56 = vpop.f32.mrb[40].mxu1 }
 0x33e   : > { %v3560_v51 = vpop.f32.mrb[41].mxu0  ;;  %v7497_v44 = vpop.eup %7496  ;;  %7516 = vtanh.f32 %v3986_v32  ;;  %v6835_v9 = vadd.f32 %v3897_v56, %v8804_v48  ;;  %v8828_v12 = vmul.f32 0.5, %v4216_v50  ;;  %v4217_v16 = vadd.f32 1.0, %v7495_v37 }
 0x33f   : > { %v3899_v13 = vpop.f32.mrb[41].mxu1  ;;  %v3562_v25 = vpop.f32.mrb[42].mxu0  ;;  %7518 = vtanh.f32 %v3985_v58  ;;  %v3992_v55 = vmul.f32 0.5, %v6803_v63  ;;  %v8830_v22 = vmul.f32 0.5, %v4218_v11  ;;  %v4219_v34 = vadd.f32 1.0, %v7497_v44 }
 0x340   : > { %v7499_v54 = vpop.eup %7498  ;;  %v3901_v15 = vpop.f32.mrb[42].mxu1  ;;  %7520 = vtanh.f32 %v3987_v1  ;;  %v3994_v36 = vmul.f32 0.5, %v6835_v9  ;;  %v6804_v40 = vadd.f32 %v3560_v51, %v8806_v59  ;;  %v6836_v21 = vadd.f32 %v3899_v13, %v8808_v30 }
 0x341   : > { %v3564_v14 = vpop.f32.mrb[43].mxu0  ;;  %v7501_v20 = vpop.eup %7500  ;;  %v4224_v33 = vadd.f32 1.0, %v7499_v54  ;;  %7522 = vtanh.f32 %v3992_v55  ;;  %v6805_v3 = vadd.f32 %v3562_v25, %v8802_v19  ;;  %v8843_v23 = vmul.f32 0.5, %v4217_v16 }
 0x342   : > { %v3903_v42 = vpop.f32.mrb[43].mxu1  ;;  %v7503_v17 = vpop.eup %7502  ;;  %v4226_v18 = vadd.f32 1.0, %v7501_v20  ;;  %7524 = vtanh.f32 %v3994_v36  ;;  %v3993_v24 = vmul.f32 0.5, %v6804_v40  ;;  %v3995_v6 = vmul.f32 0.5, %v6836_v21 }
 0x343   : > { %v7505_v5 = vpop.eup %7504  ;;  %v8835_v53 = vmul.f32 0.5, %v4224_v33  ;;  %v4225_v8 = vadd.f32 1.0, %v7503_v17  ;;  %v8847_v52 = vmul.f32 0.5, %v4219_v34  ;;  %v4000_v31 = vmul.f32 0.5, %v6805_v3 }
 0x344   : > { %v7507_v10 = vpop.eup %7506  ;;  %v8838_v4 = vmul.f32 0.5, %v4226_v18  ;;  %v4227_v62 = vadd.f32 1.0, %v7505_v5  ;;  %v3568_v61 = vpop.f32.mrb[44].mxu0  ;;  %7526 = vtanh.f32 %v3993_v24  ;;  %v6837_v58 = vadd.f32 %v3901_v15, %v8804_v48 }
 0x345   : > { %v7509_v35 = vpop.eup %7508  ;;  %v4472_v7 = vpack.c.bf16 %v8835_v53, %v8828_v12  ;;  %v4232_v2 = vadd.f32 1.0, %v7507_v10  ;;  %v3907_v60 = vpop.f32.mrb[44].mxu1  ;;  %v8851_v0 = vmul.f32 0.5, %v4225_v8  ;;  %7528 = vtanh.f32 %v3995_v6 }
 0x346   : > { %v7511_v39 = vpop.eup %7510  ;;  %v4474_v46 = vpack.c.bf16 %v8838_v4, %v8830_v22  ;;  %v4234_v38 = vadd.f32 1.0, %v7509_v35  ;;  %v3570_v45 = vpop.f32.mrb[45].mxu0  ;;  %v4355_v28 = vmul.f32 0.5, %v4227_v62  ;;  %v6806_v26 = vadd.f32 %v3564_v14, %v8806_v59 }
 0x347   : > { %v7513_v41 = vpop.eup %7512  ;;  %v4233_v49 = vadd.f32 1.0, %v7511_v39  ;;  %v3909_v29 = vpop.f32.mrb[45].mxu1  ;;  %v8855_v37 = vmul.f32 0.5, %v4232_v2  ;;  %7530 = vtanh.f32 %v4000_v31  ;;  %v6838_v63 = vadd.f32 %v3903_v42, %v8808_v30 }
 0x348   : > { %v3572_v43 = vpop.f32.mrb[46].mxu0  ;;  %v7515_v32 = vpop.eup %7514  ;;  %v4235_v57 = vadd.f32 1.0, %v7513_v41  ;;  %v8858_v44 = vmul.f32 0.5, %v4234_v38  ;;  %v4002_v13 = vmul.f32 0.5, %v6837_v58  ;;  %v4001_v25 = vmul.f32 0.5, %v6806_v26 }
 0x349   : > { %v3911_v50 = vpop.f32.mrb[46].mxu1  ;;  %v3574_v1 = vpop.f32.mrb[47].mxu0  ;;  %v4240_v11 = vadd.f32 1.0, %v7515_v32  ;;  %v8860_v16 = vmul.f32 0.5, %v4233_v49  ;;  %v4003_v15 = vmul.f32 0.5, %v6838_v63  ;;  %v6807_v14 = vadd.f32 %v3568_v61, %v8802_v19 }
 0x34a   : > { %v7517_v47 = vpop.eup %7516  ;;  %v3913_v56 = vpop.f32.mrb[47].mxu1  ;;  %v8863_v33 = vmul.f32 0.5, %v4235_v57  ;;  %7532 = vtanh.f32 %v4002_v13  ;;  %v6839_v42 = vadd.f32 %v3907_v60, %v8804_v48  ;;  %v6808_v35 = vadd.f32 %v3570_v45, %v8806_v59 }
 0x34b   : > { %v7519_v51 = vpop.eup %7518  ;;  %v4242_v9 = vadd.f32 1.0, %v7517_v47  ;;  %v8866_v34 = vmul.f32 0.5, %v4240_v11  ;;  %7534 = vtanh.f32 %v4001_v25  ;;  %v4008_v40 = vmul.f32 0.5, %v6807_v14 }
 0x34c   : > { %v7521_v54 = vpop.eup %7520  ;;  %v4241_v55 = vadd.f32 1.0, %v7519_v51  ;;  %v3578_v5 = vpop.f32.mrb[48].mxu0  ;;  %7536 = vtanh.f32 %v4003_v15  ;;  %v4010_v10 = vmul.f32 0.5, %v6839_v42  ;;  %v6840_v2 = vadd.f32 %v3909_v29, %v8808_v30 }
 0x34d   : > { %v7523_v20 = vpop.eup %7522  ;;  %v4243_v36 = vadd.f32 1.0, %v7521_v54  ;;  %v8868_v18 = vmul.f32 0.5, %v4242_v9  ;;  %v3917_v62 = vpop.f32.mrb[48].mxu1  ;;  %7538 = vtanh.f32 %v4008_v40  ;;  %v4473_v60 = vpack.c.bf16 %v8851_v0, %v8843_v23 }
 0x34e   : > { %v7525_v17 = vpop.eup %7524  ;;  %v8870_v8 = vmul.f32 0.5, %v4241_v55  ;;  %v4248_v21 = vadd.f32 1.0, %v7523_v20  ;;  %v3580_v24 = vpop.f32.mrb[49].mxu0  ;;  %7540 = vtanh.f32 %v4010_v10  ;;  %v4475_v41 = vpack.c.bf16 %v4355_v28, %v8847_v52 }
 0x34f   : > { %v4250_v3 = vadd.f32 1.0, %v7525_v17  ;;  %v3919_v6 = vpop.f32.mrb[49].mxu1  ;;  %v8874_v61 = vpop.f32.mrb[50].mxu0  ;;  %v8876_v38 = vmul.f32 0.5, %v4243_v36  ;;  %v4009_v57 = vmul.f32 0.5, %v6808_v35  ;;  %v4011_v29 = vmul.f32 0.5, %v6840_v2  ;;  %5277 = vmatprep.mubr.bf16.mxu0 %v4473_v60 }
 0x350   : > { %v7527_v39 = vpop.eup %7526  ;;  %v8881_v49 = vpop.f32.mrb[50].mxu1  ;;  %v6809_v58 = vadd.f32 %v3572_v43, %v8802_v19  ;;  %v8888_v47 = vmul.f32 0.5, %v4248_v21  ;;  %5374 = vmatprep.mubr.bf16.mxu1 %v4475_v41  ;;  %v6841_v23 = vadd.f32 %v3911_v50, %v8804_v48  ;;  %v6810_v52 = vadd.f32 %v3574_v1, %v8806_v59  ;;  %5278 = vmatmul.mubr.bf16.vlgmr.msra.gmra.mrb[96].mxu0 %v4472_v7 }
 0x351   : > { %v8883_v31 = vpop.f32.mrb[51].mxu0  ;;  %v7529_v32 = vpop.eup %7528  ;;  %v4249_v45 = vadd.f32 1.0, %v7527_v39  ;;  %v6842_v0 = vadd.f32 %v3913_v56, %v8808_v30  ;;  %v8893_v11 = vmul.f32 0.5, %v4250_v3  ;;  %7542 = vtanh.f32 %v4009_v57  ;;  %5375 = vmatmul.mubr.bf16.vlgmr.msra.gmra.mrb[96].mxu1 %v4474_v46  ;;  %6684 = vmatpush3.bf16.msra.mxu0 %v8833_v27 }
 0x352   : > { %v8886_v26 = vpop.f32.mrb[51].mxu1  ;;  %v7531_v28 = vpop.eup %7530  ;;  %v4016_v63 = vmul.f32 0.5, %v6809_v58  ;;  %v6811_v43 = vadd.f32 %v3578_v5, %v8802_v19  ;;  %v4251_v1 = vadd.f32 1.0, %v7529_v32  ;;  %7544 = vtanh.f32 %v4011_v29  ;;  %6723 = vmatpush3.bf16.msra.mxu1 %v8833_v27 }
 0x353   : > { %v8902_v50 = vmul.f32 0.5, %v4249_v45  ;;  %v4018_v56 = vmul.f32 0.5, %v6841_v23  ;;  %v4017_v51 = vmul.f32 0.5, %v6810_v52  ;;  %v4019_v9 = vmul.f32 0.5, %v6842_v0 }
 0x354   : > { %7546 = vtanh.f32 %v4016_v63  ;;  %v4024_v12 = vmul.f32 0.5, %v6811_v43  ;;  %v3588_v53 = vpop.f32.mrb[52].mxu0  ;;  %v7533_v7 = vpop.eup %7532  ;;  %v4256_v13 = vadd.f32 1.0, %v7531_v28  ;;  %v6843_v22 = vadd.f32 %v3917_v62, %v8804_v48 }
 0x355   : > { %7548 = vtanh.f32 %v4018_v56  ;;  %v6812_v4 = vadd.f32 %v3580_v24, %v8806_v59  ;;  %v3927_v46 = vpop.f32.mrb[52].mxu1  ;;  %v8908_v25 = vpop.f32.mrb[53].mxu0  ;;  %v4258_v55 = vadd.f32 1.0, %v7533_v7  ;;  %v6844_v27 = vadd.f32 %v3919_v6, %v8808_v30 }
 0x356   : > { %v7535_v54 = vpop.eup %7534  ;;  %7550 = vtanh.f32 %v4017_v51  ;;  %v4481_v15 = vpack.c.bf16 %v8870_v8, %v8860_v16  ;;  %v8913_v14 = vpop.f32.mrb[53].mxu1  ;;  %v4026_v17 = vmul.f32 0.5, %v6843_v22  ;;  %v8921_v62 = vmul.f32 0.5, %v4251_v1 }
 0x357   : > { %v8915_v20 = vpop.f32.mrb[54].mxu0  ;;  %v7537_v36 = vpop.eup %7536  ;;  %v4257_v42 = vadd.f32 1.0, %v7535_v54  ;;  %7552 = vtanh.f32 %v4019_v9  ;;  %v4025_v40 = vmul.f32 0.5, %v6812_v4  ;;  %v4027_v3 = vmul.f32 0.5, %v6844_v27 }
 0x358   : > { %v8917_v5 = vpop.f32.mrb[54].mxu1  ;;  %v8919_v21 = vpop.f32.mrb[55].mxu0  ;;  %v4259_v24 = vadd.f32 1.0, %v7537_v36  ;;  %7554 = vtanh.f32 %v4024_v12  ;;  %5285 = vmatprep.mubr.bf16.mxu0 %v4481_v15  ;;  %v8925_v35 = vmul.f32 0.5, %v4256_v13  ;;  %v8927_v2 = vmul.f32 0.5, %v4258_v55 }
 0x359   : > { %v7539_v10 = vpop.eup %7538  ;;  %v8923_v16 = vpop.f32.mrb[55].mxu1  ;;  %7556 = vtanh.f32 %v4026_v17  ;;  %v4483_v6 = vpack.c.bf16 %v8876_v38, %v8863_v33  ;;  %v8931_v39 = vmul.f32 0.5, %v4257_v42  ;;  %v6813_v41 = vadd.f32 %v8874_v61, %v8802_v19 }
 0x35a   : > { %v7541_v8 = vpop.eup %7540  ;;  %v4264_v60 = vadd.f32 1.0, %v7539_v10  ;;  %7558 = vtanh.f32 %v4025_v40  ;;  %v8935_v32 = vmul.f32 0.5, %v4259_v24  ;;  %v6845_v45 = vadd.f32 %v8881_v49, %v8804_v48 }
 0x35b   : > { %7560 = vtanh.f32 %v4027_v3  ;;  %5382 = vmatprep.mubr.bf16.mxu1 %v4483_v6  ;;  %v4480_v57 = vpack.c.bf16 %v8866_v34, %v8855_v37  ;;  %v7543_v29 = vpop.eup %7542  ;;  %v4266_v58 = vadd.f32 1.0, %v7541_v8  ;;  %v4032_v33 = vmul.f32 0.5, %v6813_v41 }
 0x35c   : > { %v4482_v38 = vpack.c.bf16 %v8868_v18, %v8858_v44  ;;  %v6814_v23 = vadd.f32 %v8883_v31, %v8806_v59  ;;  %v8945_v61 = vpop.f32.mrb[56].mxu0  ;;  %v7545_v52 = vpop.eup %7544  ;;  %v4265_v0 = vadd.f32 1.0, %v7543_v29  ;;  %v4034_v28 = vmul.f32 0.5, %v6845_v45 }
 0x35d   : > { %5286 = vmatmul.mubr.bf16.gmra.mrb[100].mxu0 %v4480_v57  ;;  %v6846_v49 = vadd.f32 %v8886_v26, %v8808_v30  ;;  %v6815_v37 = vadd.f32 %v3588_v53, %v8802_v19  ;;  %v8950_v34 = vpop.f32.mrb[56].mxu1  ;;  %v8952_v63 = vpop.f32.mrb[57].mxu0  ;;  %v4267_v44 = vadd.f32 1.0, %v7545_v52  ;;  %7562 = vtanh.f32 %v4032_v33 }
 0x35e   : > { %v7547_v43 = vpop.eup %7546  ;;  %5383 = vmatmul.mubr.bf16.gmra.mrb[100].mxu1 %v4482_v38  ;;  %v4033_v18 = vmul.f32 0.5, %v6814_v23  ;;  %v6847_v31 = vadd.f32 %v3927_v46, %v8804_v48  ;;  %v8955_v1 = vpop.f32.mrb[57].mxu1  ;;  %v8959_v9 = vmul.f32 0.5, %v4264_v60  ;;  %7564 = vtanh.f32 %v4034_v28 }
 0x35f   : > { %v8957_v56 = vpop.f32.mrb[58].mxu0  ;;  %v7549_v51 = vpop.eup %7548  ;;  %v4272_v26 = vadd.f32 1.0, %v7547_v43  ;;  %v4035_v12 = vmul.f32 0.5, %v6846_v49  ;;  %v8965_v22 = vmul.f32 0.5, %v4266_v58  ;;  %v4040_v46 = vmul.f32 0.5, %v6815_v37 }
 0x360   : > { %v8961_v53 = vpop.f32.mrb[58].mxu1  ;;  %v8963_v7 = vpop.f32.mrb[59].mxu0  ;;  %v4274_v4 = vadd.f32 1.0, %v7549_v51  ;;  %7566 = vtanh.f32 %v4033_v18  ;;  %v8969_v27 = vmul.f32 0.5, %v4265_v0  ;;  %v4042_v36 = vmul.f32 0.5, %v6847_v31 }
 0x361   : > { %v7551_v13 = vpop.eup %7550  ;;  %v8967_v54 = vpop.f32.mrb[59].mxu1  ;;  %7568 = vtanh.f32 %v4035_v12  ;;  %v8971_v17 = vmul.f32 0.5, %v4267_v44  ;;  %v6816_v10 = vadd.f32 %v8908_v25, %v8806_v59  ;;  %v8975_v3 = vmul.f32 0.5, %v4272_v26 }
 0x362   : > { %v7553_v55 = vpop.eup %7552  ;;  %v4273_v15 = vadd.f32 1.0, %v7551_v13  ;;  %7570 = vtanh.f32 %v4040_v46  ;;  %v6848_v6 = vadd.f32 %v8913_v14, %v8808_v30  ;;  %v8979_v41 = vmul.f32 0.5, %v4274_v4 }
 0x363   : > { %v7555_v42 = vpop.eup %7554  ;;  %v4275_v40 = vadd.f32 1.0, %v7553_v55  ;;  %7572 = vtanh.f32 %v4042_v36  ;;  %v4041_v57 = vmul.f32 0.5, %v6816_v10  ;;  %v4489_v29 = vpack.c.bf16 %v8931_v39, %v8902_v50 }
 0x364   : > { %v7557_v24 = vpop.eup %7556  ;;  %v4280_v8 = vadd.f32 1.0, %v7555_v42  ;;  %v8983_v58 = vpop.f32.mrb[60].mxu0  ;;  %v8985_v25 = vmul.f32 0.5, %v4273_v15  ;;  %v4043_v23 = vmul.f32 0.5, %v6848_v6  ;;  %v4491_v52 = vpack.c.bf16 %v8935_v32, %v8921_v62 }
 0x365   : > { %v7559_v60 = vpop.eup %7558  ;;  %v4282_v45 = vadd.f32 1.0, %v7557_v24  ;;  %v8987_v38 = vmul.f32 0.5, %v4275_v40  ;;  %v8991_v14 = vpop.f32.mrb[60].mxu1  ;;  %7574 = vtanh.f32 %v4041_v57  ;;  %5293 = vmatprep.mubr.bf16.mxu0 %v4489_v29  ;;  %v6817_v50 = vadd.f32 %v8915_v20, %v8802_v19 }
 0x366   : > { %v7561_v33 = vpop.eup %7560  ;;  %v8993_v0 = vpop.f32.mrb[61].mxu0  ;;  %v8995_v28 = vmul.f32 0.5, %v4280_v8  ;;  %v4281_v49 = vadd.f32 1.0, %v7559_v60  ;;  %7576 = vtanh.f32 %v4043_v23  ;;  %5390 = vmatprep.mubr.bf16.mxu1 %v4491_v52  ;;  %v6849_v62 = vadd.f32 %v8917_v5, %v8804_v48 }
 0x367   : > { %v8999_v39 = vpop.f32.mrb[61].mxu1  ;;  %v9001_v37 = vpop.f32.mrb[62].mxu0  ;;  %v9003_v43 = vmul.f32 0.5, %v4282_v45  ;;  %v4488_v32 = vpack.c.bf16 %v8925_v35, %v8888_v47  ;;  %v4283_v20 = vadd.f32 1.0, %v7561_v33  ;;  %v4048_v51 = vmul.f32 0.5, %v6817_v50 }
 0x368   : > { %v9009_v44 = vpop.f32.mrb[62].mxu1  ;;  %v9011_v18 = vpop.f32.mrb[63].mxu0  ;;  %v4490_v26 = vpack.c.bf16 %v8927_v2, %v8893_v11  ;;  %v6818_v12 = vadd.f32 %v8919_v21, %v8806_v59  ;;  %v4050_v46 = vmul.f32 0.5, %v6849_v62  ;;  %v6850_v47 = vadd.f32 %v8923_v16, %v8808_v30 }
 0x369   : > { %v7563_v31 = vpop.eup %7562  ;;  %v9017_v13 = vpop.f32.mrb[63].mxu1  ;;  %5294 = vmatmul.mubr.bf16.gmra.mrb[104].mxu0 %v4488_v32  ;;  %v6819_v35 = vadd.f32 %v8945_v61, %v8802_v19  ;;  %7578 = vtanh.f32 %v4048_v51  ;;  %v6851_v21 = vadd.f32 %v8950_v34, %v8804_v48  ;;  %v9025_v36 = vmul.f32 0.5, %v4281_v49 }
 0x36a   : > { %v7565_v4 = vpop.eup %7564  ;;  %v4288_v5 = vadd.f32 1.0, %v7563_v31  ;;  %5391 = vmatmul.mubr.bf16.gmra.mrb[104].mxu1 %v4490_v26  ;;  %v4049_v11 = vmul.f32 0.5, %v6818_v12  ;;  %7580 = vtanh.f32 %v4050_v46  ;;  %v4051_v40 = vmul.f32 0.5, %v6850_v47 }
 0x36b   : > { %v7567_v55 = vpop.eup %7566  ;;  %v4290_v15 = vadd.f32 1.0, %v7565_v4  ;;  %v9027_v24 = vmul.f32 0.5, %v4283_v20  ;;  %v4056_v61 = vmul.f32 0.5, %v6819_v35  ;;  %v4058_v45 = vmul.f32 0.5, %v6851_v21 }
 0x36c   : > { %v7569_v2 = vpop.eup %7568  ;;  %v4289_v42 = vadd.f32 1.0, %v7567_v55  ;;  %7582 = vtanh.f32 %v4049_v11  ;;  %v9029_v6 = vmul.f32 0.5, %v4288_v5  ;;  %v6820_v29 = vadd.f32 %v8952_v63, %v8806_v59 }
 0x36d   : > { %v7571_v10 = vpop.eup %7570  ;;  %v4291_v16 = vadd.f32 1.0, %v7569_v2  ;;  %7584 = vtanh.f32 %v4051_v40  ;;  %v9031_v57 = vmul.f32 0.5, %v4290_v15  ;;  %v6852_v23 = vadd.f32 %v8955_v1, %v8808_v30 }
 0x36e   : > { %v7573_v8 = vpop.eup %7572  ;;  %v4296_v60 = vadd.f32 1.0, %v7571_v10  ;;  %7586 = vtanh.f32 %v4056_v61  ;;  %v9035_v33 = vmul.f32 0.5, %v4289_v42  ;;  %v4497_v52 = vpack.c.bf16 %v8985_v25, %v8969_v27 }
 0x36f   : > { %v4298_v34 = vadd.f32 1.0, %v7573_v8  ;;  %7588 = vtanh.f32 %v4058_v45  ;;  %v7575_v49 = vpop.eup %7574  ;;  %v9041_v50 = vmul.f32 0.5, %v4291_v16  ;;  %v4057_v62 = vmul.f32 0.5, %v6820_v29 }
 0x370   : > { %v4499_v32 = vpack.c.bf16 %v8987_v38, %v8971_v17  ;;  %v6821_v31 = vadd.f32 %v8957_v56, %v8802_v19  ;;  %v7577_v63 = vpop.eup %7576  ;;  %v9047_v20 = vmul.f32 0.5, %v4296_v60  ;;  %v4059_v51 = vmul.f32 0.5, %v6852_v23  ;;  %5301 = vmatprep.mubr.bf16.mxu0 %v4497_v52 }
 0x371   : > { %v6853_v1 = vadd.f32 %v8961_v53, %v8804_v48  ;;  %v4496_v27 = vpack.c.bf16 %v8975_v3, %v8959_v9  ;;  %v9053_v25 = vmul.f32 0.5, %v4298_v34  ;;  %7590 = vtanh.f32 %v4057_v62  ;;  %v9057_v56 = vpop.f32.mrb[64].mxu0 }
 0x372   : > { %5398 = vmatprep.mubr.bf16.mxu1 %v4499_v32  ;;  %v4064_v26 = vmul.f32 0.5, %v6821_v31  ;;  %v4498_v17 = vpack.c.bf16 %v8979_v41, %v8965_v22  ;;  %v9059_v38 = vpop.f32.mrb[64].mxu1  ;;  %v4297_v12 = vadd.f32 1.0, %v7575_v49  ;;  %7592 = vtanh.f32 %v4059_v51  ;;  %v9063_v9 = vpop.f32.mrb[65].mxu0 }
 0x373   : > { %v4066_v4 = vmul.f32 0.5, %v6853_v1  ;;  %5302 = vmatmul.mubr.bf16.gmra.mrb[108].mxu0 %v4496_v27  ;;  %v6822_v53 = vadd.f32 %v8963_v7, %v8806_v59  ;;  %v9065_v3 = vpop.f32.mrb[65].mxu1  ;;  %v7579_v5 = vpop.eup %7578  ;;  %v4299_v46 = vadd.f32 1.0, %v7577_v63  ;;  %v6854_v22 = vadd.f32 %v8967_v54, %v8808_v30 }
 0x374   : > { %7594 = vtanh.f32 %v4064_v26  ;;  %5399 = vmatmul.mubr.bf16.gmra.mrb[108].mxu1 %v4498_v17  ;;  %v6823_v41 = vadd.f32 %v8983_v58, %v8802_v19  ;;  %v9071_v47 = vpop.f32.mrb[66].mxu0  ;;  %v9073_v35 = vpop.f32.mrb[66].mxu1  ;;  %v4304_v7 = vadd.f32 1.0, %v7579_v5  ;;  %v6855_v11 = vadd.f32 %v8991_v14, %v8804_v48 }
 0x375   : > { %v7581_v55 = vpop.eup %7580  ;;  %7596 = vtanh.f32 %v4066_v4  ;;  %v4065_v15 = vmul.f32 0.5, %v6822_v53  ;;  %v9077_v21 = vpop.f32.mrb[67].mxu0  ;;  %v4067_v40 = vmul.f32 0.5, %v6854_v22  ;;  %v6824_v58 = vadd.f32 %v8993_v0, %v8806_v59 }
 0x376   : > { %v9079_v2 = vpop.f32.mrb[67].mxu1  ;;  %v7583_v42 = vpop.eup %7582  ;;  %v4306_v54 = vadd.f32 1.0, %v7581_v55  ;;  %v4072_v10 = vmul.f32 0.5, %v6823_v41  ;;  %v9083_v61 = vmul.f32 0.5, %v4297_v12  ;;  %v4074_v60 = vmul.f32 0.5, %v6855_v11 }
 0x377   : > { %v7585_v16 = vpop.eup %7584  ;;  %v4305_v8 = vadd.f32 1.0, %v7583_v42  ;;  %7598 = vtanh.f32 %v4065_v15  ;;  %v9085_v34 = vmul.f32 0.5, %v4299_v46  ;;  %v9087_v14 = vmul.f32 0.5, %v4304_v7 }
 0x378   : > { %v7587_v45 = vpop.eup %7586  ;;  %v4307_v29 = vadd.f32 1.0, %v7585_v16  ;;  %7600 = vtanh.f32 %v4067_v40  ;;  %v9089_v52 = vmul.f32 0.5, %v4306_v54  ;;  %v4073_v62 = vmul.f32 0.5, %v6824_v58 }
 0x379   : > { %v7589_v23 = vpop.eup %7588  ;;  %v4312_v49 = vadd.f32 1.0, %v7587_v45  ;;  %v6856_v0 = vadd.f32 %v8999_v39, %v8808_v30  ;;  %v4433_v32 = vmul.f32 0.5, %v4305_v8  ;;  %7602 = vtanh.f32 %v4072_v10 }
 0x37a   : > { %v4314_v31 = vadd.f32 1.0, %v7589_v23  ;;  %v4505_v63 = vpack.c.bf16 %v9035_v33, %v9025_v36  ;;  %v4435_v51 = vmul.f32 0.5, %v4307_v29  ;;  %7604 = vtanh.f32 %v4074_v60 }
 0x37b   : > { %v4075_v1 = vmul.f32 0.5, %v6856_v0  ;;  %v4507_v27 = vpack.c.bf16 %v9041_v50, %v9027_v24  ;;  %v7591_v26 = vpop.eup %7590  ;;  %v9097_v17 = vmul.f32 0.5, %v4312_v49  ;;  %v6825_v12 = vadd.f32 %v9001_v37, %v8802_v19 }
 0x37c   : > { %5309 = vmatprep.mubr.bf16.mxu0 %v4505_v63  ;;  %v6857_v39 = vadd.f32 %v9009_v44, %v8804_v48  ;;  %v4504_v4 = vpack.c.bf16 %v9029_v6, %v8995_v28  ;;  %v7593_v36 = vpop.eup %7592  ;;  %v9105_v33 = vmul.f32 0.5, %v4314_v31  ;;  %7606 = vtanh.f32 %v4073_v62  ;;  %v9113_v28 = vld [vmem:[#allocation10] ss:$0 sm:$0xff] }
 0x37d   : > { %5406 = vmatprep.mubr.bf16.mxu1 %v4507_v27  ;;  %v4506_v24 = vpack.c.bf16 %v9031_v57, %v9003_v43  ;;  %v6826_v50 = vadd.f32 %v9011_v18, %v8806_v59  ;;  %v4313_v5 = vadd.f32 1.0, %v7591_v26  ;;  %v4080_v19 = vmul.f32 0.5, %v6825_v12 }
 0x37e   : > { %v7595_v53 = vpop.eup %7594  ;;  %v4082_v37 = vmul.f32 0.5, %v6857_v39  ;;  %5310 = vmatmul.mubr.bf16.gmra.mrb[112].mxu0 %v4504_v4  ;;  %v6858_v48 = vadd.f32 %v9017_v13, %v8808_v30  ;;  %7608 = vtanh.f32 %v4075_v1  ;;  %v6429_v43 = vadd.f32 %v9063_v9, %v9057_v56 }
 0x37f   : > { %v7597_v44 = vpop.eup %7596  ;;  %v4320_v6 = vadd.f32 1.0, %v7595_v53  ;;  %5407 = vmatmul.mubr.bf16.gmra.mrb[112].mxu1 %v4506_v24  ;;  %v4081_v46 = vmul.f32 0.5, %v6826_v50  ;;  %v4315_v57 = vadd.f32 1.0, %v7593_v36  ;;  %7610 = vtanh.f32 %v4080_v19 }
 0x380   : > { %v4322_v59 = vadd.f32 1.0, %v7597_v44  ;;  %v4083_v18 = vmul.f32 0.5, %v6858_v48  ;;  %7612 = vtanh.f32 %v4082_v37  ;;  %v5086_v30 = vadd.f32 %v6429_v43, %v9113_v28 }
 0x381   : > { %v7599_v22 = vpop.eup %7598  ;;  %v9117_v41 = vmul.f32 0.5, %v4320_v6  ;;  %v6493_v13 = vadd.f32 %v9065_v3, %v9059_v38  ;;  %7614 = vtanh.f32 %v4081_v46  ;;  %v4513_v56 = vpack.c.bf16 %v4433_v32, %v9083_v61 }
 0x382   : > { %v7601_v55 = vpop.eup %7600  ;;  %v9122_v7 = vmul.f32 0.5, %v4322_v59  ;;  %v4321_v15 = vadd.f32 1.0, %v7599_v22  ;;  %7616 = vtanh.f32 %v4083_v18  ;;  %v4515_v42 = vpack.c.bf16 %v4435_v51, %v9085_v34 }
 0x383   : > { %v4323_v9 = vadd.f32 1.0, %v7601_v55  ;;  %v9125_v11 = vadd.f32 %v6493_v13, %v5086_v30  ;;  %v7603_v54 = vpop.eup %7602  ;;  %v4441_v40 = vmul.f32 0.5, %v4313_v5  ;;  %5317 = vmatprep.mubr.bf16.mxu0 %v4513_v56  ;;  %v4512_v38 = vpack.c.bf16 %v9087_v14, %v9047_v20 }
 0x384   : > { %v4449_v10 = vmul.f32 0.5, %v4321_v15  ;;  %v4514_v3 = vpack.c.bf16 %v9089_v52, %v9053_v25  ;;  %v7605_v58 = vpop.eup %7604  ;;  %v4443_v16 = vmul.f32 0.5, %v4315_v57  ;;  %5414 = vmatprep.mubr.bf16.mxu1 %v4515_v42  ;;  %v6432_v61 = vadd.f32 %v9077_v21, %v9071_v47 }
 0x385   : > { %v4451_v8 = vmul.f32 0.5, %v4323_v9  ;;  %v6496_v60 = vadd.f32 %v9079_v2, %v9073_v35  ;;  %v4520_v34 = vpack.c.bf16 %v9117_v41, %v9097_v17  ;;  %v4522_v23 = vpack.c.bf16 %v9122_v7, %v9105_v33 }
 0x386   : > { %5318 = vmatmul.mubr.bf16.gmra.mrb[116].mxu0 %v4512_v38  ;;  %v4521_v45 = vpack.c.bf16 %v4449_v10, %v4441_v40  ;;  %v7607_v29 = vpop.eup %7606  ;;  %v5089_v20 = vadd.f32 %v6432_v61, %v9113_v28  ;;  %v4328_v52 = vadd.f32 1.0, %v7603_v54  ;;  %v4330_v32 = vadd.f32 1.0, %v7605_v58 }
 0x387   : > { %5415 = vmatmul.mubr.bf16.gmra.mrb[116].mxu1 %v4514_v3  ;;  %v6433_v25 = vpop.f32.mrb[68].mxu0  ;;  %v4523_v14 = vpack.c.bf16 %v4451_v8, %v4443_v16  ;;  %v4329_v31 = vadd.f32 1.0, %v7607_v29 }
 0x388   : > { %v6434_v49 = vpop.f32.mrb[69].mxu0  ;;  %5325 = vmatprep.mubr.bf16.mxu0 %v4521_v45  ;;  %v7609_v47 = vpop.eup %7608  ;;  %v9141_v21 = vadd.f32 %v6496_v60, %v5089_v20  ;;  %v4456_v36 = vmul.f32 0.5, %v4328_v52  ;;  %v4458_v44 = vmul.f32 0.5, %v4330_v32 }
 0x389   : > { %v6497_v35 = vpop.f32.mrb[68].mxu1  ;;  %v6435_v2 = vadd.f32 %v6434_v49, %v6433_v25  ;;  %5422 = vmatprep.mubr.bf16.mxu1 %v4523_v14  ;;  %v6436_v62 = vpop.f32.mrb[70].mxu0  ;;  %v4331_v33 = vadd.f32 1.0, %v7609_v47  ;;  %v4457_v57 = vmul.f32 0.5, %v4329_v31 }
 0x38a   : > { %v7611_v0 = vpop.eup %7610  ;;  %v6498_v63 = vpop.f32.mrb[69].mxu1 }
 0x38b   : > { %v6437_v51 = vpop.f32.mrb[71].mxu0  ;;  %v7613_v1 = vpop.eup %7612  ;;  %v4336_v27 = vadd.f32 1.0, %v7611_v0  ;;  %v5094_v26 = vadd.f32 %v6435_v2, %v9113_v28  ;;  %v6499_v17 = vadd.f32 %v6498_v63, %v6497_v35  ;;  %v4459_v22 = vmul.f32 0.5, %v4331_v33 }
 0x38c   : > { %v6500_v12 = vpop.f32.mrb[70].mxu1  ;;  %v6438_v39 = vadd.f32 %v6437_v51, %v6436_v62  ;;  %v7615_v4 = vpop.eup %7614  ;;  %v4338_v24 = vadd.f32 1.0, %v7613_v1 }
 0x38d   : > { %v6501_v50 = vpop.f32.mrb[71].mxu1  ;;  %v7617_v53 = vpop.eup %7616  ;;  %v4464_v5 = vmul.f32 0.5, %v4336_v27  ;;  %v4337_v19 = vadd.f32 1.0, %v7615_v4  ;;  %v9144_v37 = vadd.f32 %v6499_v17, %v5094_v26 }
 0x38e   : > { %v5097_v48 = vadd.f32 %v6438_v39, %v9113_v28  ;;  %v4466_v6 = vmul.f32 0.5, %v4338_v24  ;;  %v4339_v46 = vadd.f32 1.0, %v7617_v53  ;;  %5326 = vmatmul.mubr.bf16.gmra.mrb[120].mxu0 %v4520_v34  ;;  %v6502_v43 = vadd.f32 %v6501_v50, %v6500_v12 }
 0x38f   : > { %v4465_v59 = vmul.f32 0.5, %v4337_v19  ;;  %5423 = vmatmul.mubr.bf16.gmra.mrb[120].mxu1 %v4522_v23  ;;  %v4528_v18 = vpack.c.bf16 %v4464_v5, %v4456_v36 }
 0x390   : > { %v4467_v41 = vmul.f32 0.5, %v4339_v46  ;;  %v9147_v30 = vadd.f32 %v6502_v43, %v5097_v48  ;;  %v4530_v13 = vpack.c.bf16 %v4466_v6, %v4458_v44 }
 0x391   : > { %v6439_v55 = vpop.f32.mrb[72].mxu0  ;;  %v4529_v7 = vpack.c.bf16 %v4465_v59, %v4457_v57 }
 0x392   : > { %v6440_v15 = vpop.f32.mrb[73].mxu0  ;;  %v4531_v56 = vpack.c.bf16 %v4467_v41, %v4459_v22 }
 0x393   : > { %v6503_v9 = vpop.f32.mrb[72].mxu1  ;;  %v6441_v42 = vadd.f32 %v6440_v15, %v6439_v55  ;;  %5333 = vmatprep.mubr.bf16.mxu0 %v4529_v7  ;;  %v6442_v54 = vpop.f32.mrb[74].mxu0 }
 0x394   : > { %v6504_v40 = vpop.f32.mrb[73].mxu1  ;;  %5430 = vmatprep.mubr.bf16.mxu1 %v4531_v56  ;;  %v6443_v10 = vpop.f32.mrb[75].mxu0 }
 0x395   : > { %v5102_v38 = vadd.f32 %v6441_v42, %v9113_v28  ;;  %v6505_v3 = vadd.f32 %v6504_v40, %v6503_v9  ;;  %v6506_v58 = vpop.f32.mrb[74].mxu1  ;;  %v6444_v16 = vadd.f32 %v6443_v10, %v6442_v54 }
 0x396   : > { %5334 = vmatmul.mubr.bf16.gmra.mrb[124].mxu0 %v4528_v18  ;;  %v6507_v8 = vpop.f32.mrb[75].mxu1 }
 0x397   : > { %v9150_v61 = vadd.f32 %v6505_v3, %v5102_v38  ;;  %5431 = vmatmul.mubr.bf16.gmra.mrb[124].mxu1 %v4530_v13  ;;  %v5105_v60 = vadd.f32 %v6444_v16, %v9113_v28  ;;  %v6508_v45 = vadd.f32 %v6507_v8, %v6506_v58 }
 0x399   : > { %v9153_v34 = vadd.f32 %v6508_v45, %v5105_v60  ;;  %v6445_v29 = vpop.f32.mrb[76].mxu0 }
 0x39a   : > { %v6446_v20 = vpop.f32.mrb[77].mxu0 }
 0x39b   : > { %v6509_v25 = vpop.f32.mrb[76].mxu1  ;;  %v6447_v14 = vadd.f32 %v6446_v20, %v6445_v29  ;;  %v6448_v23 = vpop.f32.mrb[78].mxu0 }
 0x39c   : > { %v6510_v52 = vpop.f32.mrb[77].mxu1  ;;  %v6449_v49 = vpop.f32.mrb[79].mxu0 }
 0x39d   : > { %v5110_v47 = vadd.f32 %v6447_v14, %v9113_v28  ;;  %v6511_v35 = vadd.f32 %v6510_v52, %v6509_v25  ;;  %v6512_v2 = vpop.f32.mrb[78].mxu1  ;;  %v6450_v62 = vadd.f32 %v6449_v49, %v6448_v23 }
 0x39e   : > { %v6513_v0 = vpop.f32.mrb[79].mxu1 }
 0x39f   : > { %v9156_v32 = vadd.f32 %v6511_v35, %v5110_v47  ;;  %v5113_v31 = vadd.f32 %v6450_v62, %v9113_v28  ;;  %v6514_v63 = vadd.f32 %v6513_v0, %v6512_v2 }
 0x3a1   : > { %v9159_v51 = vadd.f32 %v6514_v63, %v5113_v31  ;;  %v6451_v1 = vpop.f32.mrb[80].mxu0 }
 0x3a2   : > { %v6452_v27 = vpop.f32.mrb[81].mxu0 }
 0x3a3   : > { %v6515_v26 = vpop.f32.mrb[80].mxu1  ;;  %v6453_v17 = vadd.f32 %v6452_v27, %v6451_v1  ;;  %v6454_v12 = vpop.f32.mrb[82].mxu0  ;;  %v7355_v1 = vld [vmem:[#allocation11 + $0x8] sm:$0xff]  }
 0x3a4   : > { %v6516_v39 = vpop.f32.mrb[81].mxu1  ;;  %v6455_v4 = vpop.f32.mrb[83].mxu0  ;;  %6685 = vmatprep.subr.bf16.mxu0 %v7355_v1  ;;  %6716 = vmatprep.subr.bf16.mxu1 %v7355_v1 }
 0x3a5   : > { %v5118_v36 = vadd.f32 %v6453_v17, %v9113_v28  ;;  %v6517_v33 = vadd.f32 %v6516_v39, %v6515_v26  ;;  %v6518_v24 = vpop.f32.mrb[82].mxu1  ;;  %v6456_v50 = vadd.f32 %v6455_v4, %v6454_v12  ;;  %6686 = vmatpush3.bf16.msra.mxu0 %v7355_v1  ;;  %6724 = vmatpush3.bf16.msra.mxu1 %v7355_v1 }
 0x3a6   : > { %v6519_v53 = vpop.f32.mrb[83].mxu1 }
 0x3a7   : > { %v9162_v5 = vadd.f32 %v6517_v33, %v5118_v36  ;;  %v5121_v19 = vadd.f32 %v6456_v50, %v9113_v28  ;;  %v6520_v48 = vadd.f32 %v6519_v53, %v6518_v24  ;;  %v7356_v50 = vld [vmem:[#allocation11 + $0x10] sm:$0xff]   ;;  %v7357_v53 = vld [vmem:[#allocation11 + $0x18] sm:$0xff]  }
 0x3a8   : > { %6687 = vmatprep.subr.bf16.mxu0 %v7356_v50  ;;  %6717 = vmatprep.subr.bf16.mxu1 %v7356_v50 }
 0x3a9   : > { %v9165_v44 = vadd.f32 %v6520_v48, %v5121_v19  ;;  %v6457_v6 = vpop.f32.mrb[84].mxu0  ;;  %6688 = vmatpush3.bf16.msra.mxu0 %v7356_v50  ;;  %6725 = vmatpush3.bf16.msra.mxu1 %v7356_v50  ;;  %v7358_v19 = vld [vmem:[#allocation11 + $0x20] sm:$0xff]   ;;  %v7360_v48 = vld [vmem:[#allocation11 + $0x30] sm:$0xff]  }
 0x3aa   : > { %v6458_v46 = vpop.f32.mrb[85].mxu0  ;;  %6689 = vmatprep.subr.bf16.mxu0 %v7357_v53  ;;  %6718 = vmatprep.subr.bf16.mxu1 %v7357_v53 }
 0x3ab   : > { %v6521_v43 = vpop.f32.mrb[84].mxu1  ;;  %v6459_v57 = vadd.f32 %v6458_v46, %v6457_v6  ;;  %v6460_v59 = vpop.f32.mrb[86].mxu0  ;;  %v7361_v6 = vld [vmem:[#allocation11 + $0x38] sm:$0xff]  }
 0x3ac   : > { %v6522_v18 = vpop.f32.mrb[85].mxu1  ;;  %v6461_v22 = vpop.f32.mrb[87].mxu0 }
 0x3ad   : > { %v5126_v41 = vadd.f32 %v6459_v57, %v9113_v28  ;;  %v6523_v13 = vadd.f32 %v6522_v18, %v6521_v43  ;;  %v6524_v55 = vpop.f32.mrb[86].mxu1  ;;  %v6462_v7 = vadd.f32 %v6461_v22, %v6460_v59  ;;  %6690 = vmatpush3.bf16.msra.mxu0 %v7357_v53  ;;  %6726 = vmatpush3.bf16.msra.mxu1 %v7357_v53 }
 0x3ae   : > { %v6525_v15 = vpop.f32.mrb[87].mxu1  ;;  %6691 = vmatprep.subr.bf16.mxu0 %v7358_v19  ;;  %6719 = vmatprep.subr.bf16.mxu1 %v7358_v19 }
 0x3af   : > { %v9168_v56 = vadd.f32 %v6523_v13, %v5126_v41  ;;  %v5129_v9 = vadd.f32 %v6462_v7, %v9113_v28  ;;  %v6526_v42 = vadd.f32 %v6525_v15, %v6524_v55 }
 0x3b1   : > { %v9171_v54 = vadd.f32 %v6526_v42, %v5129_v9  ;;  %v6463_v40 = vpop.f32.mrb[88].mxu0  ;;  %6692 = vmatpush3.bf16.msra.mxu0 %v7358_v19  ;;  %6727 = vmatpush3.bf16.msra.mxu1 %v7358_v19 }
 0x3b2   : > { %v6464_v10 = vpop.f32.mrb[89].mxu0 }
 0x3b3   : > { %v6527_v38 = vpop.f32.mrb[88].mxu1  ;;  %v6465_v3 = vadd.f32 %v6464_v10, %v6463_v40  ;;  %v6466_v58 = vpop.f32.mrb[90].mxu0 }
 0x3b4   : > { %v6528_v16 = vpop.f32.mrb[89].mxu1  ;;  %v6467_v8 = vpop.f32.mrb[91].mxu0 }
 0x3b5   : > { %v5134_v60 = vadd.f32 %v6465_v3, %v9113_v28  ;;  %v6529_v45 = vadd.f32 %v6528_v16, %v6527_v38  ;;  %v6530_v29 = vpop.f32.mrb[90].mxu1  ;;  %v6468_v20 = vadd.f32 %v6467_v8, %v6466_v58 }
 0x3b6   : > { %v6531_v25 = vpop.f32.mrb[91].mxu1 }
 0x3b7   : > { %v9174_v14 = vadd.f32 %v6529_v45, %v5134_v60  ;;  %v5137_v23 = vadd.f32 %v6468_v20, %v9113_v28  ;;  %v6532_v52 = vadd.f32 %v6531_v25, %v6530_v29 }
 0x3b9   : > { %v9177_v49 = vadd.f32 %v6532_v52, %v5137_v23  ;;  %v6469_v47 = vpop.f32.mrb[92].mxu0 }
 0x3ba   : > { %v6470_v35 = vpop.f32.mrb[93].mxu0 }
 0x3bb   : > { %v6533_v2 = vpop.f32.mrb[92].mxu1  ;;  %v6471_v62 = vadd.f32 %v6470_v35, %v6469_v47  ;;  %v6472_v0 = vpop.f32.mrb[94].mxu0 }
 0x3bc   : > { %v6534_v31 = vpop.f32.mrb[93].mxu1  ;;  %v6473_v63 = vpop.f32.mrb[95].mxu0 }
 0x3bd   : > { %v5142_v27 = vadd.f32 %v6471_v62, %v9113_v28  ;;  %v6535_v26 = vadd.f32 %v6534_v31, %v6533_v2  ;;  %v6536_v17 = vpop.f32.mrb[94].mxu1  ;;  %v6474_v12 = vadd.f32 %v6473_v63, %v6472_v0 }
 0x3be   : > { %v6537_v39 = vpop.f32.mrb[95].mxu1 }
 0x3bf   : > { %v9180_v4 = vadd.f32 %v6535_v26, %v5142_v27  ;;  %v5145_v36 = vadd.f32 %v6474_v12, %v9113_v28  ;;  %v6538_v33 = vadd.f32 %v6537_v39, %v6536_v17  ;;  %v7359_v28 = vld [vmem:[#allocation11 + $0x28] sm:$0xff]  }
 0x3c0   : > { %6693 = vmatprep.subr.bf16.mxu0 %v7359_v28  ;;  %6720 = vmatprep.subr.bf16.mxu1 %v7359_v28 }
 0x3c1   : > { %v9183_v24 = vadd.f32 %v6538_v33, %v5145_v36  ;;  %6694 = vmatpush3.bf16.msra.mxu0 %v7359_v28  ;;  %6728 = vmatpush3.bf16.msra.mxu1 %v7359_v28 }
 0x3c2   : > { %6695 = vmatprep.subr.bf16.mxu0 %v7360_v48  ;;  %6721 = vmatprep.subr.bf16.mxu1 %v7360_v48 }
 0x3c5   : > { %6696 = vmatpush3.bf16.msra.mxu0 %v7360_v48  ;;  %6729 = vmatpush3.bf16.msra.mxu1 %v7360_v48 }
 0x3c6   : > { %6697 = vmatprep.subr.bf16.mxu0 %v7361_v6  ;;  %6722 = vmatprep.subr.bf16.mxu1 %v7361_v6 }
 0x3c9   : > { %6698 = vmatpush3.bf16.msra.mxu0 %v7361_v6  ;;  %6730 = vmatpush3.bf16.msra.mxu1 %v7361_v6 }
 0x423   : > { %v6555_v46 = vpop.f32.mrb[96].mxu0 }
 0x424   : > { %v6619_v43 = vpop.f32.mrb[96].mxu1  ;;  %v6556_v57 = vpop.f32.mrb[97].mxu0 }
 0x425   : > { %v6620_v59 = vpop.f32.mrb[97].mxu1  ;;  %v6557_v18 = vadd.f32 %v6556_v57, %v6555_v46  ;;  %v6558_v41 = vpop.f32.mrb[98].mxu0 }
 0x426   : > { %v6621_v22 = vadd.f32 %v6620_v59, %v6619_v43  ;;  %v6622_v13 = vpop.f32.mrb[98].mxu1  ;;  %v6559_v55 = vpop.f32.mrb[99].mxu0 }
 0x427   : > { %v6623_v7 = vpop.f32.mrb[99].mxu1  ;;  %v5280_v15 = vadd.f32 %v6557_v18, %v9125_v11  ;;  %v6560_v9 = vadd.f32 %v6559_v55, %v6558_v41 }
 0x428   : > { %v6624_v42 = vadd.f32 %v6623_v7, %v6622_v13 }
 0x429   : > { %v5377_v40 = vadd.f32 %v6621_v22, %v5280_v15  ;;  %v5283_v10 = vadd.f32 %v6560_v9, %v9141_v21 }
 0x42b   : > { %v5439_v38 = vmul.f32 0.5, %v5377_v40  ;;  %v5380_v3 = vadd.f32 %v6624_v42, %v5283_v10 }
 0x42d   : > { %7618 = vtanh.f32 %v5439_v38  ;;  %v5440_v58 = vmul.f32 0.5, %v5380_v3 }
 0x42f   : > { %7620 = vtanh.f32 %v5440_v58 }
 0x430   : > { %v6561_v16 = vpop.f32.mrb[100].mxu0 }
 0x431   : > { %v6625_v8 = vpop.f32.mrb[100].mxu1  ;;  %v6562_v60 = vpop.f32.mrb[101].mxu0 }
 0x432   : > { %v6563_v45 = vadd.f32 %v6562_v60, %v6561_v16  ;;  %v6626_v29 = vpop.f32.mrb[101].mxu1  ;;  %v6564_v20 = vpop.f32.mrb[102].mxu0 }
 0x433   : > { %v6627_v25 = vadd.f32 %v6626_v29, %v6625_v8  ;;  %v6628_v23 = vpop.f32.mrb[102].mxu1  ;;  %v6565_v52 = vpop.f32.mrb[103].mxu0 }
 0x434   : > { %v5288_v11 = vadd.f32 %v6563_v45, %v9144_v37  ;;  %v6566_v47 = vadd.f32 %v6565_v52, %v6564_v20  ;;  %v6629_v35 = vpop.f32.mrb[103].mxu1 }
 0x435   : > { %v6630_v2 = vadd.f32 %v6629_v35, %v6628_v23 }
 0x436   : > { %v5385_v21 = vadd.f32 %v6627_v25, %v5288_v11  ;;  %v5291_v62 = vadd.f32 %v6566_v47, %v9147_v30 }
 0x437   : > { %v7619_v63 = vpop.eup %7618 }
 0x438   : > { %v5441_v0 = vmul.f32 0.5, %v5385_v21  ;;  %v5388_v31 = vadd.f32 %v6630_v2, %v5291_v62  ;;  %v5471_v1 = vadd.f32 1.0, %v7619_v63 }
 0x439   : > { %v7621_v26 = vpop.eup %7620 }
 0x43a   : > { %7622 = vtanh.f32 %v5441_v0  ;;  %v5442_v27 = vmul.f32 0.5, %v5388_v31  ;;  %v5472_v17 = vadd.f32 1.0, %v7621_v26  ;;  %v5487_v53 = vmul.f32 0.5, %v5471_v1 }
 0x43c   : > { %7624 = vtanh.f32 %v5442_v27  ;;  %v6567_v12 = vpop.f32.mrb[104].mxu0  ;;  %v5488_v19 = vmul.f32 0.5, %v5472_v17 }
 0x43d   : > { %v6631_v39 = vpop.f32.mrb[104].mxu1  ;;  %v6568_v36 = vpop.f32.mrb[105].mxu0 }
 0x43e   : > { %v6569_v33 = vadd.f32 %v6568_v36, %v6567_v12  ;;  %v6632_v37 = vpop.f32.mrb[105].mxu1  ;;  %v6570_v50 = vpop.f32.mrb[106].mxu0  ;;  %v5503_v57 = vpack.c.bf16 %v5488_v19, %v5487_v53 }
 0x43f   : > { %v6633_v28 = vadd.f32 %v6632_v37, %v6631_v39  ;;  %v6634_v48 = vpop.f32.mrb[106].mxu1  ;;  %v6571_v30 = vpop.f32.mrb[107].mxu0 }
 0x440   : > { %v5296_v6 = vadd.f32 %v6569_v33, %v9150_v61  ;;  %v6572_v46 = vadd.f32 %v6571_v30, %v6570_v50  ;;  %v6635_v43 = vpop.f32.mrb[107].mxu1  ;;  %6699 = vmatprep.mubr.bf16.mxu0 %v5503_v57 }
 0x441   : > { %v6636_v59 = vadd.f32 %v6635_v43, %v6634_v48 }
 0x442   : > { %v5393_v18 = vadd.f32 %v6633_v28, %v5296_v6  ;;  %v5299_v22 = vadd.f32 %v6572_v46, %v9153_v34 }
 0x444   : > { %v7623_v41 = vpop.eup %7622  ;;  %v5443_v13 = vmul.f32 0.5, %v5393_v18  ;;  %v5396_v55 = vadd.f32 %v6636_v59, %v5299_v22 }
 0x445   : > { %v5473_v7 = vadd.f32 1.0, %v7623_v41 }
 0x446   : > { %v7625_v15 = vpop.eup %7624  ;;  %7626 = vtanh.f32 %v5443_v13  ;;  %v5444_v9 = vmul.f32 0.5, %v5396_v55  ;;  %v6573_v42 = vpop.f32.mrb[108].mxu0 }
 0x447   : > { %v5474_v40 = vadd.f32 1.0, %v7625_v15  ;;  %v6637_v10 = vpop.f32.mrb[108].mxu1  ;;  %v6574_v38 = vpop.f32.mrb[109].mxu0  ;;  %v5489_v16 = vmul.f32 0.5, %v5473_v7 }
 0x448   : > { %7628 = vtanh.f32 %v5444_v9  ;;  %v6575_v61 = vadd.f32 %v6574_v38, %v6573_v42  ;;  %v6638_v3 = vpop.f32.mrb[109].mxu1  ;;  %v6576_v58 = vpop.f32.mrb[110].mxu0 }
 0x449   : > { %v5490_v8 = vmul.f32 0.5, %v5474_v40  ;;  %v6639_v60 = vadd.f32 %v6638_v3, %v6637_v10  ;;  %v6640_v34 = vpop.f32.mrb[110].mxu1  ;;  %v6577_v45 = vpop.f32.mrb[111].mxu0 }
 0x44a   : > { %v5304_v29 = vadd.f32 %v6575_v61, %v9156_v32  ;;  %v6578_v20 = vadd.f32 %v6577_v45, %v6576_v58  ;;  %v6641_v25 = vpop.f32.mrb[111].mxu1 }
 0x44b   : > { %v5504_v23 = vpack.c.bf16 %v5490_v8, %v5489_v16  ;;  %v6642_v52 = vadd.f32 %v6641_v25, %v6640_v34 }
 0x44c   : > { %v5401_v11 = vadd.f32 %v6639_v60, %v5304_v29  ;;  %v5307_v47 = vadd.f32 %v6578_v20, %v9159_v51 }
 0x44d   : > { %6700 = vmatmul.mubr.bf16.vlgmr.msra.gmra.mrb[128].mxu0 %v5504_v23 }
 0x44e   : > { %v5445_v35 = vmul.f32 0.5, %v5401_v11  ;;  %v5404_v2 = vadd.f32 %v6642_v52, %v5307_v47 }
 0x450   : > { %v7627_v21 = vpop.eup %7626  ;;  %7630 = vtanh.f32 %v5445_v35  ;;  %v5446_v62 = vmul.f32 0.5, %v5404_v2 }
 0x451   : > { %v5475_v0 = vadd.f32 1.0, %v7627_v21  ;;  %v6579_v31 = vpop.f32.mrb[112].mxu0 }
 0x452   : > { %v7629_v63 = vpop.eup %7628  ;;  %7632 = vtanh.f32 %v5446_v62  ;;  %v6643_v1 = vpop.f32.mrb[112].mxu1 }
 0x453   : > { %v6580_v27 = vpop.f32.mrb[113].mxu0  ;;  %v5476_v32 = vadd.f32 1.0, %v7629_v63  ;;  %v6644_v17 = vpop.f32.mrb[113].mxu1  ;;  %v5491_v53 = vmul.f32 0.5, %v5475_v0 }
 0x454   : > { %v6581_v26 = vadd.f32 %v6580_v27, %v6579_v31  ;;  %v6582_v12 = vpop.f32.mrb[114].mxu0  ;;  %v6645_v39 = vadd.f32 %v6644_v17, %v6643_v1  ;;  %v6646_v36 = vpop.f32.mrb[114].mxu1 }
 0x455   : > { %v6583_v33 = vpop.f32.mrb[115].mxu0  ;;  %v6647_v50 = vpop.f32.mrb[115].mxu1  ;;  %v5492_v19 = vmul.f32 0.5, %v5476_v32 }
 0x456   : > { %v5312_v51 = vadd.f32 %v6581_v26, %v9162_v5  ;;  %v6584_v37 = vadd.f32 %v6583_v33, %v6582_v12  ;;  %v6648_v28 = vadd.f32 %v6647_v50, %v6646_v36 }
 0x457   : > { %v5505_v6 = vpack.c.bf16 %v5492_v19, %v5491_v53 }
 0x458   : > { %v5409_v48 = vadd.f32 %v6645_v39, %v5312_v51  ;;  %v5315_v30 = vadd.f32 %v6584_v37, %v9165_v44 }
 0x459   : > { %v6585_v57 = vpop.f32.mrb[116].mxu0  ;;  %6703 = vmatprep.mubr.bf16.mxu0 %v5505_v6 }
 0x45a   : > { %v5447_v46 = vmul.f32 0.5, %v5409_v48  ;;  %v5412_v43 = vadd.f32 %v6648_v28, %v5315_v30  ;;  %v7631_v59 = vpop.eup %7630  ;;  %v6649_v18 = vpop.f32.mrb[116].mxu1 }
 0x45b   : > { %v6586_v22 = vpop.f32.mrb[117].mxu0  ;;  %v5477_v41 = vadd.f32 1.0, %v7631_v59  ;;  %v6650_v55 = vpop.f32.mrb[117].mxu1 }
 0x45c   : > { %7634 = vtanh.f32 %v5447_v46  ;;  %v5448_v13 = vmul.f32 0.5, %v5412_v43  ;;  %v6587_v5 = vadd.f32 %v6586_v22, %v6585_v57  ;;  %v6588_v7 = vpop.f32.mrb[118].mxu0  ;;  %v7633_v15 = vpop.eup %7632  ;;  %v6651_v9 = vadd.f32 %v6650_v55, %v6649_v18 }
 0x45d   : > { %v6652_v42 = vpop.f32.mrb[118].mxu1  ;;  %v6589_v40 = vpop.f32.mrb[119].mxu0  ;;  %v5478_v10 = vadd.f32 1.0, %v7633_v15  ;;  %v5493_v8 = vmul.f32 0.5, %v5477_v41 }
 0x45e   : > { %7636 = vtanh.f32 %v5448_v13  ;;  %v5320_v44 = vadd.f32 %v6587_v5, %v9168_v56  ;;  %v6590_v38 = vadd.f32 %v6589_v40, %v6588_v7  ;;  %v6653_v61 = vpop.f32.mrb[119].mxu1 }
 0x45f   : > { %v6654_v3 = vadd.f32 %v6653_v61, %v6652_v42  ;;  %v5494_v60 = vmul.f32 0.5, %v5478_v10 }
 0x460   : > { %v5417_v58 = vadd.f32 %v6651_v9, %v5320_v44  ;;  %v5323_v16 = vadd.f32 %v6590_v38, %v9171_v54 }
 0x461   : > { %v6591_v29 = vpop.f32.mrb[120].mxu0  ;;  %v5506_v20 = vpack.c.bf16 %v5494_v60, %v5493_v8 }
 0x462   : > { %v5449_v34 = vmul.f32 0.5, %v5417_v58  ;;  %v5420_v45 = vadd.f32 %v6654_v3, %v5323_v16  ;;  %v6655_v25 = vpop.f32.mrb[120].mxu1  ;;  %v6592_v23 = vpop.f32.mrb[121].mxu0 }
 0x463   : > { %v6593_v11 = vadd.f32 %v6592_v23, %v6591_v29  ;;  %v6656_v47 = vpop.f32.mrb[121].mxu1  ;;  %v6594_v35 = vpop.f32.mrb[122].mxu0  ;;  %6704 = vmatmul.mubr.bf16.gmra.mrb[132].mxu0 %v5506_v20 }
 0x464   : > { %7638 = vtanh.f32 %v5449_v34  ;;  %v5450_v52 = vmul.f32 0.5, %v5420_v45  ;;  %v6657_v56 = vadd.f32 %v6656_v47, %v6655_v25  ;;  %v6658_v2 = vpop.f32.mrb[122].mxu1  ;;  %v6595_v21 = vpop.f32.mrb[123].mxu0  ;;  %v9201_v25 = vld [vmem:[#allocation13] ss:$0 sm:$0xff] }
 0x465   : > { %v5328_v54 = vadd.f32 %v6593_v11, %v9174_v14  ;;  %v6596_v0 = vadd.f32 %v6595_v21, %v6594_v35  ;;  %v6659_v31 = vpop.f32.mrb[123].mxu1 }
 0x466   : > { %v7635_v62 = vpop.eup %7634  ;;  %7640 = vtanh.f32 %v5450_v52  ;;  %v6660_v1 = vadd.f32 %v6659_v31, %v6658_v2 }
 0x467   : > { %v5479_v63 = vadd.f32 1.0, %v7635_v62  ;;  %v5425_v32 = vadd.f32 %v6657_v56, %v5328_v54  ;;  %v5331_v26 = vadd.f32 %v6596_v0, %v9177_v49 }
 0x468   : > { %v7637_v27 = vpop.eup %7636 }
 0x469   : > { %v5480_v17 = vadd.f32 1.0, %v7637_v27  ;;  %v5451_v12 = vmul.f32 0.5, %v5425_v32  ;;  %v5428_v39 = vadd.f32 %v6660_v1, %v5331_v26  ;;  %v6597_v36 = vpop.f32.mrb[124].mxu0  ;;  %v5495_v37 = vmul.f32 0.5, %v5479_v63 }
 0x46a   : > { %v6661_v33 = vpop.f32.mrb[124].mxu1  ;;  %v6598_v51 = vpop.f32.mrb[125].mxu0 }
 0x46b   : > { %v5496_v50 = vmul.f32 0.5, %v5480_v17  ;;  %7642 = vtanh.f32 %v5451_v12  ;;  %v5452_v53 = vmul.f32 0.5, %v5428_v39  ;;  %v6599_v19 = vadd.f32 %v6598_v51, %v6597_v36  ;;  %v6662_v14 = vpop.f32.mrb[125].mxu1  ;;  %v6600_v28 = vpop.f32.mrb[126].mxu0 }
 0x46c   : > { %v6663_v48 = vadd.f32 %v6662_v14, %v6661_v33  ;;  %v6664_v30 = vpop.f32.mrb[126].mxu1  ;;  %v6601_v6 = vpop.f32.mrb[127].mxu0 }
 0x46d   : > { %v5507_v46 = vpack.c.bf16 %v5496_v50, %v5495_v37  ;;  %7644 = vtanh.f32 %v5452_v53  ;;  %v5336_v49 = vadd.f32 %v6599_v19, %v9180_v4  ;;  %v6602_v57 = vadd.f32 %v6601_v6, %v6600_v28  ;;  %v6665_v59 = vpop.f32.mrb[127].mxu1 }
 0x46e   : > { %v7639_v43 = vpop.eup %7638  ;;  %v6666_v22 = vadd.f32 %v6665_v59, %v6664_v30 }
 0x46f   : > { %v5481_v18 = vadd.f32 1.0, %v7639_v43  ;;  %6707 = vmatprep.mubr.bf16.mxu1 %v5507_v46  ;;  %v5433_v13 = vadd.f32 %v6663_v48, %v5336_v49  ;;  %v5339_v5 = vadd.f32 %v6602_v57, %v9183_v24 }
 0x470   : > { %v7641_v41 = vpop.eup %7640 }
 0x471   : > { %v5482_v55 = vadd.f32 1.0, %v7641_v41  ;;  %v5453_v7 = vmul.f32 0.5, %v5433_v13  ;;  %v5436_v15 = vadd.f32 %v6666_v22, %v5339_v5  ;;  %v5497_v9 = vmul.f32 0.5, %v5481_v18 }
 0x473   : > { %v5498_v42 = vmul.f32 0.5, %v5482_v55  ;;  %7646 = vtanh.f32 %v5453_v7  ;;  %v5454_v40 = vmul.f32 0.5, %v5436_v15 }
 0x475   : > { %v5508_v10 = vpack.c.bf16 %v5498_v42, %v5497_v9  ;;  %v7643_v44 = vpop.eup %7642  ;;  %7648 = vtanh.f32 %v5454_v40 }
 0x476   : > { %v5483_v4 = vadd.f32 1.0, %v7643_v44 }
 0x477   : > { %6708 = vmatmul.mubr.bf16.vlgmr.msra.gmra.mrb[128].mxu1 %v5508_v10  ;;  %v7645_v38 = vpop.eup %7644 }
 0x478   : > { %v5484_v61 = vadd.f32 1.0, %v7645_v38  ;;  %v5499_v3 = vmul.f32 0.5, %v5483_v4 }
 0x47a   : > { %v5500_v58 = vmul.f32 0.5, %v5484_v61 }
 0x47c   : > { %v5509_v16 = vpack.c.bf16 %v5500_v58, %v5499_v3 }
 0x47d   : > { %v7647_v8 = vpop.eup %7646 }
 0x47e   : > { %v5485_v60 = vadd.f32 1.0, %v7647_v8  ;;  %6711 = vmatprep.mubr.bf16.mxu1 %v5509_v16 }
 0x47f   : > { %v7649_v24 = vpop.eup %7648 }
 0x480   : > { %v5486_v34 = vadd.f32 1.0, %v7649_v24  ;;  %v5501_v45 = vmul.f32 0.5, %v5485_v60 }
 0x482   : > { %v5502_v29 = vmul.f32 0.5, %v5486_v34 }
 0x484   : > { %v5510_v20 = vpack.c.bf16 %v5502_v29, %v5501_v45 }
 0x486   : > { %6712 = vmatmul.mubr.bf16.gmra.mrb[132].mxu1 %v5510_v20 }
 0x520   : > { %v6701_v23 = vpop.f32.mrb[128].mxu0 }
 0x521   : > { %v5625_v52 = vadd.f32 %v6701_v23, %v9201_v25  ;;  %v5616_v11 = vpop.f32.mrb[129].mxu0 }
 0x522   : > { %v5617_v47 = vadd.f32 %v9201_v25, %v5616_v11  ;;  %v6702_v35 = vpop.f32.mrb[130].mxu0 }
 0x523   : > { %v5683_v56 = vmul.f32 1.442695, %v5625_v52  ;;  %v5628_v2 = vadd.f32 %v6702_v35, %v9201_v25  ;;  %v5619_v21 = vpop.f32.mrb[131].mxu0 }
 0x524   : > { %v5679_v62 = vmul.f32 1.442695, %v5617_v47  ;;  %v5620_v54 = vadd.f32 %v9201_v25, %v5619_v21 }
 0x525   : > { %7650 = vpow2.f32 %v5683_v56  ;;  %v5685_v0 = vmul.f32 1.442695, %v5628_v2 }
 0x526   : > { %7652 = vpow2.f32 %v5679_v62  ;;  %v5681_v31 = vmul.f32 1.442695, %v5620_v54 }
 0x527   : > { %7654 = vpow2.f32 %v5685_v0 }
 0x528   : > { %7656 = vpow2.f32 %v5681_v31 }
 0x52f   : > { %v9207_v63 = vpop.eup %7650 }
 0x530   : > { %v9209_v1 = vpop.eup %7652  ;;  %5715 = vadd.xlane.f32.xlu1 %v9207_v63 }
 0x531   : > { %5711 = vadd.xlane.f32.xlu0 %v9209_v1  ;;  %v9213_v27 = vpop.eup %7654 }
 0x532   : > { %v9215_v32 = vpop.eup %7656 }
 0x534   : > { %5717 = vadd.xlane.f32.xlu1 %v9213_v27 }
 0x535   : > { %5713 = vadd.xlane.f32.xlu0 %v9215_v32 }
 0x536   : > { %v6705_v26 = vpop.f32.mrb[132].mxu0 }
 0x537   : > { %v5641_v17 = vadd.f32 %v6705_v26, %v9201_v25  ;;  %v5632_v12 = vpop.f32.mrb[133].mxu0 }
 0x538   : > { %v5633_v39 = vadd.f32 %v9201_v25, %v5632_v12  ;;  %v6706_v36 = vpop.f32.mrb[134].mxu0 }
 0x539   : > { %v5691_v33 = vmul.f32 1.442695, %v5641_v17  ;;  %v5644_v51 = vadd.f32 %v6706_v36, %v9201_v25  ;;  %v5635_v37 = vpop.f32.mrb[135].mxu0 }
 0x53a   : > { %v5636_v50 = vadd.f32 %v9201_v25, %v5635_v37  ;;  %v5687_v53 = vmul.f32 1.442695, %v5633_v39 }
 0x53b   : > { %7658 = vpow2.f32 %v5691_v33  ;;  %v5693_v19 = vmul.f32 1.442695, %v5644_v51 }
 0x53c   : > { %v5689_v14 = vmul.f32 1.442695, %v5636_v50 }
 0x53d   : > { %7660 = vpow2.f32 %v5693_v19 }
 0x53e   : > { %7662 = vpow2.f32 %v5687_v53 }
 0x53f   : > { %7664 = vpow2.f32 %v5689_v14 }
 0x545   : > { %v9223_v28 = vpop.eup %7658 }
 0x546   : > { %5723 = vadd.xlane.f32.xlu0 %v9223_v28 }
 0x547   : > { %v9226_v48 = vpop.eup %7660 }
 0x548   : > { %5725 = vadd.xlane.f32.xlu1 %v9226_v48  ;;  %v9229_v30 = vpop.eup %7662 }
 0x549   : > { %v9233_v49 = vpop.eup %7664 }
 0x54a   : > { %v6709_v6 = vpop.f32.mrb[128].mxu1  ;;  %5719 = vadd.xlane.f32.xlu0 %v9229_v30 }
 0x54b   : > { %v5657_v46 = vadd.f32 %v6709_v6, %v9201_v25  ;;  %v5648_v43 = vpop.f32.mrb[129].mxu1 }
 0x54c   : > { %v5649_v57 = vadd.f32 %v9201_v25, %v5648_v43  ;;  %v6710_v59 = vpop.f32.mrb[130].mxu1  ;;  %5721 = vadd.xlane.f32.xlu1 %v9233_v49 }
 0x54d   : > { %v5699_v18 = vmul.f32 1.442695, %v5657_v46  ;;  %v5660_v22 = vadd.f32 %v6710_v59, %v9201_v25  ;;  %v5651_v41 = vpop.f32.mrb[131].mxu1 }
 0x54e   : > { %v5652_v13 = vadd.f32 %v9201_v25, %v5651_v41  ;;  %v5695_v5 = vmul.f32 1.442695, %v5649_v57 }
 0x54f   : > { %7666 = vpow2.f32 %v5699_v18  ;;  %v5701_v55 = vmul.f32 1.442695, %v5660_v22 }
 0x550   : > { %v5697_v7 = vmul.f32 1.442695, %v5652_v13 }
 0x551   : > { %7668 = vpow2.f32 %v5701_v55 }
 0x552   : > { %7670 = vpow2.f32 %v5695_v5 }
 0x553   : > { %7672 = vpow2.f32 %v5697_v7 }
 0x559   : > { %v9239_v15 = vpop.eup %7666  ;;  %v6713_v9 = vpop.f32.mrb[132].mxu1 }
 0x55a   : > { %5731 = vadd.xlane.f32.xlu0 %v9239_v15  ;;  %v5664_v40 = vpop.f32.mrb[133].mxu1  ;;  %v5673_v10 = vadd.f32 %v6713_v9, %v9201_v25 }
 0x55b   : > { %v9242_v42 = vpop.eup %7668  ;;  %v5665_v44 = vadd.f32 %v9201_v25, %v5664_v40  ;;  %v6714_v4 = vpop.f32.mrb[134].mxu1 }
 0x55c   : > { %5733 = vadd.xlane.f32.xlu1 %v9242_v42  ;;  %v9247_v38 = vpop.eup %7670  ;;  %v5676_v61 = vadd.f32 %v6714_v4, %v9201_v25  ;;  %v5667_v3 = vpop.f32.mrb[135].mxu1  ;;  %v5707_v60 = vmul.f32 1.442695, %v5673_v10 }
 0x55d   : > { %v5703_v58 = vmul.f32 1.442695, %v5665_v44  ;;  %v5668_v16 = vadd.f32 %v9201_v25, %v5667_v3  ;;  %v9252_v8 = vpop.eup %7672 }
 0x55e   : > { %5727 = vadd.xlane.f32.xlu0 %v9247_v38  ;;  %v5709_v34 = vmul.f32 1.442695, %v5676_v61 }
 0x55f   : > { %7674 = vpow2.f32 %v5703_v58  ;;  %v5705_v24 = vmul.f32 1.442695, %v5668_v16 }
 0x560   : > { %5729 = vadd.xlane.f32.xlu1 %v9252_v8 }
 0x561   : > { %7676 = vpow2.f32 %v5705_v24 }
 0x562   : > { %7678 = vpow2.f32 %v5707_v60 }
 0x563   : > { %7680 = vpow2.f32 %v5709_v34 }
 0x569   : > { %v9255_v45 = vpop.eup %7674 }
 0x56a   : > { %5735 = vadd.xlane.f32.xlu0 %v9255_v45 }
 0x56b   : > { %v9258_v29 = vpop.eup %7676 }
 0x56c   : > { %5737 = vadd.xlane.f32.xlu1 %v9258_v29  ;;  %v9261_v20 = vpop.eup %7678 }
 0x56d   : > { %v9264_v25 = vpop.eup %7680 }
 0x56e   : > { %5739 = vadd.xlane.f32.xlu0 %v9261_v20 }
 0x570   : > { %5741 = vadd.xlane.f32.xlu1 %v9264_v25 }
 0x5bd   : > { %v5716_v23 = vpop.xlane.xlu1 %5715 }
 0x5be   : > { %7682 = vrcp.f32 %v5716_v23  ;;  %v5712_v52 = vpop.xlane.xlu0 %5711 }
 0x5bf   : > { %7684 = vrcp.f32 %v5712_v52 }
 0x5c1   : > { %v5718_v11 = vpop.xlane.xlu1 %5717 }
 0x5c2   : > { %7686 = vrcp.f32 %v5718_v11  ;;  %v5714_v47 = vpop.xlane.xlu0 %5713 }
 0x5c3   : > { %7688 = vrcp.f32 %v5714_v47 }
 0x5c8   : > { %v7683_v35 = vpop.eup %7682 }
 0x5c9   : > { %v7685_v56 = vpop.eup %7684  ;;  %v5777_v2 = vmul.f32 %v7683_v35, %v9207_v63 }
 0x5ca   : > { %v5775_v21 = vmul.f32 %v7685_v56, %v9209_v1 }
 0x5cb   : > { %5793 = vst [vmem:[%s9270_s23 + $0x10] sm:$0xff] %v5777_v2 }
 0x5cc   : > { %v7687_v62 = vpop.eup %7686  ;;  %5791 = vst [vmem:[%s9270_s23] sm:$0xff] %v5775_v21 }
 0x5cd   : > { %v7689_v54 = vpop.eup %7688  ;;  %v5778_v0 = vmul.f32 %v7687_v62, %v9213_v27 }
 0x5ce   : > { %v5776_v31 = vmul.f32 %v7689_v54, %v9215_v32 }
 0x5cf   : > { %5794 = vst [vmem:[%s9270_s23 + $0x18] sm:$0xff] %v5778_v0 }
 0x5d0   : > { %5792 = vst [vmem:[%s9270_s23 + $0x8] sm:$0xff] %v5776_v31 }
 0x5d3   : > { %v5724_v63 = vpop.xlane.xlu0 %5723 }
 0x5d4   : > { %7690 = vrcp.f32 %v5724_v63 }
 0x5d5   : > { %v5726_v1 = vpop.xlane.xlu1 %5725 }
 0x5d6   : > { %7692 = vrcp.f32 %v5726_v1 }
 0x5d7   : > { %v5720_v26 = vpop.xlane.xlu0 %5719 }
 0x5d8   : > { %7694 = vrcp.f32 %v5720_v26 }
 0x5d9   : > { %v5722_v17 = vpop.xlane.xlu1 %5721 }
 0x5da   : > { %7696 = vrcp.f32 %v5722_v17 }
 0x5de   : > { %v7691_v12 = vpop.eup %7690 }
 0x5df   : > { %v5781_v39 = vmul.f32 %v7691_v12, %v9223_v28 }
 0x5e0   : > { %v7693_v36 = vpop.eup %7692 }
 0x5e1   : > { %5797 = vst [vmem:[%s9270_s23 + $0x30] sm:$0xff] %v5781_v39  ;;  %v5782_v27 = vmul.f32 %v7693_v36, %v9226_v48 }
 0x5e2   : > { %v7695_v32 = vpop.eup %7694 }
 0x5e3   : > { %5798 = vst [vmem:[%s9270_s23 + $0x38] sm:$0xff] %v5782_v27  ;;  %v5779_v33 = vmul.f32 %v7695_v32, %v9229_v30 }
 0x5e4   : > { %v7697_v51 = vpop.eup %7696 }
 0x5e5   : > { %5795 = vst [vmem:[%s9270_s23 + $0x20] sm:$0xff] %v5779_v33  ;;  %v5780_v37 = vmul.f32 %v7697_v51, %v9233_v49 }
 0x5e7   : > { %v5732_v50 = vpop.xlane.xlu0 %5731  ;;  %5796 = vst [vmem:[%s9270_s23 + $0x28] sm:$0xff] %v5780_v37 }
 0x5e8   : > { %7698 = vrcp.f32 %v5732_v50 }
 0x5e9   : > { %v5734_v53 = vpop.xlane.xlu1 %5733 }
 0x5ea   : > { %7700 = vrcp.f32 %v5734_v53 }
 0x5eb   : > { %v5728_v19 = vpop.xlane.xlu0 %5727 }
 0x5ec   : > { %7702 = vrcp.f32 %v5728_v19 }
 0x5ed   : > { %v5730_v14 = vpop.xlane.xlu1 %5729 }
 0x5ee   : > { %7704 = vrcp.f32 %v5730_v14 }
 0x5f2   : > { %v7699_v28 = vpop.eup %7698 }
 0x5f3   : > { %v5785_v48 = vmul.f32 %v7699_v28, %v9239_v15 }
 0x5f4   : > { %v7701_v30 = vpop.eup %7700 }
 0x5f5   : > { %5801 = vst [vmem:[%s9270_s23 + $0x50] sm:$0xff] %v5785_v48  ;;  %v5786_v6 = vmul.f32 %v7701_v30, %v9242_v42 }
 0x5f6   : > { %v7703_v46 = vpop.eup %7702 }
 0x5f7   : > { %5802 = vst [vmem:[%s9270_s23 + $0x58] sm:$0xff] %v5786_v6  ;;  %v5783_v43 = vmul.f32 %v7703_v46, %v9247_v38  ;;  %v5736_v57 = vpop.xlane.xlu0 %5735 }
 0x5f8   : > { %v7705_v49 = vpop.eup %7704  ;;  %7706 = vrcp.f32 %v5736_v57 }
 0x5f9   : > { %5799 = vst [vmem:[%s9270_s23 + $0x40] sm:$0xff] %v5783_v43  ;;  %v5784_v59 = vmul.f32 %v7705_v49, %v9252_v8  ;;  %v5738_v18 = vpop.xlane.xlu1 %5737 }
 0x5fa   : > { %7708 = vrcp.f32 %v5738_v18 }
 0x5fb   : > { %5800 = vst [vmem:[%s9270_s23 + $0x48] sm:$0xff] %v5784_v59  ;;  %v5740_v22 = vpop.xlane.xlu0 %5739 }
 0x5fc   : > { %7710 = vrcp.f32 %v5740_v22 }
 0x5fd   : > { %v5742_v41 = vpop.xlane.xlu1 %5741 }
 0x5fe   : > { %7712 = vrcp.f32 %v5742_v41 }
 0x602   : > { %v7707_v13 = vpop.eup %7706 }
 0x603   : > { %v5787_v5 = vmul.f32 %v7707_v13, %v9255_v45 }
 0x604   : > { %v7709_v55 = vpop.eup %7708 }
 0x605   : > { %5803 = vst [vmem:[%s9270_s23 + $0x60] sm:$0xff] %v5787_v5  ;;  %v5788_v7 = vmul.f32 %v7709_v55, %v9258_v29 }
 0x606   : > { %v7711_v15 = vpop.eup %7710 }
 0x607   : > { %5804 = vst [vmem:[%s9270_s23 + $0x68] sm:$0xff] %v5788_v7  ;;  %v5789_v9 = vmul.f32 %v7711_v15, %v9261_v20 }
 0x608   : > { %v7713_v42 = vpop.eup %7712 }
 0x609   : > { %5805 = vst [vmem:[%s9270_s23 + $0x70] sm:$0xff] %v5789_v9  ;;  %v5790_v40 = vmul.f32 %v7713_v42, %v9264_v25 }
 0x60b   : > { %5806 = vst [vmem:[%s9270_s23 + $0x78] sm:$0xff] %v5790_v40 }
 0x60c   : > { %7966 = shalt.err (!%p7963_p8)
}
 0x60d   : > { %s7967_s17 = scalar_lea.hbm %s9304_s12, 2048  ;;  %s7971_s8 = scalar_lea.hbm %s9360_s7, 4096 }
 0x60e   : > { %p7968_p7 = scmp.ne.s32.totalorder %s9304_s12, %s7967_s17  ;;  %p7972_p3 = scmp.lt.u32.totalorder %s9304_s12, %s9360_s7 }
 0x60f   : > { %p7973_p6 = scmp.lt.u32.totalorder %s7971_s8, %s7967_s17  ;;  %p7975_p0 = scmp.lt.u32.totalorder %s7967_s17, %s9304_s12 }
 0x610   : > { %p7969_p9 = pnand %p7968_p7, %p9391_p5 }
 0x611   : > { %p7974_p2 = por %p7973_p6, %p7972_p3 }
 0x612   : > { %p7970_p4 = pneg %p7969_p9 }
 0x613   : > { %p7976_p10 = por %p7975_p0, %p7974_p2 }
 0x615   : > { %p7977_p1 = pnand %p7976_p10, %p7970_p4 }
 0x617   : > { %7980 = shalt.err (!%p7977_p1)
}
 0x618   : > { %s8048_s9 = smov 128   ;;  %s8049_s19 = smov 8  }
 0x619   : > { %7144 = dma.vmem_to_hbm [thread:$0]  (%p9391_p5), %s9306_s18, 2048, %s9304_s12, %s5808_s30, %s8048_s9, %s8048_s9, %s8049_s19  }
 0x61a PF: > { %s5836_s20 = sand.u32 1, %s8019_s24   ;;  %p9392_p11 = scmp.ne.s32.totalorder %s9374_s28, 0 }
 0x61b   : > { %p9393_p12 = scmp.ge.s32.totalorder %s8031_s27, 2  ;;  %s5837_s1 = scalar_lea.sflag [#allocation4], %s5836_s20 }
 0x61d   : > { %p7170_p13 = pnand %p9393_p12, %p9392_p11 }
 0x61f   : > { %8014 = dma.done.wait (!%p7170_p13), %s5837_s1, 2048  }
 0x620   : > { %8016 = vsyncadd (!%p7170_p13), %s5837_s1, 4294965248  ;;  %p23_p8 = scmp.ge.s32.totalorder %s8262_s11, 4   ;;  %s9394_s24 = smov %s8023_s25 }
 0x621   : > { %s9395_s25 = smov %s8027_s26  ;;  %s9396_s26 = smov %s8273_s13 }
 0x622   : > { %s9397_s27 = smov %s8262_s11  ;;  %25 = sbr.rel (!%p23_p8) target bundleno = 10 (0xa), region = 117 }
 0x629   :  { %5842 = vsyncpa [#allocation3], 1 }
 0x62a   :  { %5844 = vsyncpa [#allocation3 + $0x1], 1 }
 0x62b   :  { %5845 = vsyncpa [#allocation6], 1 }
 0x62c   :  { %5846 = vsyncpa [#allocation9], 1 }
 0x62d   :  { %5847 = vsyncpa [#allocation12], 1 }
 0x62e   :  { %5848 = vsyncpa [#allocation4], 1 }
 0x62f   :  { %5850 = vsyncpa [#allocation4 + $0x1], 1 }

</bundles_post_ra>
